<compile_context>
chip_gen: v5e
topology: v5e:2x2
jax: 0.10.0
libtpu: 0.0.40
codegen_flags: <defaults>
</compile_context>

<pallas_src>
import jax
import jax.numpy as jnp
from jax.experimental import pallas as pl
from jax.experimental.pallas import tpu as pltpu


def _fused_kernel(x_ref, cw_ref, cb_ref, wa_ref, wb_ref, bb_ref, w3_ref, b3_ref, o_ref):
    # x_ref : (2, H, Wh, NB) f32 VMEM  -- [even/odd width cols, row, width-pair, batch-lane]
    # cw_ref (18,), cb_ref (2,)        -- conv weights / bias (SMEM scalars), [c*9 + di*3 + dj]
    # wa_ref, wb_ref, bb_ref (9,)      -- folded fc1+fc2:  z_j = a*wa_j + b*wb_j + bb_j
    # w3_ref (9,), b3_ref (1,)         -- fc3
    # o_ref : (1, Ho, Wp, NB) f32 VMEM -- this grid step's conv-channel slab of the result
    _, H, Wh, NB = x_ref.shape
    Ho = H - 2
    Wp = Wh - 1                       # = Wo // 2 : output pairs per conv row

    xe = x_ref[0]                     # (H, Wh, NB)  x[.., 2*k]     (batch stays on lanes)
    xo = x_ref[1]                     # (H, Wh, NB)  x[.., 2*k + 1]

    # 12 unique tap slabs: leading/sublane slices only; the lane axis is never sliced.
    e0 = [xe[di:di + Ho, 0:Wp, :] for di in range(3)]        # x[.., 2*w2 + 0]
    o0 = [xo[di:di + Ho, 0:Wp, :] for di in range(3)]        # x[.., 2*w2 + 1]
    e1 = [xe[di:di + Ho, 1:1 + Wp, :] for di in range(3)]    # x[.., 2*w2 + 2]
    o1 = [xo[di:di + Ho, 1:1 + Wp, :] for di in range(3)]    # x[.., 2*w2 + 3]
    a_taps = [e0[0], o0[0], e1[0], e0[1], o0[1], e1[1], e0[2], o0[2], e1[2]]
    b_taps = [o0[0], e1[0], o1[0], o0[1], e1[1], o1[1], o0[2], e1[2], o1[2]]

    c = pl.program_id(0)                              # conv output channel for this step
    wts = [cw_ref[c * 9 + t] for t in range(9)]
    cbias = cb_ref[c]

    def conv_sum(taps):
        # Three independent FMA chains (ILP across VALU slots), combined at the end.
        p0 = taps[0] * wts[0] + taps[3] * wts[3] + taps[6] * wts[6]
        p1 = taps[1] * wts[1] + taps[4] * wts[4] + taps[7] * wts[7]
        p2 = taps[2] * wts[2] + taps[5] * wts[5] + taps[8] * wts[8]
        return (p0 + p1) + (p2 + cbias)

    a = conv_sum(a_taps)              # conv[c, :, 0::2]  -> (Ho, Wp, NB)
    b = conv_sum(b_taps)              # conv[c, :, 1::2]

    # MLP head on the VPU: out = relu(sum_j relu(a*wa_j + b*wb_j + bb_j) * w3_j + b3).
    # TODO(synk): if a bundle dump shows VALU-bound, the rank-2 head could move to the MXU.
    terms = []
    for j in range(9):
        z = a * wa_ref[j] + b * wb_ref[j] + bb_ref[j]
        terms.append(jnp.maximum(z, 0.0) * w3_ref[j])
    s = ((terms[0] + terms[1]) + (terms[2] + terms[3])) \
        + ((terms[4] + terms[5]) + (terms[6] + terms[7])) \
        + (terms[8] + b3_ref[0])
    o_ref[0] = jnp.maximum(s, 0.0)    # full-width (128-lane) store


def lenet_variant_forward(x, params):
    # x: (N, 1, H, W) float32 NCHW (like PyTorch). Requires W even so that view(-1, 2)
    # pairs stay within one conv-output row (true for the 16x16 demo input).
    conv_w, conv_b, w1, b1, w2, b2, w3, b3 = params
    N, C, H, W = x.shape
    assert C == 1 and W % 2 == 0 and H > 2 and W > 2
    Ho, Wo = H - 2, W - 2
    Wh, Wp = W // 2, Wo // 2

    # Batch lives on the lane axis: pad to a multiple of 128, tile it per grid step.
    Npad = ((N + 127) // 128) * 128
    NB = Npad if Npad <= 1024 else 512
    Npad = ((Npad + NB - 1) // NB) * NB

    xs = jnp.transpose(x[:, 0].astype(jnp.float32), (1, 2, 0))       # (H, W, N) batch->lanes
    if Npad != N:
        xs = jnp.pad(xs, ((0, 0), (0, 0), (0, Npad - N)))
    # Single stacked even/odd-column array: one input tensor, one DMA stream per tile.
    x_eo = xs.reshape(H, Wh, 2, Npad).transpose(2, 0, 1, 3)          # (2, H, Wh, Npad)

    cw = conv_w.reshape(-1).astype(jnp.float32)        # (18,)  [c*9 + di*3 + dj]
    cb = conv_b.astype(jnp.float32)                    # (2,)
    # Fold fc1 into fc2 (exact: no nonlinearity between them):  z = pair @ W12.T + b12
    W12 = (w2 @ w1).astype(jnp.float32)                # (9, 2)
    b12 = (w2 @ b1 + b2).astype(jnp.float32)           # (9,)
    wa, wb = W12[:, 0], W12[:, 1]                      # (9,), (9,)
    w3v = w3.reshape(-1).astype(jnp.float32)           # (9,)
    b3v = b3.reshape(-1).astype(jnp.float32)           # (1,)

    smem = pl.BlockSpec(memory_space=pltpu.MemorySpace.SMEM)
    grid = (2, Npad // NB)   # (conv channel, batch tile): >=2 parallel steps for v7x

    out = pl.pallas_call(
        _fused_kernel,
        out_shape=jax.ShapeDtypeStruct((2, Ho, Wp, Npad), jnp.float32),
        grid=grid,
        in_specs=[
            pl.BlockSpec((2, H, Wh, NB), lambda c, b: (0, 0, 0, b)),
            smem, smem, smem, smem, smem, smem, smem,
        ],
        out_specs=pl.BlockSpec((1, Ho, Wp, NB), lambda c, b: (c, 0, 0, b)),
        compiler_params=pltpu.CompilerParams(
            dimension_semantics=("parallel", "parallel")),
    )(x_eo, cw, cb, wa, wb, b12, w3v, b3v)

    # (2, Ho, Wp, Npad) -> (N, 2, Ho, Wp); row-major flatten == torch's view(-1, 2) order.
    out = jnp.transpose(out, (3, 0, 1, 2))[:N]
    return out.reshape(-1, 1)


if __name__ == "__main__":
    key = jax.random.PRNGKey(0)
    ks = jax.random.split(key, 9)

    # Deterministic synthetic parameters (shapes from the module's __init__).
    conv_w = jax.random.normal(ks[0], (2, 1, 3, 3), jnp.float32) * 0.1   # Conv2d(1, 2, 3)
    conv_b = jax.random.normal(ks[1], (2,), jnp.float32) * 0.1
    w1 = jax.random.normal(ks[2], (9, 2), jnp.float32) * 0.1             # Linear(2, 9)
    b1 = jax.random.normal(ks[3], (9,), jnp.float32) * 0.1
    w2 = jax.random.normal(ks[4], (9, 9), jnp.float32) * 0.1             # Linear(9, 9)
    b2 = jax.random.normal(ks[5], (9,), jnp.float32) * 0.1
    w3 = jax.random.normal(ks[6], (1, 9), jnp.float32) * 0.1             # Linear(9, 1)
    b3 = jax.random.normal(ks[7], (1,), jnp.float32) * 0.1

    # Small input consistent with the module: batch=2, 1 channel, 16x16 spatial.
    x = jax.random.normal(ks[8], (2, 1, 16, 16), jnp.float32)

    params = (conv_w, conv_b, w1, b1, w2, b2, w3, b3)
    out = lenet_variant_forward(x, params)           # (2*14*14, 1) = (392, 1)
    out = jax.block_until_ready(out)

    # Pure-JAX reference (unfused fc1/fc2) for a silent correctness check.
    ref_c = jax.lax.conv_general_dilated(
        x, conv_w, window_strides=(1, 1), padding="VALID",
        dimension_numbers=("NCHW", "OIHW", "NCHW")) + conv_b.reshape(1, 2, 1, 1)
    ref = ref_c.reshape(-1, 2) @ w1.T + b1
    ref = jnp.maximum(ref @ w2.T + b2, 0.0)
    ref = jnp.maximum(ref @ w3.T + b3, 0.0)
    assert out.shape == (2 * 14 * 14, 1), out.shape
    assert bool(jnp.allclose(out, ref, atol=1e-5, rtol=1e-5)), \
        float(jnp.max(jnp.abs(out - ref)))

    print("KERNEL_OK")
</pallas_src>

<mosaic_0001>
module attributes {stable_mosaic.version = 11 : i64} {
  func.func @_fused_kernel(%arg0: i32, %arg1: i32, %arg2: memref<2x16x8x128xf32, #tpu.memory_space<vmem>>, %arg3: memref<18xf32, #tpu.memory_space<smem>>, %arg4: memref<2xf32, #tpu.memory_space<smem>>, %arg5: memref<9xf32, #tpu.memory_space<smem>>, %arg6: memref<9xf32, #tpu.memory_space<smem>>, %arg7: memref<9xf32, #tpu.memory_space<smem>>, %arg8: memref<9xf32, #tpu.memory_space<smem>>, %arg9: memref<1xf32, #tpu.memory_space<smem>>, %arg10: memref<1x14x7x128xf32, #tpu.memory_space<vmem>>) attributes {dimension_semantics = [#tpu.dimension_semantics<parallel>, #tpu.dimension_semantics<parallel>], iteration_bounds = array<i64: 2, 1>, scalar_prefetch = 0 : i64, scratch_operands = 0 : i64, tpu.core_type = #tpu.core_type<tc>, window_params = [{transform_indices = @transform_0, window_bounds = array<i64: 2, 16, 8, 128>}, {transform_indices = @transform_1, window_bounds = array<i64: 18>}, {transform_indices = @transform_2, window_bounds = array<i64: 2>}, {transform_indices = @transform_3, window_bounds = array<i64: 9>}, {transform_indices = @transform_4, window_bounds = array<i64: 9>}, {transform_indices = @transform_5, window_bounds = array<i64: 9>}, {transform_indices = @transform_6, window_bounds = array<i64: 9>}, {transform_indices = @transform_7, window_bounds = array<i64: 1>}, {transform_indices = @transform_8, window_bounds = array<i64: 1, 14, 7, 128>}]} {
    %c0 = arith.constant 0 : index
    %c0_0 = arith.constant 0 : index
    %c0_1 = arith.constant 0 : index
    %c0_2 = arith.constant 0 : index
    %0 = vector.load %arg2[%c0, %c0_0, %c0_1, %c0_2] : memref<2x16x8x128xf32, #tpu.memory_space<vmem>>, vector<1x16x8x128xf32>
    %1 = vector.shape_cast %0 : vector<1x16x8x128xf32> to vector<16x8x128xf32>
    %c1 = arith.constant 1 : index
    %c0_3 = arith.constant 0 : index
    %c0_4 = arith.constant 0 : index
    %c0_5 = arith.constant 0 : index
    %2 = vector.load %arg2[%c1, %c0_3, %c0_4, %c0_5] : memref<2x16x8x128xf32, #tpu.memory_space<vmem>>, vector<1x16x8x128xf32>
    %3 = vector.shape_cast %2 : vector<1x16x8x128xf32> to vector<16x8x128xf32>
    %4 = vector.extract_strided_slice %1 {offsets = [0, 0, 0], sizes = [14, 7, 128], strides = [1, 1, 1]} : vector<16x8x128xf32> to vector<14x7x128xf32>
    %5 = vector.extract_strided_slice %1 {offsets = [1, 0, 0], sizes = [14, 7, 128], strides = [1, 1, 1]} : vector<16x8x128xf32> to vector<14x7x128xf32>
    %6 = vector.extract_strided_slice %1 {offsets = [2, 0, 0], sizes = [14, 7, 128], strides = [1, 1, 1]} : vector<16x8x128xf32> to vector<14x7x128xf32>
    %7 = vector.extract_strided_slice %3 {offsets = [0, 0, 0], sizes = [14, 7, 128], strides = [1, 1, 1]} : vector<16x8x128xf32> to vector<14x7x128xf32>
    %8 = vector.extract_strided_slice %3 {offsets = [1, 0, 0], sizes = [14, 7, 128], strides = [1, 1, 1]} : vector<16x8x128xf32> to vector<14x7x128xf32>
    %9 = vector.extract_strided_slice %3 {offsets = [2, 0, 0], sizes = [14, 7, 128], strides = [1, 1, 1]} : vector<16x8x128xf32> to vector<14x7x128xf32>
    %10 = vector.extract_strided_slice %1 {offsets = [0, 1, 0], sizes = [14, 7, 128], strides = [1, 1, 1]} : vector<16x8x128xf32> to vector<14x7x128xf32>
    %11 = vector.extract_strided_slice %1 {offsets = [1, 1, 0], sizes = [14, 7, 128], strides = [1, 1, 1]} : vector<16x8x128xf32> to vector<14x7x128xf32>
    %12 = vector.extract_strided_slice %1 {offsets = [2, 1, 0], sizes = [14, 7, 128], strides = [1, 1, 1]} : vector<16x8x128xf32> to vector<14x7x128xf32>
    %13 = vector.extract_strided_slice %3 {offsets = [0, 1, 0], sizes = [14, 7, 128], strides = [1, 1, 1]} : vector<16x8x128xf32> to vector<14x7x128xf32>
    %14 = vector.extract_strided_slice %3 {offsets = [1, 1, 0], sizes = [14, 7, 128], strides = [1, 1, 1]} : vector<16x8x128xf32> to vector<14x7x128xf32>
    %15 = vector.extract_strided_slice %3 {offsets = [2, 1, 0], sizes = [14, 7, 128], strides = [1, 1, 1]} : vector<16x8x128xf32> to vector<14x7x128xf32>
    %c9_i32 = arith.constant 9 : i32
    %16 = arith.muli %arg0, %c9_i32 : i32
    %c0_i32 = arith.constant 0 : i32
    %17 = arith.addi %16, %c0_i32 : i32
    %18 = arith.index_cast %17 : i32 to index
    %19 = memref.load %arg3[%18] : memref<18xf32, #tpu.memory_space<smem>>
    %c9_i32_6 = arith.constant 9 : i32
    %20 = arith.muli %arg0, %c9_i32_6 : i32
    %c1_i32 = arith.constant 1 : i32
    %21 = arith.addi %20, %c1_i32 : i32
    %22 = arith.index_cast %21 : i32 to index
    %23 = memref.load %arg3[%22] : memref<18xf32, #tpu.memory_space<smem>>
    %c9_i32_7 = arith.constant 9 : i32
    %24 = arith.muli %arg0, %c9_i32_7 : i32
    %c2_i32 = arith.constant 2 : i32
    %25 = arith.addi %24, %c2_i32 : i32
    %26 = arith.index_cast %25 : i32 to index
    %27 = memref.load %arg3[%26] : memref<18xf32, #tpu.memory_space<smem>>
    %c9_i32_8 = arith.constant 9 : i32
    %28 = arith.muli %arg0, %c9_i32_8 : i32
    %c3_i32 = arith.constant 3 : i32
    %29 = arith.addi %28, %c3_i32 : i32
    %30 = arith.index_cast %29 : i32 to index
    %31 = memref.load %arg3[%30] : memref<18xf32, #tpu.memory_space<smem>>
    %c9_i32_9 = arith.constant 9 : i32
    %32 = arith.muli %arg0, %c9_i32_9 : i32
    %c4_i32 = arith.constant 4 : i32
    %33 = arith.addi %32, %c4_i32 : i32
    %34 = arith.index_cast %33 : i32 to index
    %35 = memref.load %arg3[%34] : memref<18xf32, #tpu.memory_space<smem>>
    %c9_i32_10 = arith.constant 9 : i32
    %36 = arith.muli %arg0, %c9_i32_10 : i32
    %c5_i32 = arith.constant 5 : i32
    %37 = arith.addi %36, %c5_i32 : i32
    %38 = arith.index_cast %37 : i32 to index
    %39 = memref.load %arg3[%38] : memref<18xf32, #tpu.memory_space<smem>>
    %c9_i32_11 = arith.constant 9 : i32
    %40 = arith.muli %arg0, %c9_i32_11 : i32
    %c6_i32 = arith.constant 6 : i32
    %41 = arith.addi %40, %c6_i32 : i32
    %42 = arith.index_cast %41 : i32 to index
    %43 = memref.load %arg3[%42] : memref<18xf32, #tpu.memory_space<smem>>
    %c9_i32_12 = arith.constant 9 : i32
    %44 = arith.muli %arg0, %c9_i32_12 : i32
    %c7_i32 = arith.constant 7 : i32
    %45 = arith.addi %44, %c7_i32 : i32
    %46 = arith.index_cast %45 : i32 to index
    %47 = memref.load %arg3[%46] : memref<18xf32, #tpu.memory_space<smem>>
    %c9_i32_13 = arith.constant 9 : i32
    %48 = arith.muli %arg0, %c9_i32_13 : i32
    %c8_i32 = arith.constant 8 : i32
    %49 = arith.addi %48, %c8_i32 : i32
    %50 = arith.index_cast %49 : i32 to index
    %51 = memref.load %arg3[%50] : memref<18xf32, #tpu.memory_space<smem>>
    %52 = arith.index_cast %arg0 : i32 to index
    %53 = memref.load %arg4[%52] : memref<2xf32, #tpu.memory_space<smem>>
    %54 = vector.broadcast %19 : f32 to vector<14x7x128xf32>
    %55 = arith.mulf %4, %54 : vector<14x7x128xf32>
    %56 = vector.broadcast %31 : f32 to vector<14x7x128xf32>
    %57 = arith.mulf %5, %56 : vector<14x7x128xf32>
    %58 = arith.addf %55, %57 : vector<14x7x128xf32>
    %59 = vector.broadcast %43 : f32 to vector<14x7x128xf32>
    %60 = arith.mulf %6, %59 : vector<14x7x128xf32>
    %61 = arith.addf %58, %60 : vector<14x7x128xf32>
    %62 = vector.broadcast %23 : f32 to vector<14x7x128xf32>
    %63 = arith.mulf %7, %62 : vector<14x7x128xf32>
    %64 = vector.broadcast %35 : f32 to vector<14x7x128xf32>
    %65 = arith.mulf %8, %64 : vector<14x7x128xf32>
    %66 = arith.addf %63, %65 : vector<14x7x128xf32>
    %67 = vector.broadcast %47 : f32 to vector<14x7x128xf32>
    %68 = arith.mulf %9, %67 : vector<14x7x128xf32>
    %69 = arith.addf %66, %68 : vector<14x7x128xf32>
    %70 = vector.broadcast %27 : f32 to vector<14x7x128xf32>
    %71 = arith.mulf %10, %70 : vector<14x7x128xf32>
    %72 = vector.broadcast %39 : f32 to vector<14x7x128xf32>
    %73 = arith.mulf %11, %72 : vector<14x7x128xf32>
    %74 = arith.addf %71, %73 : vector<14x7x128xf32>
    %75 = vector.broadcast %51 : f32 to vector<14x7x128xf32>
    %76 = arith.mulf %12, %75 : vector<14x7x128xf32>
    %77 = arith.addf %74, %76 : vector<14x7x128xf32>
    %78 = arith.addf %61, %69 : vector<14x7x128xf32>
    %79 = vector.broadcast %53 : f32 to vector<14x7x128xf32>
    %80 = arith.addf %77, %79 : vector<14x7x128xf32>
    %81 = arith.addf %78, %80 : vector<14x7x128xf32>
    %82 = vector.broadcast %19 : f32 to vector<14x7x128xf32>
    %83 = arith.mulf %7, %82 : vector<14x7x128xf32>
    %84 = vector.broadcast %31 : f32 to vector<14x7x128xf32>
    %85 = arith.mulf %8, %84 : vector<14x7x128xf32>
    %86 = arith.addf %83, %85 : vector<14x7x128xf32>
    %87 = vector.broadcast %43 : f32 to vector<14x7x128xf32>
    %88 = arith.mulf %9, %87 : vector<14x7x128xf32>
    %89 = arith.addf %86, %88 : vector<14x7x128xf32>
    %90 = vector.broadcast %23 : f32 to vector<14x7x128xf32>
    %91 = arith.mulf %10, %90 : vector<14x7x128xf32>
    %92 = vector.broadcast %35 : f32 to vector<14x7x128xf32>
    %93 = arith.mulf %11, %92 : vector<14x7x128xf32>
    %94 = arith.addf %91, %93 : vector<14x7x128xf32>
    %95 = vector.broadcast %47 : f32 to vector<14x7x128xf32>
    %96 = arith.mulf %12, %95 : vector<14x7x128xf32>
    %97 = arith.addf %94, %96 : vector<14x7x128xf32>
    %98 = vector.broadcast %27 : f32 to vector<14x7x128xf32>
    %99 = arith.mulf %13, %98 : vector<14x7x128xf32>
    %100 = vector.broadcast %39 : f32 to vector<14x7x128xf32>
    %101 = arith.mulf %14, %100 : vector<14x7x128xf32>
    %102 = arith.addf %99, %101 : vector<14x7x128xf32>
    %103 = vector.broadcast %51 : f32 to vector<14x7x128xf32>
    %104 = arith.mulf %15, %103 : vector<14x7x128xf32>
    %105 = arith.addf %102, %104 : vector<14x7x128xf32>
    %106 = arith.addf %89, %97 : vector<14x7x128xf32>
    %107 = vector.broadcast %53 : f32 to vector<14x7x128xf32>
    %108 = arith.addf %105, %107 : vector<14x7x128xf32>
    %109 = arith.addf %106, %108 : vector<14x7x128xf32>
    %c0_14 = arith.constant 0 : index
    %110 = memref.load %arg5[%c0_14] : memref<9xf32, #tpu.memory_space<smem>>
    %111 = vector.broadcast %110 : f32 to vector<14x7x128xf32>
    %112 = arith.mulf %81, %111 : vector<14x7x128xf32>
    %c0_15 = arith.constant 0 : index
    %113 = memref.load %arg6[%c0_15] : memref<9xf32, #tpu.memory_space<smem>>
    %114 = vector.broadcast %113 : f32 to vector<14x7x128xf32>
    %115 = arith.mulf %109, %114 : vector<14x7x128xf32>
    %116 = arith.addf %112, %115 : vector<14x7x128xf32>
    %c0_16 = arith.constant 0 : index
    %117 = memref.load %arg7[%c0_16] : memref<9xf32, #tpu.memory_space<smem>>
    %118 = vector.broadcast %117 : f32 to vector<14x7x128xf32>
    %119 = arith.addf %116, %118 : vector<14x7x128xf32>
    %cst = arith.constant 0.000000e+00 : f32
    %120 = vector.broadcast %cst : f32 to vector<14x7x128xf32>
    %121 = arith.maximumf %119, %120 : vector<14x7x128xf32>
    %c0_17 = arith.constant 0 : index
    %122 = memref.load %arg8[%c0_17] : memref<9xf32, #tpu.memory_space<smem>>
    %123 = vector.broadcast %122 : f32 to vector<14x7x128xf32>
    %124 = arith.mulf %121, %123 : vector<14x7x128xf32>
    %c1_18 = arith.constant 1 : index
    %125 = memref.load %arg5[%c1_18] : memref<9xf32, #tpu.memory_space<smem>>
    %126 = vector.broadcast %125 : f32 to vector<14x7x128xf32>
    %127 = arith.mulf %81, %126 : vector<14x7x128xf32>
    %c1_19 = arith.constant 1 : index
    %128 = memref.load %arg6[%c1_19] : memref<9xf32, #tpu.memory_space<smem>>
    %129 = vector.broadcast %128 : f32 to vector<14x7x128xf32>
    %130 = arith.mulf %109, %129 : vector<14x7x128xf32>
    %131 = arith.addf %127, %130 : vector<14x7x128xf32>
    %c1_20 = arith.constant 1 : index
    %132 = memref.load %arg7[%c1_20] : memref<9xf32, #tpu.memory_space<smem>>
    %133 = vector.broadcast %132 : f32 to vector<14x7x128xf32>
    %134 = arith.addf %131, %133 : vector<14x7x128xf32>
    %cst_21 = arith.constant 0.000000e+00 : f32
    %135 = vector.broadcast %cst_21 : f32 to vector<14x7x128xf32>
    %136 = arith.maximumf %134, %135 : vector<14x7x128xf32>
    %c1_22 = arith.constant 1 : index
    %137 = memref.load %arg8[%c1_22] : memref<9xf32, #tpu.memory_space<smem>>
    %138 = vector.broadcast %137 : f32 to vector<14x7x128xf32>
    %139 = arith.mulf %136, %138 : vector<14x7x128xf32>
    %c2 = arith.constant 2 : index
    %140 = memref.load %arg5[%c2] : memref<9xf32, #tpu.memory_space<smem>>
    %141 = vector.broadcast %140 : f32 to vector<14x7x128xf32>
    %142 = arith.mulf %81, %141 : vector<14x7x128xf32>
    %c2_23 = arith.constant 2 : index
    %143 = memref.load %arg6[%c2_23] : memref<9xf32, #tpu.memory_space<smem>>
    %144 = vector.broadcast %143 : f32 to vector<14x7x128xf32>
    %145 = arith.mulf %109, %144 : vector<14x7x128xf32>
    %146 = arith.addf %142, %145 : vector<14x7x128xf32>
    %c2_24 = arith.constant 2 : index
    %147 = memref.load %arg7[%c2_24] : memref<9xf32, #tpu.memory_space<smem>>
    %148 = vector.broadcast %147 : f32 to vector<14x7x128xf32>
    %149 = arith.addf %146, %148 : vector<14x7x128xf32>
    %cst_25 = arith.constant 0.000000e+00 : f32
    %150 = vector.broadcast %cst_25 : f32 to vector<14x7x128xf32>
    %151 = arith.maximumf %149, %150 : vector<14x7x128xf32>
    %c2_26 = arith.constant 2 : index
    %152 = memref.load %arg8[%c2_26] : memref<9xf32, #tpu.memory_space<smem>>
    %153 = vector.broadcast %152 : f32 to vector<14x7x128xf32>
    %154 = arith.mulf %151, %153 : vector<14x7x128xf32>
    %c3 = arith.constant 3 : index
    %155 = memref.load %arg5[%c3] : memref<9xf32, #tpu.memory_space<smem>>
    %156 = vector.broadcast %155 : f32 to vector<14x7x128xf32>
    %157 = arith.mulf %81, %156 : vector<14x7x128xf32>
    %c3_27 = arith.constant 3 : index
    %158 = memref.load %arg6[%c3_27] : memref<9xf32, #tpu.memory_space<smem>>
    %159 = vector.broadcast %158 : f32 to vector<14x7x128xf32>
    %160 = arith.mulf %109, %159 : vector<14x7x128xf32>
    %161 = arith.addf %157, %160 : vector<14x7x128xf32>
    %c3_28 = arith.constant 3 : index
    %162 = memref.load %arg7[%c3_28] : memref<9xf32, #tpu.memory_space<smem>>
    %163 = vector.broadcast %162 : f32 to vector<14x7x128xf32>
    %164 = arith.addf %161, %163 : vector<14x7x128xf32>
    %cst_29 = arith.constant 0.000000e+00 : f32
    %165 = vector.broadcast %cst_29 : f32 to vector<14x7x128xf32>
    %166 = arith.maximumf %164, %165 : vector<14x7x128xf32>
    %c3_30 = arith.constant 3 : index
    %167 = memref.load %arg8[%c3_30] : memref<9xf32, #tpu.memory_space<smem>>
    %168 = vector.broadcast %167 : f32 to vector<14x7x128xf32>
    %169 = arith.mulf %166, %168 : vector<14x7x128xf32>
    %c4 = arith.constant 4 : index
    %170 = memref.load %arg5[%c4] : memref<9xf32, #tpu.memory_space<smem>>
    %171 = vector.broadcast %170 : f32 to vector<14x7x128xf32>
    %172 = arith.mulf %81, %171 : vector<14x7x128xf32>
    %c4_31 = arith.constant 4 : index
    %173 = memref.load %arg6[%c4_31] : memref<9xf32, #tpu.memory_space<smem>>
    %174 = vector.broadcast %173 : f32 to vector<14x7x128xf32>
    %175 = arith.mulf %109, %174 : vector<14x7x128xf32>
    %176 = arith.addf %172, %175 : vector<14x7x128xf32>
    %c4_32 = arith.constant 4 : index
    %177 = memref.load %arg7[%c4_32] : memref<9xf32, #tpu.memory_space<smem>>
    %178 = vector.broadcast %177 : f32 to vector<14x7x128xf32>
    %179 = arith.addf %176, %178 : vector<14x7x128xf32>
    %cst_33 = arith.constant 0.000000e+00 : f32
    %180 = vector.broadcast %cst_33 : f32 to vector<14x7x128xf32>
    %181 = arith.maximumf %179, %180 : vector<14x7x128xf32>
    %c4_34 = arith.constant 4 : index
    %182 = memref.load %arg8[%c4_34] : memref<9xf32, #tpu.memory_space<smem>>
    %183 = vector.broadcast %182 : f32 to vector<14x7x128xf32>
    %184 = arith.mulf %181, %183 : vector<14x7x128xf32>
    %c5 = arith.constant 5 : index
    %185 = memref.load %arg5[%c5] : memref<9xf32, #tpu.memory_space<smem>>
    %186 = vector.broadcast %185 : f32 to vector<14x7x128xf32>
    %187 = arith.mulf %81, %186 : vector<14x7x128xf32>
    %c5_35 = arith.constant 5 : index
    %188 = memref.load %arg6[%c5_35] : memref<9xf32, #tpu.memory_space<smem>>
    %189 = vector.broadcast %188 : f32 to vector<14x7x128xf32>
    %190 = arith.mulf %109, %189 : vector<14x7x128xf32>
    %191 = arith.addf %187, %190 : vector<14x7x128xf32>
    %c5_36 = arith.constant 5 : index
    %192 = memref.load %arg7[%c5_36] : memref<9xf32, #tpu.memory_space<smem>>
    %193 = vector.broadcast %192 : f32 to vector<14x7x128xf32>
    %194 = arith.addf %191, %193 : vector<14x7x128xf32>
    %cst_37 = arith.constant 0.000000e+00 : f32
    %195 = vector.broadcast %cst_37 : f32 to vector<14x7x128xf32>
    %196 = arith.maximumf %194, %195 : vector<14x7x128xf32>
    %c5_38 = arith.constant 5 : index
    %197 = memref.load %arg8[%c5_38] : memref<9xf32, #tpu.memory_space<smem>>
    %198 = vector.broadcast %197 : f32 to vector<14x7x128xf32>
    %199 = arith.mulf %196, %198 : vector<14x7x128xf32>
    %c6 = arith.constant 6 : index
    %200 = memref.load %arg5[%c6] : memref<9xf32, #tpu.memory_space<smem>>
    %201 = vector.broadcast %200 : f32 to vector<14x7x128xf32>
    %202 = arith.mulf %81, %201 : vector<14x7x128xf32>
    %c6_39 = arith.constant 6 : index
    %203 = memref.load %arg6[%c6_39] : memref<9xf32, #tpu.memory_space<smem>>
    %204 = vector.broadcast %203 : f32 to vector<14x7x128xf32>
    %205 = arith.mulf %109, %204 : vector<14x7x128xf32>
    %206 = arith.addf %202, %205 : vector<14x7x128xf32>
    %c6_40 = arith.constant 6 : index
    %207 = memref.load %arg7[%c6_40] : memref<9xf32, #tpu.memory_space<smem>>
    %208 = vector.broadcast %207 : f32 to vector<14x7x128xf32>
    %209 = arith.addf %206, %208 : vector<14x7x128xf32>
    %cst_41 = arith.constant 0.000000e+00 : f32
    %210 = vector.broadcast %cst_41 : f32 to vector<14x7x128xf32>
    %211 = arith.maximumf %209, %210 : vector<14x7x128xf32>
    %c6_42 = arith.constant 6 : index
    %212 = memref.load %arg8[%c6_42] : memref<9xf32, #tpu.memory_space<smem>>
    %213 = vector.broadcast %212 : f32 to vector<14x7x128xf32>
    %214 = arith.mulf %211, %213 : vector<14x7x128xf32>
    %c7 = arith.constant 7 : index
    %215 = memref.load %arg5[%c7] : memref<9xf32, #tpu.memory_space<smem>>
    %216 = vector.broadcast %215 : f32 to vector<14x7x128xf32>
    %217 = arith.mulf %81, %216 : vector<14x7x128xf32>
    %c7_43 = arith.constant 7 : index
    %218 = memref.load %arg6[%c7_43] : memref<9xf32, #tpu.memory_space<smem>>
    %219 = vector.broadcast %218 : f32 to vector<14x7x128xf32>
    %220 = arith.mulf %109, %219 : vector<14x7x128xf32>
    %221 = arith.addf %217, %220 : vector<14x7x128xf32>
    %c7_44 = arith.constant 7 : index
    %222 = memref.load %arg7[%c7_44] : memref<9xf32, #tpu.memory_space<smem>>
    %223 = vector.broadcast %222 : f32 to vector<14x7x128xf32>
    %224 = arith.addf %221, %223 : vector<14x7x128xf32>
    %cst_45 = arith.constant 0.000000e+00 : f32
    %225 = vector.broadcast %cst_45 : f32 to vector<14x7x128xf32>
    %226 = arith.maximumf %224, %225 : vector<14x7x128xf32>
    %c7_46 = arith.constant 7 : index
    %227 = memref.load %arg8[%c7_46] : memref<9xf32, #tpu.memory_space<smem>>
    %228 = vector.broadcast %227 : f32 to vector<14x7x128xf32>
    %229 = arith.mulf %226, %228 : vector<14x7x128xf32>
    %c8 = arith.constant 8 : index
    %230 = memref.load %arg5[%c8] : memref<9xf32, #tpu.memory_space<smem>>
    %231 = vector.broadcast %230 : f32 to vector<14x7x128xf32>
    %232 = arith.mulf %81, %231 : vector<14x7x128xf32>
    %c8_47 = arith.constant 8 : index
    %233 = memref.load %arg6[%c8_47] : memref<9xf32, #tpu.memory_space<smem>>
    %234 = vector.broadcast %233 : f32 to vector<14x7x128xf32>
    %235 = arith.mulf %109, %234 : vector<14x7x128xf32>
    %236 = arith.addf %232, %235 : vector<14x7x128xf32>
    %c8_48 = arith.constant 8 : index
    %237 = memref.load %arg7[%c8_48] : memref<9xf32, #tpu.memory_space<smem>>
    %238 = vector.broadcast %237 : f32 to vector<14x7x128xf32>
    %239 = arith.addf %236, %238 : vector<14x7x128xf32>
    %cst_49 = arith.constant 0.000000e+00 : f32
    %240 = vector.broadcast %cst_49 : f32 to vector<14x7x128xf32>
    %241 = arith.maximumf %239, %240 : vector<14x7x128xf32>
    %c8_50 = arith.constant 8 : index
    %242 = memref.load %arg8[%c8_50] : memref<9xf32, #tpu.memory_space<smem>>
    %243 = vector.broadcast %242 : f32 to vector<14x7x128xf32>
    %244 = arith.mulf %241, %243 : vector<14x7x128xf32>
    %245 = arith.addf %124, %139 : vector<14x7x128xf32>
    %246 = arith.addf %154, %169 : vector<14x7x128xf32>
    %247 = arith.addf %245, %246 : vector<14x7x128xf32>
    %248 = arith.addf %184, %199 : vector<14x7x128xf32>
    %249 = arith.addf %214, %229 : vector<14x7x128xf32>
    %250 = arith.addf %248, %249 : vector<14x7x128xf32>
    %251 = arith.addf %247, %250 : vector<14x7x128xf32>
    %c0_51 = arith.constant 0 : index
    %252 = memref.load %arg9[%c0_51] : memref<1xf32, #tpu.memory_space<smem>>
    %253 = vector.broadcast %252 : f32 to vector<14x7x128xf32>
    %254 = arith.addf %244, %253 : vector<14x7x128xf32>
    %255 = arith.addf %251, %254 : vector<14x7x128xf32>
    %cst_52 = arith.constant 0.000000e+00 : f32
    %256 = vector.broadcast %cst_52 : f32 to vector<14x7x128xf32>
    %257 = arith.maximumf %255, %256 : vector<14x7x128xf32>
    %c0_53 = arith.constant 0 : index
    %c0_54 = arith.constant 0 : index
    %c0_55 = arith.constant 0 : index
    %c0_56 = arith.constant 0 : index
    %258 = vector.load %arg10[%c0_53, %c0_54, %c0_55, %c0_56] : memref<1x14x7x128xf32, #tpu.memory_space<vmem>>, vector<1x14x7x128xf32>
    %259 = vector.shape_cast %258 : vector<1x14x7x128xf32> to vector<14x7x128xf32>
    %260 = vector.shape_cast %257 : vector<14x7x128xf32> to vector<1x14x7x128xf32>
    tpu.vector_store %arg10[%c0_53, %c0_54, %c0_55, %c0_56], %260 {strides = array<i32>} : memref<1x14x7x128xf32, #tpu.memory_space<vmem>>, vector<1x14x7x128xf32>,
    return
  }
  func.func @transform_0(%arg0: i32, %arg1: i32) -> (i32, i32, i32, i32) {
    %c0_i32 = arith.constant 0 : i32
    %c0_i32_0 = arith.constant 0 : i32
    %c0_i32_1 = arith.constant 0 : i32
    %c0_i32_2 = arith.constant 0 : i32
    return %c0_i32, %c0_i32_0, %c0_i32_1, %arg1 : i32, i32, i32, i32
  }
  func.func @transform_1(%arg0: i32, %arg1: i32) -> i32 {
    %c0_i32 = arith.constant 0 : i32
    %c0_i32_0 = arith.constant 0 : i32
    return %c0_i32 : i32
  }
  func.func @transform_2(%arg0: i32, %arg1: i32) -> i32 {
    %c0_i32 = arith.constant 0 : i32
    %c0_i32_0 = arith.constant 0 : i32
    return %c0_i32 : i32
  }
  func.func @transform_3(%arg0: i32, %arg1: i32) -> i32 {
    %c0_i32 = arith.constant 0 : i32
    %c0_i32_0 = arith.constant 0 : i32
    return %c0_i32 : i32
  }
  func.func @transform_4(%arg0: i32, %arg1: i32) -> i32 {
    %c0_i32 = arith.constant 0 : i32
    %c0_i32_0 = arith.constant 0 : i32
    return %c0_i32 : i32
  }
  func.func @transform_5(%arg0: i32, %arg1: i32) -> i32 {
    %c0_i32 = arith.constant 0 : i32
    %c0_i32_0 = arith.constant 0 : i32
    return %c0_i32 : i32
  }
  func.func @transform_6(%arg0: i32, %arg1: i32) -> i32 {
    %c0_i32 = arith.constant 0 : i32
    %c0_i32_0 = arith.constant 0 : i32
    return %c0_i32 : i32
  }
  func.func @transform_7(%arg0: i32, %arg1: i32) -> i32 {
    %c0_i32 = arith.constant 0 : i32
    %c0_i32_0 = arith.constant 0 : i32
    return %c0_i32 : i32
  }
  func.func @transform_8(%arg0: i32, %arg1: i32) -> (i32, i32, i32, i32) {
    %c0_i32 = arith.constant 0 : i32
    %c0_i32_0 = arith.constant 0 : i32
    %c0_i32_1 = arith.constant 0 : i32
    return %arg0, %c0_i32, %c0_i32_0, %arg1 : i32, i32, i32, i32
  }
}

</mosaic_0001>

<bundles_post_ra>
// kernel: tpu_custom_call.1
= control target key start
LH: loop header
LB: loop body
LE: loop exit
PB: predicated region body
PF: predicated region fallthrough
CT: control target
= control target key end

     0   :  { %s4781_s0 = inlined_call_operand.hbm [shape: f32[2,16,8,128], index: 0, kind: input, shape index: {}]   ;;  %s4782_s1 = inlined_call_operand.vmem [shape: f32[18], index: 1, kind: input, shape index: {}]   ;;  %s4783_s2 = inlined_call_operand.vmem [shape: f32[2], index: 2, kind: input, shape index: {}]   ;;  %s4784_s3 = inlined_call_operand.vmem [shape: f32[9], index: 3, kind: input, shape index: {}]   ;;  %s4785_s4 = inlined_call_operand.vmem [shape: f32[9], index: 4, kind: input, shape index: {}]   ;;  %s4786_s5 = inlined_call_operand.vmem [shape: f32[9], index: 5, kind: input, shape index: {}]   ;;  %s4787_s6 = inlined_call_operand.vmem [shape: f32[9], index: 6, kind: input, shape index: {}]   ;;  %s4788_s7 = inlined_call_operand.<no memory space> [shape: f32[1], index: 7, kind: input, shape index: {}]   ;;  %s4789_s8 = inlined_call_operand.vmem [shape: f32[2,14,7,128], index: 8, kind: output, shape index: {}]  }
   0x1   :  { %13 = sst [smem:[#allocation2]] %s4788_s7 }
   0x2   :  { %14 = vsyncpa [#allocation4], 0 }
   0x3   :  { %15 = vsyncpa [#allocation5], 0 }
   0x4   :  { %16 = vsyncpa [#allocation8], 0 }
   0x5   :  { %17 = vsyncpa [#allocation11], 0 }
   0x6   :  { %18 = vsyncpa [#allocation14], 0  ;;  %s2596_s29 = smov 0   ;;  %s2598_s30 = smov 0  }
   0x7   :  { %s2600_s9 = smov 0  }
   0x8 LB: > { %s280_s11 = sshll.u32 %s4783_s2, 4  ;;  %s2224_s12 = sadd.s32 4294967295, %s2537_s9   ;;  %s2537_s9 = sphi %s2600_s9, %s24_s9   ;;  %s2533_s30 = sphi %s2598_s30, %s5470_s30   ;;  %s2529_s29 = sphi %s2596_s29, %s5469_s29   ;;  %s281_s11 = int_to_ptr.vmem [resolvable:$true] %s280_s11 }
   0x9   : > { %p2226_p0 = scmp.ge.s32.totalorder %s2537_s9, 1  ;;  %p242_p1 = scmp.lt.s32.totalorder %s2537_s9, 3 }
   0xa   : > { %p2617_p2 = scmp.eq.s32.totalorder %s2224_s12, 0  ;;  %s300_s17 = sshll.u32 %s4785_s4, 4  ;;  %s301_s17 = int_to_ptr.vmem [resolvable:$true] %s300_s17 }
   0xb   : > { %p2621_p3 = pnand %p2226_p0, %p242_p1  ;;  %s36_s19 = sadd.s32 1, %s2533_s30 }
   0xc   : > { %s255_s22 = sshll.u32 %s4781_s0, 4  ;;  %p38_p6 = scmp.ge.s32.totalorder %s36_s19, 2  ;;  %s256_s22 = int_to_ptr.hbm [resolvable:$true] %s255_s22 }
   0xd   : > { %p2306_p4 = pneg %p2621_p3  ;;  %s2539_s23 = smov [#allocation7]  }
   0xe   : > { %s2540_s24 = smov [#allocation10]   ;;  %s5472_s19 = smov (%p38_p6, %s36_s19), 0 }
   0xf   : > { %p2632_p5 = pnand %p2617_p2, %p2306_p4  ;;  %s2541_s25 = smov [#allocation3]  }
  0x10   : > { %s257_s26 = sshll.u32 %s2541_s25, 4  ;;  %s2542_s27 = smov 128   ;;  %s258_s26 = int_to_ptr.vmem [resolvable:$true] %s257_s26 }
  0x11   : > { %2315 = dma.vmem_to_smem (!%p2632_p5), %s281_s11, 16, %s2539_s23, [#allocation8]  }
  0x12   : > { %2321 = dma.vmem_to_smem (!%p2632_p5), %s301_s17, 16, %s2540_s24, [#allocation11]  }
  0x13   : > { %s2543_s28 = smov 8   ;;  %s270_s11 = sshll.u32 %s4782_s1, 4  ;;  %s271_s11 = int_to_ptr.vmem [resolvable:$true] %s270_s11 }
  0x14   : > { %2309 = dma.hbm_to_vmem [thread:$0]  (!%p2632_p5), %s256_s22, 4096, %s258_s26, [#allocation4], %s2542_s27, %s2542_s27, %s2543_s28  }
  0x15   : > { %s290_s16 = sshll.u32 %s4784_s3, 4  ;;  %s2544_s17 = smov [#allocation6]   ;;  %s291_s16 = int_to_ptr.vmem [resolvable:$true] %s290_s16 }
  0x16   : > { %2312 = dma.vmem_to_smem (!%p2632_p5), %s271_s11, 16, %s2544_s17, [#allocation5]  }
  0x17   : > { %s2545_s20 = smov [#allocation9]   ;;  %s310_s22 = sshll.u32 %s4786_s5, 4  ;;  %s311_s22 = int_to_ptr.vmem [resolvable:$true] %s310_s22 }
  0x18   : > { %2318 = dma.vmem_to_smem (!%p2632_p5), %s291_s16, 16, %s2545_s20, [#allocation8]  }
  0x19   : > { %s320_s26 = sshll.u32 %s4787_s6, 4  ;;  %s2546_s27 = smov [#allocation12]   ;;  %s321_s26 = int_to_ptr.vmem [resolvable:$true] %s320_s26 }
  0x1a   : > { %2324 = dma.vmem_to_smem (!%p2632_p5), %s311_s22, 16, %s2546_s27, [#allocation11]  }
  0x1b   : > { %s2547_s28 = smov [#allocation13]   ;;  %336 = sbr.rel (%p2621_p3) target bundleno = 441 (0x1b9), region = 52 }
  0x1c   : > { %2327 = dma.vmem_to_smem (!%p2632_p5), %s321_s26, 16, %s2547_s28, [#allocation14]  }
  0x20   : > { %2508 = dma.done.wait (%p2617_p2), [#allocation4], 4096  }
  0x21   : > { %2510 = vsyncadd (%p2617_p2), [#allocation4], 4294963200 }
  0x22   : > { %2512 = dma.done.wait (%p2617_p2), [#allocation5], 16  }
  0x23   : > { %2514 = vsyncadd (%p2617_p2), [#allocation5], 4294967280 }
  0x24   : > { %2516 = dma.done.wait (%p2617_p2), [#allocation8], 32  }
  0x25   : > { %2518 = vsyncadd (%p2617_p2), [#allocation8], 4294967264 }
  0x26   : > { %2520 = dma.done.wait (%p2617_p2), [#allocation11], 32  }
  0x27   : > { %2522 = vsyncadd (%p2617_p2), [#allocation11], 4294967264 }
  0x28   : > { %2524 = dma.done.wait (%p2617_p2), [#allocation14], 16  }
  0x29   : > { %2526 = vsyncadd (%p2617_p2), [#allocation14], 4294967280 }
  0x2a   : > { %373 = sfence }
  0x2b   : > { %s2691_s14 = smul.u32 9, %s2529_s29  ;;  %v2699_v1 = vld [vmem:[#allocation3] sm:$0xff]  ;;  %v2701_v2 = vld [vmem:[#allocation3 + $0x8] sm:$0xff]  ;;  %v2703_v3 = vld [vmem:[#allocation3 + $0x10] sm:$0xff]  ;;  %s3089_s28 = sld [smem:[#allocation7 + %s2529_s29]] }
  0x2c   : > { %4925 = vst [vmem:[#allocation21_spill] sm:$0xff] %v2699_v1  ;;  %v2705_v4 = vld [vmem:[#allocation3 + $0x18] sm:$0xff]  ;;  %v2707_v5 = vld [vmem:[#allocation3 + $0x20] sm:$0xff]  ;;  %v2711_v6 = vld [vmem:[#allocation3 + $0x28] sm:$0xff]  ;;  %p400_p7 = scmp.lt.s32.totalorder %s2529_s29, 1 }
  0x2d   : > { %s442_s18 = sld [smem:[#allocation6 + %s2691_s14]]  ;;  %s447_s7 = sadd.s32 3, %s2691_s14  ;;  %4926 = vst [vmem:[#allocation22_spill] sm:$0xff] %v2701_v2  ;;  %v2713_v7 = vld [vmem:[#allocation3 + $0x30] sm:$0xff]  ;;  %v2715_v8 = vld [vmem:[#allocation3 + $0x38] sm:$0xff]  ;;  %v2727_v13 = vld [vmem:[#allocation3 + $0x40] sm:$0xff] }
  0x2e   : > { %s448_s10 = sld [smem:[#allocation6 + %s447_s7]]  ;;  %s443_s11 = sadd.s32 1, %s2691_s14  ;;  %4927 = vst [vmem:[#allocation23_spill] sm:$0xff] %v2707_v5  ;;  %v2729_v14 = vld [vmem:[#allocation3 + $0x48] sm:$0xff]  ;;  %v2731_v15 = vld [vmem:[#allocation3 + $0x50] sm:$0xff]  ;;  %v2741_v20 = vld [vmem:[#allocation3 + $0x58] sm:$0xff] }
  0x2f   : > { %s453_s12 = sadd.s32 6, %s2691_s14  ;;  %s2709_s13 = sld [smem:[#allocation6 + %s443_s11]]  ;;  %4928 = vst [vmem:[#allocation24_spill] sm:$0xff] %v2711_v6  ;;  %v2743_v21 = vld [vmem:[#allocation3 + $0x60] sm:$0xff]  ;;  %v2753_v26 = vld [vmem:[#allocation3 + $0x68] sm:$0xff]  ;;  %v2779_v39 = vld [vmem:[#allocation3 + $0x70] sm:$0xff] }
  0x30   : > { %4929 = vst [vmem:[#allocation25_spill] sm:$0xff] %v2713_v7  ;;  %s2717_s15 = sld [smem:[#allocation6 + %s453_s12]]  ;;  %s449_s16 = sadd.s32 4, %s2691_s14  ;;  %v2798_v56 = vld [vmem:[#allocation3 + $0x80] sm:$0xff] }
  0x31   : > { %4930 = vst [vmem:[#allocation26_spill] sm:$0xff] %v2715_v8  ;;  %s2808_s17 = sld [smem:[#allocation6 + %s449_s16]]  ;;  %s455_s20 = sadd.s32 7, %s2691_s14 }
  0x32   : > { %4932 = vst [vmem:[#allocation28_spill] sm:$0xff] %v2727_v13  ;;  %s445_s21 = sadd.s32 2, %s2691_s14  ;;  %s2900_s23 = sld [smem:[#allocation6 + %s455_s20]] }
  0x33   : > { %v2697_v0 = vstv %s442_s18  ;;  %4933 = vst [vmem:[#allocation29_spill] sm:$0xff] %v2729_v14  ;;  %s2911_s22 = sld [smem:[#allocation6 + %s445_s21]]  ;;  %s451_s24 = sadd.s32 5, %s2691_s14 }
  0x34   : > { %4924 = vst [vmem:[#allocation20_spill] sm:$0xff] %v2697_v0  ;;  %v461_v9 = vmul.f32 %v2697_v0, %v2699_v1  ;;  %v462_v10 = vmul.f32 %v2697_v0, %v2701_v2  ;;  %v463_v11 = vmul.f32 %v2697_v0, %v2703_v3  ;;  %v2725_v12 = vstv %s448_s10  ;;  %s457_s25 = sadd.s32 8, %s2691_s14  ;;  %s2945_s26 = sld [smem:[#allocation6 + %s451_s24]] }
  0x35   : > { %4931 = vst [vmem:[#allocation27_spill] sm:$0xff] %v2725_v12  ;;  %v464_v16 = vmul.f32 %v2697_v0, %v2705_v4  ;;  %v465_v17 = vmul.f32 %v2697_v0, %v2707_v5  ;;  %v466_v18 = vmul.f32 %v2697_v0, %v2711_v6  ;;  %v467_v19 = vmul.f32 %v2697_v0, %v2713_v7  ;;  %s2955_s27 = sld [smem:[#allocation6 + %s457_s25]]  ;;  %s5474_s29 = smov (!%p400_p7, %s2529_s29), 1 }
  0x36   : > { %4934 = vst [vmem:[#allocation30_spill] sm:$0xff] %v2731_v15  ;;  %v468_v22 = vmul.f32 %v2697_v0, %v2715_v8  ;;  %v469_v23 = vmul.f32 %v2697_v0, %v2727_v13  ;;  %v470_v24 = vmul.f32 %v2697_v0, %v2729_v14  ;;  %v471_v25 = vmul.f32 %v2697_v0, %v2731_v15  ;;  %s3551_s14 = sld [smem:[#allocation9]] }
  0x37   : > { %4935 = vst [vmem:[#allocation31_spill] sm:$0xff] %v2741_v20  ;;  %v472_v27 = vmul.f32 %v2697_v0, %v2741_v20  ;;  %v473_v28 = vmul.f32 %v2697_v0, %v2743_v21  ;;  %v476_v29 = vmul.f32 %v2725_v12, %v2701_v2  ;;  %v477_v30 = vmul.f32 %v2725_v12, %v2703_v3  ;;  %s3562_s18 = sld [smem:[#allocation10]] }
  0x38   : > { %4936 = vst [vmem:[#allocation32_spill] sm:$0xff] %v2743_v21  ;;  %v474_v31 = vmul.f32 %v2697_v0, %v2753_v26  ;;  %v478_v32 = vmul.f32 %v2725_v12, %v2705_v4  ;;  %v479_v33 = vmul.f32 %v2725_v12, %v2707_v5  ;;  %v480_v34 = vmul.f32 %v2725_v12, %v2711_v6  ;;  %v2933_v0 = vld [vmem:[#allocation3 + $0xe8] sm:$0xff]  ;;  %s3599_s7 = sld [smem:[#allocation12]] }
  0x39   : > { %4937 = vst [vmem:[#allocation33_spill] sm:$0xff] %v2753_v26  ;;  %v481_v35 = vmul.f32 %v2725_v12, %v2713_v7  ;;  %v482_v36 = vmul.f32 %v2725_v12, %v2715_v8  ;;  %v483_v37 = vmul.f32 %v2725_v12, %v2727_v13  ;;  %v484_v38 = vmul.f32 %v2725_v12, %v2729_v14  ;;  %s3631_s10 = sld [smem:[#allocation9 + $0x1]] }
  0x3a   : > { %4938 = vst [vmem:[#allocation34_spill] sm:$0xff] %v2779_v39  ;;  %v485_v40 = vmul.f32 %v2725_v12, %v2731_v15  ;;  %v486_v41 = vmul.f32 %v2725_v12, %v2741_v20  ;;  %v487_v42 = vmul.f32 %v2725_v12, %v2743_v21  ;;  %v488_v43 = vmul.f32 %v2725_v12, %v2753_v26  ;;  %s3633_s11 = sld [smem:[#allocation13]] }
  0x3b   : > { %v489_v44 = vmul.f32 %v2725_v12, %v2779_v39  ;;  %v490_v45 = vadd.f32 %v476_v29, %v461_v9  ;;  %v491_v46 = vadd.f32 %v477_v30, %v462_v10  ;;  %v2792_v47 = vstv %s2709_s13  ;;  %4941 = vst [vmem:[#allocation37_spill] sm:$0xff] %v2798_v56  ;;  %v2931_v12 = vld [vmem:[#allocation3 + $0xe0] sm:$0xff]  ;;  %s3635_s12 = sld [smem:[#allocation10 + $0x1]] }
  0x3c   : > { %4939 = vst [vmem:[#allocation35_spill] sm:$0xff] %v2792_v47  ;;  %v492_v48 = vadd.f32 %v478_v32, %v463_v11  ;;  %v493_v49 = vadd.f32 %v479_v33, %v464_v16  ;;  %v494_v50 = vadd.f32 %v480_v34, %v465_v17  ;;  %v2795_v51 = vstv %s2717_s15  ;;  %s3637_s13 = sld [smem:[#allocation12 + $0x1]] }
  0x3d   : > { %4940 = vst [vmem:[#allocation36_spill] sm:$0xff] %v2795_v51  ;;  %v495_v52 = vadd.f32 %v481_v35, %v466_v18  ;;  %v496_v53 = vadd.f32 %v482_v36, %v467_v19  ;;  %v497_v54 = vadd.f32 %v483_v37, %v468_v22  ;;  %v498_v55 = vadd.f32 %v484_v38, %v469_v23  ;;  %v2818_v18 = vld [vmem:[#allocation3 + $0x78] sm:$0xff]  ;;  %s3717_s15 = sld [smem:[#allocation9 + $0x2]] }
  0x3e   : > { %v499_v57 = vadd.f32 %v485_v40, %v470_v24  ;;  %v500_v58 = vadd.f32 %v486_v41, %v471_v25  ;;  %v501_v59 = vadd.f32 %v487_v42, %v472_v27  ;;  %v502_v60 = vadd.f32 %v488_v43, %v473_v28  ;;  %4942 = vst [vmem:[#allocation38_spill] sm:$0xff] %v2818_v18  ;;  %v2828_v25 = vld [vmem:[#allocation3 + $0x88] sm:$0xff]  ;;  %v2830_v27 = vld [vmem:[#allocation3 + $0x90] sm:$0xff]  ;;  %v2856_v41 = vld [vmem:[#allocation3 + $0x98] sm:$0xff]  ;;  %s3722_s16 = sld [smem:[#allocation13 + $0x1]] }
  0x3f   : > { %v503_v61 = vadd.f32 %v489_v44, %v474_v31  ;;  %v505_v62 = vmul.f32 %v2795_v51, %v2703_v3  ;;  %v506_v63 = vmul.f32 %v2795_v51, %v2705_v4  ;;  %v2806_v9 = vmul.f32 %v2792_v47, %v2798_v56  ;;  %4943 = vst [vmem:[#allocation39_spill] sm:$0xff] %v2828_v25  ;;  %s3731_s20 = sld [smem:[#allocation12 + $0x2]] }
  0x40   : > { %v507_v10 = vmul.f32 %v2795_v51, %v2707_v5  ;;  %v508_v11 = vmul.f32 %v2795_v51, %v2711_v6  ;;  %v509_v16 = vmul.f32 %v2795_v51, %v2713_v7  ;;  %v510_v17 = vmul.f32 %v2795_v51, %v2715_v8  ;;  %4944 = vst [vmem:[#allocation40_spill] sm:$0xff] %v2830_v27  ;;  %s3833_s21 = sld [smem:[#allocation9 + $0x3]] }
  0x41   : > { %v511_v19 = vmul.f32 %v2795_v51, %v2727_v13  ;;  %v512_v22 = vmul.f32 %v2795_v51, %v2729_v14  ;;  %v513_v23 = vmul.f32 %v2795_v51, %v2731_v15  ;;  %v514_v24 = vmul.f32 %v2795_v51, %v2741_v20  ;;  %4951 = vst [vmem:[#allocation47_spill] sm:$0xff] %v2856_v41  ;;  %s3847_s24 = sld [smem:[#allocation12 + $0x3]] }
  0x42   : > { %v515_v28 = vmul.f32 %v2795_v51, %v2743_v21  ;;  %v516_v29 = vmul.f32 %v2795_v51, %v2753_v26  ;;  %v517_v30 = vmul.f32 %v2795_v51, %v2779_v39  ;;  %v518_v31 = vmul.f32 %v2795_v51, %v2818_v18  ;;  %4969 = vst [vmem:[#allocation65_spill] sm:$0xff] %v2931_v12  ;;  %s3949_s25 = sld [smem:[#allocation9 + $0x4]] }
  0x43   : > { %v2840_v32 = vadd.f32 %v505_v62, %v490_v45  ;;  %v2842_v33 = vadd.f32 %v506_v63, %v491_v46  ;;  %v535_v34 = vmul.f32 %v2792_v47, %v2828_v25  ;;  %v536_v35 = vmul.f32 %v2792_v47, %v2830_v27  ;;  %v2867_v46 = vld [vmem:[#allocation3 + $0xa0] sm:$0xff]  ;;  %v2886_v62 = vld [vmem:[#allocation3 + $0xc8] sm:$0xff]  ;;  %4970 = vst [vmem:[#allocation66_spill] sm:$0xff] %v2933_v0 }
  0x44   : > { %v2848_v36 = vadd.f32 %v507_v10, %v492_v48  ;;  %v2850_v37 = vadd.f32 %v508_v11, %v493_v49  ;;  %v2852_v38 = vadd.f32 %v509_v16, %v494_v50  ;;  %v2854_v40 = vadd.f32 %v510_v17, %v495_v52  ;;  %4956 = vst [vmem:[#allocation52_spill] sm:$0xff] %v2867_v46  ;;  %v2869_v48 = vld [vmem:[#allocation3 + $0xa8] sm:$0xff]  ;;  %v2871_v49 = vld [vmem:[#allocation3 + $0xb0] sm:$0xff]  ;;  %v2898_v10 = vld [vmem:[#allocation3 + $0xd8] sm:$0xff] }
  0x45   : > { %4945 = vst [vmem:[#allocation41_spill] sm:$0xff] %v2840_v32  ;;  %v2859_v42 = vadd.f32 %v511_v19, %v496_v53  ;;  %v2861_v43 = vadd.f32 %v512_v22, %v497_v54  ;;  %v2863_v44 = vadd.f32 %v513_v23, %v498_v55  ;;  %v2865_v45 = vadd.f32 %v514_v24, %v499_v57  ;;  %v2882_v55 = vld [vmem:[#allocation3 + $0xb8] sm:$0xff]  ;;  %v2884_v57 = vld [vmem:[#allocation3 + $0xc0] sm:$0xff] }
  0x46   : > { %4946 = vst [vmem:[#allocation42_spill] sm:$0xff] %v2842_v33  ;;  %v2874_v50 = vadd.f32 %v515_v28, %v500_v58  ;;  %v2876_v52 = vadd.f32 %v516_v29, %v501_v59  ;;  %v2878_v53 = vadd.f32 %v517_v30, %v502_v60  ;;  %v2880_v54 = vadd.f32 %v518_v31, %v503_v61  ;;  %v2896_v61 = vld [vmem:[#allocation3 + $0xd0] sm:$0xff] }
  0x47   : > { %4947 = vst [vmem:[#allocation43_spill] sm:$0xff] %v2848_v36  ;;  %v537_v63 = vmul.f32 %v2792_v47, %v2856_v41  ;;  %v538_v58 = vmul.f32 %v2792_v47, %v2867_v46  ;;  %v539_v59 = vmul.f32 %v2792_v47, %v2869_v48  ;;  %v540_v60 = vmul.f32 %v2792_v47, %v2871_v49 }
  0x48   : > { %4948 = vst [vmem:[#allocation44_spill] sm:$0xff] %v2850_v37  ;;  %v541_v11 = vmul.f32 %v2792_v47, %v2882_v55  ;;  %v542_v16 = vmul.f32 %v2792_v47, %v2884_v57  ;;  %v543_v17 = vmul.f32 %v2792_v47, %v2886_v62  ;;  %v2909_v19 = vstv %s2808_s17  ;;  %s3724_s17 = sld [smem:[#allocation10 + $0x2]] }
  0x49   : > { %4949 = vst [vmem:[#allocation45_spill] sm:$0xff] %v2852_v38  ;;  %v544_v22 = vmul.f32 %v2792_v47, %v2896_v61  ;;  %v545_v23 = vmul.f32 %v2792_v47, %v2898_v10  ;;  %v549_v24 = vmul.f32 %v2909_v19, %v2828_v25  ;;  %v550_v28 = vmul.f32 %v2909_v19, %v2830_v27 }
  0x4a   : > { %4950 = vst [vmem:[#allocation46_spill] sm:$0xff] %v2854_v40  ;;  %v551_v29 = vmul.f32 %v2909_v19, %v2856_v41  ;;  %v552_v30 = vmul.f32 %v2909_v19, %v2867_v46  ;;  %v553_v31 = vmul.f32 %v2909_v19, %v2869_v48  ;;  %v554_v51 = vmul.f32 %v2909_v19, %v2871_v49 }
  0x4b   : > { %4952 = vst [vmem:[#allocation48_spill] sm:$0xff] %v2859_v42  ;;  %v555_v25 = vmul.f32 %v2909_v19, %v2882_v55  ;;  %v556_v56 = vmul.f32 %v2909_v19, %v2884_v57  ;;  %v547_v42 = vmul.f32 %v2792_v47, %v2933_v0  ;;  %v563_v38 = vadd.f32 %v549_v24, %v2806_v9 }
  0x4c   : > { %4953 = vst [vmem:[#allocation49_spill] sm:$0xff] %v2861_v43  ;;  %v561_v43 = vmul.f32 %v2909_v19, %v2933_v0  ;;  %v564_v37 = vadd.f32 %v550_v28, %v535_v34  ;;  %v565_v36 = vadd.f32 %v551_v29, %v536_v35  ;;  %v566_v33 = vadd.f32 %v552_v30, %v537_v63 }
  0x4d   : > { %4954 = vst [vmem:[#allocation50_spill] sm:$0xff] %v2863_v44  ;;  %v560_v44 = vmul.f32 %v2909_v19, %v2931_v12  ;;  %v567_v32 = vadd.f32 %v553_v31, %v538_v58  ;;  %v568_v18 = vadd.f32 %v554_v51, %v539_v59  ;;  %v569_v39 = vadd.f32 %v555_v25, %v540_v60  ;;  %v4985_v31 = vld [vmem:[#allocation29_spill] sm:$0xff] }
  0x4e   : > { %4955 = vst [vmem:[#allocation51_spill] sm:$0xff] %v2865_v45  ;;  %v559_v45 = vmul.f32 %v2909_v19, %v2898_v10  ;;  %v570_v26 = vadd.f32 %v556_v56, %v541_v11  ;;  %v2963_v8 = vstv %s2900_s23  ;;  %v2970_v34 = vstv %s2911_s22  ;;  %s3838_s23 = sld [smem:[#allocation13 + $0x2]] }
  0x4f   : > { %4957 = vst [vmem:[#allocation53_spill] sm:$0xff] %v2869_v48  ;;  %v574_v14 = vadd.f32 %v560_v44, %v545_v23  ;;  %v579_v9 = vmul.f32 %v2963_v8, %v2856_v41  ;;  %v580_v51 = vmul.f32 %v2963_v8, %v2867_v46  ;;  %v581_v56 = vmul.f32 %v2963_v8, %v2869_v48  ;;  %s3840_s22 = sld [smem:[#allocation10 + $0x3]] }
  0x50   : > { %4958 = vst [vmem:[#allocation54_spill] sm:$0xff] %v2871_v49  ;;  %v573_v15 = vadd.f32 %v559_v45, %v544_v22  ;;  %v582_v25 = vmul.f32 %v2963_v8, %v2871_v49  ;;  %v583_v35 = vmul.f32 %v2963_v8, %v2882_v55  ;;  %v586_v44 = vmul.f32 %v2963_v8, %v2896_v61 }
  0x51   : > { %4959 = vst [vmem:[#allocation55_spill] sm:$0xff] %v2874_v50  ;;  %v546_v50 = vmul.f32 %v2792_v47, %v2931_v12  ;;  %v587_v45 = vmul.f32 %v2963_v8, %v2898_v10  ;;  %v3000_v59 = vadd.f32 %v579_v9, %v564_v37  ;;  %v3003_v60 = vstv %s2945_s26  ;;  %s3954_s26 = sld [smem:[#allocation13 + $0x3]] }
  0x52   : > { %4960 = vst [vmem:[#allocation56_spill] sm:$0xff] %v2876_v52  ;;  %v2943_v52 = vld [vmem:[#allocation3 + $0xf0] sm:$0xff]  ;;  %v3006_v11 = vstv %s2955_s27  ;;  %v3012_v22 = vadd.f32 %v582_v25, %v567_v32  ;;  %v3014_v23 = vadd.f32 %v583_v35, %v568_v18  ;;  %v607_v18 = vmul.f32 %v2970_v34, %v2699_v1  ;;  %v4984_v32 = vld [vmem:[#allocation28_spill] sm:$0xff]  ;;  %v4987_v25 = vld [vmem:[#allocation31_spill] sm:$0xff]  ;;  %s3956_s27 = sld [smem:[#allocation10 + $0x4]] }
  0x53   : > { %4961 = vst [vmem:[#allocation57_spill] sm:$0xff] %v2878_v53  ;;  %v558_v53 = vmul.f32 %v2909_v19, %v2896_v61  ;;  %v562_v40 = vmul.f32 %v2909_v19, %v2943_v52  ;;  %v575_v13 = vadd.f32 %v561_v43, %v546_v50  ;;  %v585_v43 = vmul.f32 %v2963_v8, %v2886_v62 }
  0x54   : > { %4962 = vst [vmem:[#allocation58_spill] sm:$0xff] %v2880_v54  ;;  %v557_v54 = vmul.f32 %v2909_v19, %v2886_v62  ;;  %v588_v50 = vmul.f32 %v2963_v8, %v2931_v12  ;;  %v615_v30 = vmul.f32 %v2970_v34, %v4984_v32  ;;  %v616_v9 = vmul.f32 %v2970_v34, %v4985_v31  ;;  %v4989_v12 = vld [vmem:[#allocation33_spill] sm:$0xff] }
  0x55   : > { %4963 = vst [vmem:[#allocation59_spill] sm:$0xff] %v2882_v55  ;;  %v572_v20 = vadd.f32 %v558_v53, %v543_v17  ;;  %v576_v47 = vadd.f32 %v562_v40, %v547_v42  ;;  %v2980_v40 = vld [vmem:[#allocation3 + $0xf8] sm:$0xff]  ;;  %v584_v42 = vmul.f32 %v2963_v8, %v2884_v57  ;;  %v589_v53 = vmul.f32 %v2963_v8, %v2933_v0 }
  0x56   : > { %4964 = vst [vmem:[#allocation60_spill] sm:$0xff] %v2884_v57  ;;  %v571_v21 = vadd.f32 %v557_v54, %v542_v16  ;;  %v590_v54 = vmul.f32 %v2963_v8, %v2943_v52  ;;  %v591_v63 = vmul.f32 %v2963_v8, %v2980_v40  ;;  %v3008_v16 = vadd.f32 %v580_v51, %v565_v36  ;;  %v4986_v51 = vld [vmem:[#allocation30_spill] sm:$0xff] }
  0x57   : > { %4965 = vst [vmem:[#allocation61_spill] sm:$0xff] %v2886_v62  ;;  %v3010_v17 = vadd.f32 %v581_v56, %v566_v33  ;;  %v3016_v24 = vadd.f32 %v584_v42, %v569_v39  ;;  %v3018_v28 = vadd.f32 %v585_v43, %v570_v26  ;;  %v3022_v37 = vadd.f32 %v587_v45, %v572_v20  ;;  %v4983_v26 = vld [vmem:[#allocation26_spill] sm:$0xff] }
  0x58   : > { %4966 = vst [vmem:[#allocation62_spill] sm:$0xff] %v2896_v61  ;;  %v3026_v29 = vadd.f32 %v589_v53, %v574_v14  ;;  %v3028_v36 = vadd.f32 %v590_v54, %v575_v13  ;;  %v3030_v33 = vadd.f32 %v591_v63, %v576_v47  ;;  %v608_v39 = vmul.f32 %v2970_v34, %v2701_v2  ;;  %v4990_v62 = vld [vmem:[#allocation34_spill] sm:$0xff] }
  0x59   : > { %4967 = vst [vmem:[#allocation63_spill] sm:$0xff] %v2898_v10  ;;  %v610_v20 = vmul.f32 %v2970_v34, %v2705_v4  ;;  %v611_v14 = vmul.f32 %v2970_v34, %v2707_v5  ;;  %v612_v13 = vmul.f32 %v2970_v34, %v2711_v6  ;;  %v614_v47 = vmul.f32 %v2970_v34, %v4983_v26 }
  0x5a   : > { %4968 = vst [vmem:[#allocation64_spill] sm:$0xff] %v2909_v19  ;;  %v578_v19 = vmul.f32 %v2963_v8, %v2830_v27  ;;  %v617_v56 = vmul.f32 %v2970_v34, %v4986_v51  ;;  %v618_v35 = vmul.f32 %v2970_v34, %v4987_v25  ;;  %v622_v42 = vmul.f32 %v3003_v60, %v2701_v2 }
  0x5b   : > { %4971 = vst [vmem:[#allocation67_spill] sm:$0xff] %v2943_v52  ;;  %v623_v43 = vmul.f32 %v3003_v60, %v2703_v3  ;;  %v625_v45 = vmul.f32 %v3003_v60, %v2707_v5  ;;  %v627_v53 = vmul.f32 %v3003_v60, %v2713_v7  ;;  %v628_v54 = vmul.f32 %v3003_v60, %v4983_v26 }
  0x5c   : > { %4972 = vst [vmem:[#allocation68_spill] sm:$0xff] %v2963_v8  ;;  %v2998_v58 = vadd.f32 %v578_v19, %v563_v38  ;;  %v3020_v38 = vadd.f32 %v586_v44, %v571_v21  ;;  %v3024_v19 = vadd.f32 %v588_v50, %v573_v15  ;;  %v609_v21 = vmul.f32 %v2970_v34, %v2703_v3 }
  0x5d   : > { %4973 = vst [vmem:[#allocation69_spill] sm:$0xff] %v2970_v34  ;;  %v613_v15 = vmul.f32 %v2970_v34, %v2713_v7  ;;  %v624_v44 = vmul.f32 %v3003_v60, %v2705_v4  ;;  %v626_v50 = vmul.f32 %v3003_v60, %v2711_v6  ;;  %v629_v63 = vmul.f32 %v3003_v60, %v4984_v32 }
  0x5e   : > { %4974 = vst [vmem:[#allocation70_spill] sm:$0xff] %v2980_v40  ;;  %v630_v8 = vmul.f32 %v3003_v60, %v4985_v31  ;;  %v631_v2 = vmul.f32 %v3003_v60, %v4986_v51  ;;  %v632_v1 = vmul.f32 %v3003_v60, %v4987_v25  ;;  %v4988_v40 = vld [vmem:[#allocation32_spill] sm:$0xff]  ;;  %v620_v10 = vmul.f32 %v2970_v34, %v4989_v12 }
  0x5f   : > { %4975 = vst [vmem:[#allocation71_spill] sm:$0xff] %v3003_v60  ;;  %v633_v52 = vmul.f32 %v3003_v60, %v4988_v40  ;;  %v619_v0 = vmul.f32 %v2970_v34, %v4988_v40  ;;  %v634_v61 = vmul.f32 %v3003_v60, %v4989_v12  ;;  %v635_v57 = vmul.f32 %v3003_v60, %v4990_v62 }
  0x60   : > { %4976 = vst [vmem:[#allocation72_spill] sm:$0xff] %v3006_v11  ;;  %v636_v55 = vadd.f32 %v622_v42, %v607_v18  ;;  %v637_v49 = vadd.f32 %v623_v43, %v608_v39  ;;  %v638_v48 = vadd.f32 %v624_v44, %v609_v21  ;;  %v639_v46 = vadd.f32 %v625_v45, %v610_v20 }
  0x61   : > { %4977 = vst [vmem:[#allocation73_spill] sm:$0xff] %v3020_v38  ;;  %v640_v41 = vadd.f32 %v626_v50, %v611_v14  ;;  %v641_v27 = vadd.f32 %v627_v53, %v612_v13  ;;  %v647_v38 = vadd.f32 %v633_v52, %v618_v35  ;;  %v651_v34 = vmul.f32 %v3006_v11, %v2703_v3 }
  0x62   : > { %4978 = vst [vmem:[#allocation74_spill] sm:$0xff] %v3022_v37  ;;  %v646_v37 = vadd.f32 %v632_v1, %v617_v56  ;;  %v652_v60 = vmul.f32 %v3006_v11, %v2705_v4  ;;  %v653_v18 = vmul.f32 %v3006_v11, %v2707_v5  ;;  %v654_v39 = vmul.f32 %v3006_v11, %v2711_v6  ;;  %v5043_v6 = vld [vmem:[#allocation36_spill] sm:$0xff] }
  0x63   : > { %4979 = vst [vmem:[#allocation75_spill] sm:$0xff] %v3024_v19  ;;  %v645_v19 = vadd.f32 %v631_v2, %v616_v9  ;;  %v656_v1 = vmul.f32 %v3006_v11, %v4983_v26  ;;  %v657_v2 = vmul.f32 %v3006_v11, %v4984_v32  ;;  %v658_v52 = vmul.f32 %v3006_v11, %v4985_v31  ;;  %v4991_v9 = vld [vmem:[#allocation38_spill] sm:$0xff] }
  0x64   : > { %4980 = vst [vmem:[#allocation76_spill] sm:$0xff] %v3026_v29  ;;  %v644_v29 = vadd.f32 %v630_v8, %v615_v30  ;;  %v655_v8 = vmul.f32 %v3006_v11, %v2713_v7  ;;  %v659_v21 = vmul.f32 %v3006_v11, %v4986_v51  ;;  %v660_v20 = vmul.f32 %v3006_v11, %v4987_v25  ;;  %v4993_v25 = vld [vmem:[#allocation42_spill] sm:$0xff] }
  0x65   : > { %4981 = vst [vmem:[#allocation77_spill] sm:$0xff] %v3028_v36  ;;  %v643_v36 = vadd.f32 %v629_v63, %v614_v47  ;;  %v661_v14 = vmul.f32 %v3006_v11, %v4988_v40  ;;  %v662_v13 = vmul.f32 %v3006_v11, %v4989_v12  ;;  %v649_v47 = vadd.f32 %v635_v57, %v620_v10  ;;  %v4992_v10 = vld [vmem:[#allocation41_spill] sm:$0xff] }
  0x66   : > { %4982 = vst [vmem:[#allocation78_spill] sm:$0xff] %v3030_v33  ;;  %v642_v33 = vadd.f32 %v628_v54, %v613_v15  ;;  %v648_v15 = vadd.f32 %v634_v61, %v619_v0  ;;  %v663_v30 = vmul.f32 %v3006_v11, %v4990_v62  ;;  %v664_v56 = vmul.f32 %v3006_v11, %v4991_v9 }
  0x67   : > { %v665_v35 = vadd.f32 %v651_v34, %v636_v55  ;;  %v666_v42 = vadd.f32 %v652_v60, %v637_v49  ;;  %v667_v43 = vadd.f32 %v653_v18, %v638_v48  ;;  %v668_v44 = vadd.f32 %v654_v39, %v639_v46  ;;  %v4994_v49 = vld [vmem:[#allocation43_spill] sm:$0xff]  ;;  %v4995_v48 = vld [vmem:[#allocation44_spill] sm:$0xff] }
  0x68   : > { %v669_v45 = vadd.f32 %v655_v8, %v640_v41  ;;  %v670_v50 = vadd.f32 %v656_v1, %v641_v27  ;;  %v671_v53 = vadd.f32 %v657_v2, %v642_v33  ;;  %v672_v54 = vadd.f32 %v658_v52, %v643_v36  ;;  %v4996_v41 = vld [vmem:[#allocation45_spill] sm:$0xff]  ;;  %v5001_v36 = vld [vmem:[#allocation50_spill] sm:$0xff]  ;;  %v5005_v39 = vld [vmem:[#allocation55_spill] sm:$0xff] }
  0x69   : > { %v673_v63 = vadd.f32 %v659_v21, %v644_v29  ;;  %v674_v40 = vadd.f32 %v660_v20, %v645_v19  ;;  %v675_v12 = vadd.f32 %v661_v14, %v646_v37  ;;  %v676_v0 = vadd.f32 %v662_v13, %v647_v38  ;;  %v4998_v38 = vld [vmem:[#allocation46_spill] sm:$0xff]  ;;  %v4999_v19 = vld [vmem:[#allocation48_spill] sm:$0xff]  ;;  %v5000_v29 = vld [vmem:[#allocation49_spill] sm:$0xff] }
  0x6a   : > { %v677_v57 = vadd.f32 %v663_v30, %v648_v15  ;;  %v678_v61 = vadd.f32 %v664_v56, %v649_v47  ;;  %v679_v62 = vadd.f32 %v2998_v58, %v4992_v10  ;;  %v680_v55 = vadd.f32 %v3000_v59, %v4993_v25  ;;  %v5002_v33 = vld [vmem:[#allocation73_spill] sm:$0xff]  ;;  %v5003_v25 = vld [vmem:[#allocation51_spill] sm:$0xff]  ;;  %v5004_v18 = vld [vmem:[#allocation74_spill] sm:$0xff] }
  0x6b   : > { %v681_v46 = vadd.f32 %v3008_v16, %v4994_v49  ;;  %v682_v27 = vadd.f32 %v3010_v17, %v4995_v48  ;;  %v683_v34 = vadd.f32 %v3012_v22, %v4996_v41  ;;  %v3130_v60 = vstv %s3089_s28  ;;  %v5006_v8 = vld [vmem:[#allocation75_spill] sm:$0xff]  ;;  %v5007_v1 = vld [vmem:[#allocation56_spill] sm:$0xff]  ;;  %v5011_v10 = vld [vmem:[#allocation58_spill] sm:$0xff]  ;;  %s3963_s28 = sld [smem:[#allocation12 + $0x4]] }
  0x6c   : > { %4997 = vst [vmem:[#allocation41_spill] sm:$0xff] %v3130_v60  ;;  %v684_v37 = vadd.f32 %v3014_v23, %v4998_v38  ;;  %v685_v58 = vadd.f32 %v3016_v24, %v4999_v19  ;;  %v686_v59 = vadd.f32 %v3018_v28, %v5000_v29  ;;  %v687_v16 = vadd.f32 %v5002_v33, %v5001_v36  ;;  %v5008_v2 = vld [vmem:[#allocation76_spill] sm:$0xff]  ;;  %v5009_v23 = vld [vmem:[#allocation57_spill] sm:$0xff] }
  0x6d   : > { %v688_v17 = vadd.f32 %v5004_v18, %v5003_v25  ;;  %v689_v22 = vadd.f32 %v5006_v8, %v5005_v39  ;;  %v3146_v52 = vadd.f32 %v5008_v2, %v5007_v1  ;;  %v5010_v21 = vld [vmem:[#allocation77_spill] sm:$0xff]  ;;  %v694_v24 = vadd.f32 %v3130_v60, %v665_v35  ;;  %v5012_v49 = vld [vmem:[#allocation78_spill] sm:$0xff]  ;;  %v5017_v39 = vld [vmem:[#allocation39_spill] sm:$0xff] }
  0x6e   : > { %v3150_v20 = vadd.f32 %v5010_v21, %v5009_v23  ;;  %v695_v28 = vadd.f32 %v3130_v60, %v666_v42  ;;  %v696_v14 = vadd.f32 %v3130_v60, %v667_v43  ;;  %v697_v13 = vadd.f32 %v3130_v60, %v668_v44  ;;  %v5018_v2 = vld [vmem:[#allocation40_spill] sm:$0xff] }
  0x6f   : > { %v698_v15 = vadd.f32 %v3130_v60, %v669_v45  ;;  %v699_v47 = vadd.f32 %v3130_v60, %v670_v50  ;;  %v700_v30 = vadd.f32 %v3130_v60, %v671_v53  ;;  %v701_v56 = vadd.f32 %v3130_v60, %v672_v54  ;;  %v5015_v53 = vld [vmem:[#allocation37_spill] sm:$0xff]  ;;  %v5016_v54 = vld [vmem:[#allocation20_spill] sm:$0xff] }
  0x70   : > { %v3162_v48 = vadd.f32 %v5012_v49, %v5011_v10  ;;  %v702_v35 = vadd.f32 %v3130_v60, %v673_v63  ;;  %v703_v42 = vadd.f32 %v3130_v60, %v674_v40  ;;  %v704_v43 = vadd.f32 %v3130_v60, %v675_v12  ;;  %v5031_v49 = vld [vmem:[#allocation52_spill] sm:$0xff] }
  0x71   : > { %v3168_v44 = vadd.f32 %v3130_v60, %v676_v0  ;;  %v3171_v45 = vadd.f32 %v3130_v60, %v677_v57  ;;  %v3174_v50 = vadd.f32 %v3130_v60, %v678_v61  ;;  %v764_v41 = vmul.f32 %v5016_v54, %v5015_v53 }
  0x72   : > { %5013 = vst [vmem:[#allocation42_spill] sm:$0xff] %v3162_v48  ;;  %v722_v38 = vrot.slane %v694_v24, 1  ;;  %v723_v19 = vrot.slane %v695_v28, 1  ;;  %v724_v29 = vrot.slane %v696_v14, 1  ;;  %v725_v63 = vrot.slane %v697_v13, 1 }
  0x73   : > { %5014 = vst [vmem:[#allocation43_spill] sm:$0xff] %v3174_v50  ;;  %v726_v36 = vrot.slane %v698_v15, 1  ;;  %v727_v40 = vrot.slane %v699_v47, 1  ;;  %v728_v33 = vrot.slane %v700_v30, 1  ;;  %v729_v12 = vrot.slane %v701_v56, 1 }
  0x74   : > { %v730_v25 = vrot.slane %v702_v35, 1  ;;  %v731_v0 = vrot.slane %v703_v42, 1  ;;  %v732_v18 = vrot.slane %v704_v43, 1  ;;  %v765_v57 = vmul.f32 %v5016_v54, %v5017_v39  ;;  %v5033_v35 = vld [vmem:[#allocation54_spill] sm:$0xff]  ;;  %v5035_v42 = vld [vmem:[#allocation60_spill] sm:$0xff] }
  0x75   : > { %v766_v23 = vmul.f32 %v5016_v54, %v5018_v2  ;;  %v3185_v21 = vadd.f32 %v722_v38, %v679_v62  ;;  %v3187_v24 = vadd.f32 %v723_v19, %v680_v55  ;;  %v3189_v28 = vadd.f32 %v724_v29, %v681_v46  ;;  %v5030_v55 = vld [vmem:[#allocation47_spill] sm:$0xff]  ;;  %v5037_v38 = vld [vmem:[#allocation62_spill] sm:$0xff] }
  0x76   : > { %v3191_v14 = vadd.f32 %v725_v63, %v682_v27  ;;  %v3193_v13 = vadd.f32 %v726_v36, %v683_v34  ;;  %v3195_v15 = vadd.f32 %v727_v40, %v684_v37  ;;  %v3197_v47 = vadd.f32 %v728_v33, %v685_v58  ;;  %v5032_v34 = vld [vmem:[#allocation53_spill] sm:$0xff]  ;;  %v5038_v29 = vld [vmem:[#allocation63_spill] sm:$0xff] }
  0x77   : > { %5019 = vst [vmem:[#allocation44_spill] sm:$0xff] %v3185_v21  ;;  %v3199_v30 = vadd.f32 %v729_v12, %v686_v59  ;;  %v3201_v56 = vadd.f32 %v730_v25, %v687_v16  ;;  %v3203_v10 = vadd.f32 %v731_v0, %v688_v17  ;;  %v3205_v62 = vadd.f32 %v732_v18, %v689_v22  ;;  %v5034_v59 = vld [vmem:[#allocation59_spill] sm:$0xff]  ;;  %v5036_v22 = vld [vmem:[#allocation61_spill] sm:$0xff] }
  0x78   : > { %5020 = vst [vmem:[#allocation45_spill] sm:$0xff] %v3187_v24  ;;  %v767_v46 = vmul.f32 %v5016_v54, %v5030_v55  ;;  %v768_v27 = vmul.f32 %v5016_v54, %v5031_v49  ;;  %v769_v37 = vmul.f32 %v5016_v54, %v5032_v34  ;;  %v770_v58 = vmul.f32 %v5016_v54, %v5033_v35  ;;  %v5039_v36 = vld [vmem:[#allocation27_spill] sm:$0xff] }
  0x79   : > { %5021 = vst [vmem:[#allocation46_spill] sm:$0xff] %v3189_v28  ;;  %v771_v16 = vmul.f32 %v5016_v54, %v5034_v59  ;;  %v772_v17 = vmul.f32 %v5016_v54, %v5035_v42  ;;  %v773_v43 = vmul.f32 %v5016_v54, %v5036_v22  ;;  %v774_v19 = vmul.f32 %v5016_v54, %v5037_v38  ;;  %v5042_v28 = vld [vmem:[#allocation67_spill] sm:$0xff] }
  0x7a   : > { %5022 = vst [vmem:[#allocation48_spill] sm:$0xff] %v3191_v14  ;;  %v775_v63 = vmul.f32 %v5016_v54, %v5038_v29  ;;  %v778_v40 = vmul.f32 %v5039_v36, %v5017_v39  ;;  %v779_v33 = vmul.f32 %v5039_v36, %v5018_v2  ;;  %v780_v12 = vmul.f32 %v5039_v36, %v5030_v55 }
  0x7b   : > { %5023 = vst [vmem:[#allocation49_spill] sm:$0xff] %v3193_v13  ;;  %v781_v25 = vmul.f32 %v5039_v36, %v5031_v49  ;;  %v782_v0 = vmul.f32 %v5039_v36, %v5032_v34  ;;  %v783_v18 = vmul.f32 %v5039_v36, %v5033_v35  ;;  %v784_v1 = vmul.f32 %v5039_v36, %v5034_v59 }
  0x7c   : > { %5024 = vst [vmem:[#allocation50_spill] sm:$0xff] %v3195_v15  ;;  %v785_v8 = vmul.f32 %v5039_v36, %v5035_v42  ;;  %v786_v61 = vmul.f32 %v5039_v36, %v5036_v22  ;;  %v5041_v15 = vld [vmem:[#allocation66_spill] sm:$0xff]  ;;  %v791_v24 = vmul.f32 %v5039_v36, %v5042_v28  ;;  %v792_v21 = vadd.f32 %v778_v40, %v764_v41 }
  0x7d   : > { %5025 = vst [vmem:[#allocation73_spill] sm:$0xff] %v3197_v47  ;;  %v777_v13 = vmul.f32 %v5016_v54, %v5041_v15  ;;  %v790_v14 = vmul.f32 %v5039_v36, %v5041_v15  ;;  %v793_v50 = vadd.f32 %v779_v33, %v765_v57  ;;  %v794_v48 = vadd.f32 %v780_v12, %v766_v23  ;;  %v5068_v33 = vld [vmem:[#allocation25_spill] sm:$0xff] }
  0x7e   : > { %5026 = vst [vmem:[#allocation51_spill] sm:$0xff] %v3199_v30  ;;  %v795_v60 = vadd.f32 %v781_v25, %v767_v46  ;;  %v796_v11 = vadd.f32 %v782_v0, %v768_v27  ;;  %v797_v39 = vadd.f32 %v783_v18, %v769_v37  ;;  %v798_v53 = vadd.f32 %v784_v1, %v770_v58  ;;  %v5069_v25 = vld [vmem:[#allocation26_spill] sm:$0xff]  ;;  %v5070_v18 = vld [vmem:[#allocation28_spill] sm:$0xff] }
  0x7f   : > { %5027 = vst [vmem:[#allocation74_spill] sm:$0xff] %v3201_v56  ;;  %v5040_v56 = vld [vmem:[#allocation65_spill] sm:$0xff]  ;;  %v799_v9 = vadd.f32 %v785_v8, %v771_v16  ;;  %v800_v51 = vadd.f32 %v786_v61, %v772_v17  ;;  %v806_v5 = vmul.f32 %v5043_v6, %v5018_v2  ;;  %v808_v41 = vmul.f32 %v5043_v6, %v5031_v49 }
  0x80   : > { %5028 = vst [vmem:[#allocation55_spill] sm:$0xff] %v3203_v10  ;;  %v788_v10 = vmul.f32 %v5039_v36, %v5038_v29  ;;  %v789_v30 = vmul.f32 %v5039_v36, %v5040_v56  ;;  %v776_v47 = vmul.f32 %v5016_v54, %v5040_v56  ;;  %v805_v54 = vadd.f32 %v791_v24, %v777_v13 }
  0x81   : > { %5029 = vst [vmem:[#allocation75_spill] sm:$0xff] %v3205_v62  ;;  %v787_v62 = vmul.f32 %v5039_v36, %v5037_v38  ;;  %v807_v36 = vmul.f32 %v5043_v6, %v5030_v55  ;;  %v809_v57 = vmul.f32 %v5043_v6, %v5032_v34  ;;  %v810_v61 = vmul.f32 %v5043_v6, %v5033_v35 }
  0x82   : > { %v802_v32 = vadd.f32 %v788_v10, %v774_v19  ;;  %v803_v26 = vadd.f32 %v789_v30, %v775_v63  ;;  %v804_v7 = vadd.f32 %v790_v14, %v776_v47  ;;  %v811_v8 = vmul.f32 %v5043_v6, %v5034_v59  ;;  %v5044_v10 = vld [vmem:[#allocation70_spill] sm:$0xff] }
  0x83   : > { %v801_v31 = vadd.f32 %v787_v62, %v773_v43  ;;  %v812_v1 = vmul.f32 %v5043_v6, %v5035_v42  ;;  %v813_v23 = vmul.f32 %v5043_v6, %v5036_v22  ;;  %v814_v24 = vmul.f32 %v5043_v6, %v5037_v38 }
  0x84   : > { %v815_v14 = vmul.f32 %v5043_v6, %v5038_v29  ;;  %v816_v13 = vmul.f32 %v5043_v6, %v5040_v56  ;;  %v817_v47 = vmul.f32 %v5043_v6, %v5041_v15  ;;  %v818_v30 = vmul.f32 %v5043_v6, %v5042_v28 }
  0x85   : > { %v819_v62 = vmul.f32 %v5043_v6, %v5044_v10  ;;  %v5045_v46 = vrot.slane %v3168_v44, 1  ;;  %v5047_v37 = vrot.slane %v3171_v45, 1  ;;  %v3295_v16 = vadd.f32 %v806_v5, %v792_v21  ;;  %v5065_v21 = vld [vmem:[#allocation22_spill] sm:$0xff] }
  0x86   : > { %v3297_v17 = vadd.f32 %v807_v36, %v793_v50  ;;  %v3299_v43 = vadd.f32 %v808_v41, %v794_v48  ;;  %v3301_v19 = vadd.f32 %v809_v57, %v795_v60  ;;  %v3303_v63 = vadd.f32 %v810_v61, %v796_v11  ;;  %v5063_v11 = vld [vmem:[#allocation21_spill] sm:$0xff]  ;;  %v5064_v50 = vld [vmem:[#allocation35_spill] sm:$0xff]  ;;  %v5072_v57 = vld [vmem:[#allocation30_spill] sm:$0xff] }
  0x87   : > { %v3288_v27 = vadd.f32 %v5045_v46, %v3146_v52  ;;  %v3293_v58 = vadd.f32 %v5047_v37, %v3150_v20  ;;  %5049 = vst [vmem:[#allocation57_spill] sm:$0xff] %v3295_v16  ;;  %v3305_v6 = vadd.f32 %v811_v8, %v797_v39  ;;  %v3307_v44 = vadd.f32 %v812_v1, %v798_v53  ;;  %v5071_v36 = vld [vmem:[#allocation29_spill] sm:$0xff]  ;;  %v5073_v8 = vld [vmem:[#allocation31_spill] sm:$0xff] }
  0x88   : > { %5050 = vst [vmem:[#allocation77_spill] sm:$0xff] %v3297_v17  ;;  %v3309_v52 = vadd.f32 %v813_v23, %v799_v9  ;;  %v3311_v40 = vadd.f32 %v814_v24, %v800_v51  ;;  %v3313_v20 = vadd.f32 %v815_v14, %v801_v31  ;;  %v3315_v5 = vadd.f32 %v816_v13, %v802_v32  ;;  %v5066_v32 = vld [vmem:[#allocation23_spill] sm:$0xff]  ;;  %v5067_v9 = vld [vmem:[#allocation24_spill] sm:$0xff] }
  0x89   : > { %5046 = vst [vmem:[#allocation56_spill] sm:$0xff] %v3288_v27  ;;  %v3317_v45 = vadd.f32 %v817_v47, %v803_v26  ;;  %v3319_v48 = vadd.f32 %v818_v30, %v804_v7  ;;  %v3321_v60 = vadd.f32 %v819_v62, %v805_v54  ;;  %v834_v39 = vmul.f32 %v5064_v50, %v5063_v11  ;;  %v5074_v23 = vld [vmem:[#allocation64_spill] sm:$0xff] }
  0x8a   : > { %5048 = vst [vmem:[#allocation76_spill] sm:$0xff] %v3293_v58  ;;  %v835_v53 = vmul.f32 %v5064_v50, %v5065_v21  ;;  %v836_v51 = vmul.f32 %v5064_v50, %v2703_v3  ;;  %v837_v31 = vmul.f32 %v5064_v50, %v2705_v4  ;;  %v838_v26 = vmul.f32 %v5064_v50, %v5066_v32  ;;  %v5075_v27 = vld [vmem:[#allocation32_spill] sm:$0xff] }
  0x8b   : > { %5051 = vst [vmem:[#allocation58_spill] sm:$0xff] %v3299_v43  ;;  %v839_v7 = vmul.f32 %v5064_v50, %v5067_v9  ;;  %v840_v12 = vmul.f32 %v5064_v50, %v5068_v33  ;;  %v841_v0 = vmul.f32 %v5064_v50, %v5069_v25  ;;  %v842_v54 = vmul.f32 %v5064_v50, %v5070_v18 }
  0x8c   : > { %5052 = vst [vmem:[#allocation78_spill] sm:$0xff] %v3301_v19  ;;  %v843_v41 = vmul.f32 %v5064_v50, %v5071_v36  ;;  %v844_v61 = vmul.f32 %v5064_v50, %v5072_v57  ;;  %v845_v1 = vmul.f32 %v5064_v50, %v5073_v8  ;;  %v848_v24 = vmul.f32 %v5074_v23, %v5065_v21 }
  0x8d   : > { %5053 = vst [vmem:[#allocation20_spill] sm:$0xff] %v3303_v63  ;;  %v849_v14 = vmul.f32 %v5074_v23, %v2703_v3  ;;  %v850_v13 = vmul.f32 %v5074_v23, %v2705_v4  ;;  %v851_v47 = vmul.f32 %v5074_v23, %v5066_v32  ;;  %v852_v30 = vmul.f32 %v5074_v23, %v5067_v9 }
  0x8e   : > { %5054 = vst [vmem:[#allocation40_spill] sm:$0xff] %v3305_v6  ;;  %v853_v62 = vmul.f32 %v5074_v23, %v5068_v33  ;;  %v854_v46 = vmul.f32 %v5074_v23, %v5069_v25  ;;  %v855_v37 = vmul.f32 %v5074_v23, %v5070_v18  ;;  %v856_v11 = vmul.f32 %v5074_v23, %v5071_v36 }
  0x8f   : > { %5055 = vst [vmem:[#allocation47_spill] sm:$0xff] %v3307_v44  ;;  %v857_v21 = vmul.f32 %v5074_v23, %v5072_v57  ;;  %v858_v58 = vmul.f32 %v5074_v23, %v5073_v8  ;;  %v862_v44 = vadd.f32 %v848_v24, %v834_v39  ;;  %v863_v6 = vadd.f32 %v849_v14, %v835_v53  ;;  %v5093_v14 = vld [vmem:[#allocation71_spill] sm:$0xff] }
  0x90   : > { %5056 = vst [vmem:[#allocation52_spill] sm:$0xff] %v3309_v52  ;;  %v864_v63 = vadd.f32 %v850_v13, %v836_v51  ;;  %v865_v19 = vadd.f32 %v851_v47, %v837_v31  ;;  %v866_v43 = vadd.f32 %v852_v30, %v838_v26  ;;  %v867_v17 = vadd.f32 %v853_v62, %v839_v7 }
  0x91   : > { %5057 = vst [vmem:[#allocation53_spill] sm:$0xff] %v3311_v40  ;;  %v5077_v40 = vld [vmem:[#allocation34_spill] sm:$0xff]  ;;  %v868_v16 = vadd.f32 %v854_v46, %v840_v12  ;;  %v869_v10 = vadd.f32 %v855_v37, %v841_v0  ;;  %v870_v28 = vadd.f32 %v856_v11, %v842_v54  ;;  %v871_v15 = vadd.f32 %v857_v21, %v843_v41 }
  0x92   : > { %5058 = vst [vmem:[#allocation54_spill] sm:$0xff] %v3313_v20  ;;  %v861_v52 = vmul.f32 %v5074_v23, %v5077_v40  ;;  %v872_v56 = vadd.f32 %v858_v58, %v844_v61  ;;  %v5079_v12 = vld [vmem:[#allocation38_spill] sm:$0xff]  ;;  %v919_v47 = vmul.f32 %v5093_v14, %v5018_v2  ;;  %v920_v30 = vmul.f32 %v5093_v14, %v5030_v55 }
  0x93   : > { %5059 = vst [vmem:[#allocation59_spill] sm:$0xff] %v3315_v5  ;;  %v921_v62 = vmul.f32 %v5093_v14, %v5031_v49  ;;  %v922_v46 = vmul.f32 %v5093_v14, %v5032_v34  ;;  %v923_v37 = vmul.f32 %v5093_v14, %v5033_v35  ;;  %v924_v11 = vmul.f32 %v5093_v14, %v5034_v59 }
  0x94   : > { %5060 = vst [vmem:[#allocation60_spill] sm:$0xff] %v3317_v45  ;;  %v5076_v45 = vld [vmem:[#allocation33_spill] sm:$0xff]  ;;  %v925_v21 = vmul.f32 %v5093_v14, %v5035_v42 }
  0x95   : > { %5061 = vst [vmem:[#allocation27_spill] sm:$0xff] %v3319_v48  ;;  %v846_v48 = vmul.f32 %v5064_v50, %v5075_v27  ;;  %v847_v5 = vmul.f32 %v5064_v50, %v5076_v45  ;;  %v860_v20 = vmul.f32 %v5074_v23, %v5076_v45  ;;  %v5078_v50 = vld [vmem:[#allocation68_spill] sm:$0xff] }
  0x96   : > { %5062 = vst [vmem:[#allocation36_spill] sm:$0xff] %v3321_v60  ;;  %v859_v60 = vmul.f32 %v5074_v23, %v5075_v27  ;;  %v876_v38 = vmul.f32 %v5078_v50, %v2703_v3  ;;  %v877_v22 = vmul.f32 %v5078_v50, %v2705_v4  ;;  %v878_v39 = vmul.f32 %v5078_v50, %v5066_v32  ;;  %v5092_v23 = vld [vmem:[#allocation63_spill] sm:$0xff] }
  0x97   : > { %v879_v53 = vmul.f32 %v5078_v50, %v5067_v9  ;;  %v880_v51 = vmul.f32 %v5078_v50, %v5068_v33  ;;  %v881_v31 = vmul.f32 %v5078_v50, %v5069_v25  ;;  %v882_v58 = vmul.f32 %v5078_v50, %v5070_v18 }
  0x98   : > { %v873_v29 = vadd.f32 %v859_v60, %v845_v1  ;;  %v883_v3 = vmul.f32 %v5078_v50, %v5071_v36  ;;  %v884_v4 = vmul.f32 %v5078_v50, %v5072_v57  ;;  %v885_v60 = vmul.f32 %v5078_v50, %v5073_v8  ;;  %v5090_v57 = vld [vmem:[#allocation61_spill] sm:$0xff]  ;;  %v5091_v8 = vld [vmem:[#allocation62_spill] sm:$0xff] }
  0x99   : > { %v886_v32 = vmul.f32 %v5078_v50, %v5075_v27  ;;  %v887_v26 = vmul.f32 %v5078_v50, %v5076_v45  ;;  %v874_v9 = vadd.f32 %v860_v20, %v846_v48  ;;  %v875_v7 = vadd.f32 %v861_v52, %v847_v5 }
  0x9a   : > { %v888_v33 = vmul.f32 %v5078_v50, %v5077_v40  ;;  %v889_v25 = vmul.f32 %v5078_v50, %v5079_v12  ;;  %v3407_v0 = vadd.f32 %v876_v38, %v862_v44  ;;  %v3409_v18 = vadd.f32 %v877_v22, %v863_v6  ;;  %v5088_v6 = vld [vmem:[#allocation69_spill] sm:$0xff]  ;;  %v5089_v44 = vld [vmem:[#allocation39_spill] sm:$0xff] }
  0x9b   : > { %v3411_v54 = vadd.f32 %v878_v39, %v864_v63  ;;  %v3413_v36 = vadd.f32 %v879_v53, %v865_v19  ;;  %v3415_v27 = vadd.f32 %v880_v51, %v866_v43  ;;  %v3417_v41 = vadd.f32 %v881_v31, %v867_v17  ;;  %v5087_v43 = vld [vmem:[#allocation37_spill] sm:$0xff]  ;;  %v5095_v31 = vld [vmem:[#allocation66_spill] sm:$0xff] }
  0x9c   : > { %v3419_v20 = vadd.f32 %v882_v58, %v868_v16  ;;  %v3421_v52 = vadd.f32 %v883_v3, %v869_v10  ;;  %v3423_v40 = vadd.f32 %v884_v4, %v870_v28  ;;  %v3425_v5 = vadd.f32 %v885_v60, %v871_v15  ;;  %v5094_v53 = vld [vmem:[#allocation65_spill] sm:$0xff] }
  0x9d   : > { %v3427_v38 = vadd.f32 %v886_v32, %v872_v56  ;;  %v3429_v22 = vadd.f32 %v887_v26, %v873_v29  ;;  %v3431_v63 = vadd.f32 %v888_v33, %v874_v9  ;;  %v3433_v19 = vadd.f32 %v889_v25, %v875_v7  ;;  %v5096_v32 = vld [vmem:[#allocation67_spill] sm:$0xff] }
  0x9e   : > { %5080 = vst [vmem:[#allocation21_spill] sm:$0xff] %v3421_v52  ;;  %v904_v17 = vmul.f32 %v5088_v6, %v5087_v43  ;;  %v905_v16 = vmul.f32 %v5088_v6, %v5089_v44  ;;  %v906_v28 = vmul.f32 %v5088_v6, %v5018_v2  ;;  %v907_v15 = vmul.f32 %v5088_v6, %v5030_v55 }
  0x9f   : > { %5081 = vst [vmem:[#allocation35_spill] sm:$0xff] %v3423_v40  ;;  %v908_v56 = vmul.f32 %v5088_v6, %v5031_v49  ;;  %v909_v29 = vmul.f32 %v5088_v6, %v5032_v34  ;;  %v910_v10 = vmul.f32 %v5088_v6, %v5033_v35  ;;  %v911_v45 = vmul.f32 %v5088_v6, %v5034_v59 }
  0xa0   : > { %5082 = vst [vmem:[#allocation22_spill] sm:$0xff] %v3425_v5  ;;  %v912_v48 = vmul.f32 %v5088_v6, %v5035_v42  ;;  %v913_v61 = vmul.f32 %v5088_v6, %v5090_v57  ;;  %v914_v1 = vmul.f32 %v5088_v6, %v5091_v8  ;;  %v915_v24 = vmul.f32 %v5088_v6, %v5092_v23  ;;  %v5097_v5 = vld [vmem:[#allocation72_spill] sm:$0xff] }
  0xa1   : > { %5083 = vst [vmem:[#allocation23_spill] sm:$0xff] %v3427_v38  ;;  %v918_v13 = vmul.f32 %v5093_v14, %v5089_v44  ;;  %v926_v50 = vmul.f32 %v5093_v14, %v5090_v57  ;;  %v927_v39 = vmul.f32 %v5093_v14, %v5091_v8  ;;  %v916_v51 = vmul.f32 %v5088_v6, %v5094_v53 }
  0xa2   : > { %5084 = vst [vmem:[#allocation24_spill] sm:$0xff] %v3429_v22  ;;  %v917_v58 = vmul.f32 %v5088_v6, %v5095_v31  ;;  %v928_v3 = vmul.f32 %v5093_v14, %v5092_v23  ;;  %v929_v4 = vmul.f32 %v5093_v14, %v5094_v53  ;;  %v930_v60 = vmul.f32 %v5093_v14, %v5095_v31 }
  0xa3   : > { %5085 = vst [vmem:[#allocation25_spill] sm:$0xff] %v3431_v63  ;;  %v931_v26 = vmul.f32 %v5093_v14, %v5096_v32  ;;  %v932_v9 = vadd.f32 %v918_v13, %v904_v17  ;;  %v933_v7 = vadd.f32 %v919_v47, %v905_v16  ;;  %v934_v33 = vadd.f32 %v920_v30, %v906_v28 }
  0xa4   : > { %5086 = vst [vmem:[#allocation26_spill] sm:$0xff] %v3433_v19  ;;  %v935_v12 = vadd.f32 %v921_v62, %v907_v15  ;;  %v936_v25 = vadd.f32 %v922_v46, %v908_v56  ;;  %v937_v43 = vadd.f32 %v923_v37, %v909_v29  ;;  %v938_v44 = vadd.f32 %v924_v11, %v910_v10  ;;  %v5098_v10 = vld [vmem:[#allocation70_spill] sm:$0xff] }
  0xa5   : > { %v939_v6 = vadd.f32 %v925_v21, %v911_v45  ;;  %v940_v19 = vadd.f32 %v926_v50, %v912_v48  ;;  %v941_v63 = vadd.f32 %v927_v39, %v913_v61  ;;  %v942_v22 = vadd.f32 %v928_v3, %v914_v1  ;;  %v5099_v50 = vld [vmem:[#allocation21_spill] sm:$0xff] }
  0xa6   : > { %v943_v38 = vadd.f32 %v929_v4, %v915_v24  ;;  %v946_v40 = vmul.f32 %v5097_v5, %v5018_v2  ;;  %v947_v52 = vmul.f32 %v5097_v5, %v5030_v55  ;;  %v948_v17 = vmul.f32 %v5097_v5, %v5031_v49  ;;  %v5106_v4 = vld [vmem:[#allocation57_spill] sm:$0xff] }
  0xa7   : > { %v949_v16 = vmul.f32 %v5097_v5, %v5032_v34  ;;  %v950_v28 = vmul.f32 %v5097_v5, %v5033_v35  ;;  %v951_v15 = vmul.f32 %v5097_v5, %v5034_v59  ;;  %v952_v56 = vmul.f32 %v5097_v5, %v5035_v42 }
  0xa8   : > { %v953_v2 = vmul.f32 %v5097_v5, %v5090_v57  ;;  %v954_v55 = vmul.f32 %v5097_v5, %v5091_v8  ;;  %v955_v49 = vmul.f32 %v5097_v5, %v5092_v23  ;;  %v944_v29 = vadd.f32 %v930_v60, %v916_v51  ;;  %v5102_v51 = vld [vmem:[#allocation23_spill] sm:$0xff]  ;;  %v5107_v60 = vld [vmem:[#allocation77_spill] sm:$0xff] }
  0xa9   : > { %v945_v34 = vadd.f32 %v931_v26, %v917_v58  ;;  %v956_v35 = vmul.f32 %v5097_v5, %v5094_v53  ;;  %v957_v59 = vmul.f32 %v5097_v5, %v5095_v31  ;;  %v958_v42 = vmul.f32 %v5097_v5, %v5096_v32  ;;  %v5103_v31 = vld [vmem:[#allocation24_spill] sm:$0xff]  ;;  %v5108_v32 = vld [vmem:[#allocation58_spill] sm:$0xff] }
  0xaa   : > { %v959_v45 = vmul.f32 %v5097_v5, %v5098_v10  ;;  %v960_v48 = vadd.f32 %v946_v40, %v932_v9  ;;  %v961_v57 = vadd.f32 %v947_v52, %v933_v7  ;;  %v962_v61 = vadd.f32 %v948_v17, %v934_v33  ;;  %v5104_v58 = vld [vmem:[#allocation25_spill] sm:$0xff]  ;;  %v5109_v9 = vld [vmem:[#allocation78_spill] sm:$0xff]  ;;  %v5110_v33 = vld [vmem:[#allocation20_spill] sm:$0xff] }
  0xab   : > { %v963_v8 = vadd.f32 %v949_v16, %v935_v12  ;;  %v964_v1 = vadd.f32 %v950_v28, %v936_v25  ;;  %v965_v23 = vadd.f32 %v951_v15, %v937_v43  ;;  %v966_v24 = vadd.f32 %v952_v56, %v938_v44  ;;  %v5105_v3 = vld [vmem:[#allocation26_spill] sm:$0xff]  ;;  %v5111_v25 = vld [vmem:[#allocation40_spill] sm:$0xff]  ;;  %v5112_v44 = vld [vmem:[#allocation47_spill] sm:$0xff] }
  0xac   : > { %v967_v14 = vadd.f32 %v953_v2, %v939_v6  ;;  %v968_v13 = vadd.f32 %v954_v55, %v940_v19  ;;  %v969_v47 = vadd.f32 %v955_v49, %v941_v63  ;;  %v970_v30 = vadd.f32 %v956_v35, %v942_v22  ;;  %v5100_v19 = vld [vmem:[#allocation35_spill] sm:$0xff]  ;;  %v5101_v22 = vld [vmem:[#allocation22_spill] sm:$0xff]  ;;  %v5113_v17 = vld [vmem:[#allocation52_spill] sm:$0xff] }
  0xad   : > { %v971_v62 = vadd.f32 %v957_v59, %v943_v38  ;;  %v988_v46 = vrot.slane %v3407_v0, 1  ;;  %v989_v37 = vrot.slane %v3409_v18, 1  ;;  %v990_v11 = vrot.slane %v3411_v54, 1  ;;  %v5114_v28 = vld [vmem:[#allocation53_spill] sm:$0xff]  ;;  %v5115_v56 = vld [vmem:[#allocation54_spill] sm:$0xff]  ;;  %v5116_v55 = vld [vmem:[#allocation59_spill] sm:$0xff] }
  0xae   : > { %v991_v5 = vrot.slane %v3413_v36, 1  ;;  %v992_v52 = vrot.slane %v3415_v27, 1  ;;  %v993_v40 = vrot.slane %v3417_v41, 1  ;;  %v994_v21 = vrot.slane %v3419_v20, 1 }
  0xaf   : > { %v995_v39 = vrot.slane %v5099_v50, 1  ;;  %v996_v63 = vrot.slane %v5100_v19, 1  ;;  %v997_v38 = vrot.slane %v5101_v22, 1  ;;  %v972_v53 = vadd.f32 %v958_v42, %v944_v29  ;;  %v5117_v29 = vld [vmem:[#allocation41_spill] sm:$0xff]  ;;  %v5118_v42 = vld [vmem:[#allocation60_spill] sm:$0xff] }
  0xb0   : > { %v973_v0 = vadd.f32 %v959_v45, %v945_v34  ;;  %v998_v18 = vrot.slane %v5102_v51, 1  ;;  %v999_v54 = vrot.slane %v5103_v31, 1  ;;  %v1000_v36 = vrot.slane %v5104_v58, 1  ;;  %v5122_v31 = vld [vmem:[#allocation43_spill] sm:$0xff] }
  0xb1   : > { %v1001_v27 = vrot.slane %v5105_v3, 1  ;;  %v1016_v41 = vadd.f32 %v988_v46, %v5106_v4  ;;  %v1017_v20 = vadd.f32 %v989_v37, %v5107_v60  ;;  %v1018_v26 = vadd.f32 %v990_v11, %v5108_v32 }
  0xb2   : > { %v1019_v7 = vadd.f32 %v991_v5, %v5109_v9  ;;  %v1020_v12 = vadd.f32 %v992_v52, %v5110_v33  ;;  %v1021_v43 = vadd.f32 %v993_v40, %v5111_v25  ;;  %v1022_v6 = vadd.f32 %v994_v21, %v5112_v44  ;;  %v5119_v40 = vld [vmem:[#allocation27_spill] sm:$0xff] }
  0xb3   : > { %v1023_v16 = vadd.f32 %v995_v39, %v5113_v17  ;;  %v1024_v15 = vadd.f32 %v996_v63, %v5114_v28  ;;  %v1025_v2 = vadd.f32 %v997_v38, %v5115_v56  ;;  %v1026_v49 = vadd.f32 %v998_v18, %v5116_v55  ;;  %v5121_v18 = vld [vmem:[#allocation42_spill] sm:$0xff]  ;;  %v5138_v55 = vld [vmem:[#allocation48_spill] sm:$0xff] }
  0xb4   : > { %v1030_v34 = vadd.f32 %v960_v48, %v5117_v29  ;;  %v1031_v35 = vadd.f32 %v961_v57, %v5117_v29  ;;  %v1032_v59 = vadd.f32 %v962_v61, %v5117_v29  ;;  %v1027_v10 = vadd.f32 %v999_v54, %v5118_v42 }
  0xb5   : > { %v1033_v45 = vadd.f32 %v963_v8, %v5117_v29  ;;  %v1034_v46 = vadd.f32 %v964_v1, %v5117_v29  ;;  %v1035_v37 = vadd.f32 %v965_v23, %v5117_v29  ;;  %v1036_v11 = vadd.f32 %v966_v24, %v5117_v29  ;;  %v5120_v24 = vld [vmem:[#allocation36_spill] sm:$0xff] }
  0xb6   : > { %v1037_v5 = vadd.f32 %v967_v14, %v5117_v29  ;;  %v1038_v48 = vadd.f32 %v968_v13, %v5117_v29  ;;  %v1039_v57 = vadd.f32 %v969_v47, %v5117_v29  ;;  %v1040_v61 = vadd.f32 %v970_v30, %v5117_v29 }
  0xb7   : > { %v1041_v52 = vadd.f32 %v971_v62, %v5117_v29  ;;  %v1042_v8 = vadd.f32 %v972_v53, %v5117_v29  ;;  %v1043_v1 = vadd.f32 %v973_v0, %v5117_v29  ;;  %v1028_v23 = vadd.f32 %v1000_v36, %v5119_v40  ;;  %v5139_v29 = vld [vmem:[#allocation49_spill] sm:$0xff] }
  0xb8   : > { %v1058_v21 = vrot.slane %v1030_v34, 1  ;;  %v1059_v50 = vrot.slane %v1031_v35, 1  ;;  %v1060_v39 = vrot.slane %v1032_v59, 1  ;;  %v1029_v14 = vadd.f32 %v1001_v27, %v5120_v24  ;;  %v5140_v34 = vld [vmem:[#allocation50_spill] sm:$0xff]  ;;  %v5141_v59 = vld [vmem:[#allocation73_spill] sm:$0xff] }
  0xb9   : > { %v1061_v13 = vrot.slane %v1033_v45, 1  ;;  %v1062_v19 = vrot.slane %v1034_v46, 1  ;;  %v1063_v47 = vrot.slane %v1035_v37, 1  ;;  %v1064_v30 = vrot.slane %v1036_v11, 1  ;;  %v5143_v46 = vld [vmem:[#allocation74_spill] sm:$0xff]  ;;  %v5144_v11 = vld [vmem:[#allocation55_spill] sm:$0xff] }
  0xba   : > { %v1065_v63 = vrot.slane %v1037_v5, 1  ;;  %v1066_v62 = vrot.slane %v1038_v48, 1  ;;  %v1067_v22 = vrot.slane %v1039_v57, 1  ;;  %v1068_v38 = vrot.slane %v1040_v61, 1  ;;  %v5145_v48 = vld [vmem:[#allocation75_spill] sm:$0xff]  ;;  %v5146_v61 = vld [vmem:[#allocation56_spill] sm:$0xff] }
  0xbb   : > { %v1069_v53 = vrot.slane %v1041_v52, 1  ;;  %v1070_v0 = vrot.slane %v1042_v8, 1  ;;  %v1071_v51 = vrot.slane %v1043_v1, 1  ;;  %v5123_v54 = vrot.slane %v5122_v31, 1  ;;  %v5147_v8 = vld [vmem:[#allocation76_spill] sm:$0xff] }
  0xbc   : > { %v3570_v36 = vadd.f32 %v1058_v21, %v1016_v41  ;;  %v3572_v3 = vadd.f32 %v1059_v50, %v1017_v20  ;;  %v3574_v27 = vadd.f32 %v1060_v39, %v1018_v26  ;;  %v3576_v4 = vadd.f32 %v1061_v13, %v1019_v7 }
  0xbd   : > { %v3568_v58 = vadd.f32 %v5123_v54, %v5121_v18  ;;  %v3578_v60 = vadd.f32 %v1062_v19, %v1020_v12  ;;  %v3580_v32 = vadd.f32 %v1063_v47, %v1021_v43  ;;  %v1101_v9 = vstv %s3551_s14  ;;  %v5135_v12 = vld [vmem:[#allocation44_spill] sm:$0xff]  ;;  %s4065_s14 = sld [smem:[#allocation9 + $0x5]] }
  0xbe   : > { %5125 = vst [vmem:[#allocation29_spill] sm:$0xff] %v3576_v4  ;;  %v3583_v33 = vadd.f32 %v1064_v30, %v1022_v6  ;;  %v3585_v25 = vadd.f32 %v1065_v63, %v1023_v16  ;;  %v3587_v44 = vadd.f32 %v1066_v62, %v1024_v15  ;;  %v3589_v41 = vadd.f32 %v1067_v22, %v1025_v2  ;;  %v5136_v6 = vld [vmem:[#allocation45_spill] sm:$0xff]  ;;  %v5137_v16 = vld [vmem:[#allocation46_spill] sm:$0xff] }
  0xbf   : > { %5124 = vst [vmem:[#allocation28_spill] sm:$0xff] %v3568_v58  ;;  %v3591_v20 = vadd.f32 %v1068_v38, %v1026_v49  ;;  %v3593_v26 = vadd.f32 %v1069_v53, %v1027_v10  ;;  %v3595_v7 = vadd.f32 %v1070_v0, %v1028_v23  ;;  %v3597_v17 = vadd.f32 %v1071_v51, %v1029_v14  ;;  %v5142_v10 = vld [vmem:[#allocation51_spill] sm:$0xff] }
  0xc0   : > { %5126 = vst [vmem:[#allocation30_spill] sm:$0xff] %v3578_v60  ;;  %v1102_v43 = vmul.f32 %v1101_v9, %v5135_v12  ;;  %v1103_v28 = vmul.f32 %v1101_v9, %v5136_v6  ;;  %v1104_v56 = vmul.f32 %v1101_v9, %v5137_v16  ;;  %v1117_v15 = vstv %s3562_s18  ;;  %s4070_s18 = sld [smem:[#allocation13 + $0x4]] }
  0xc1   : > { %5127 = vst [vmem:[#allocation31_spill] sm:$0xff] %v3580_v32  ;;  %v1105_v2 = vmul.f32 %v1101_v9, %v5138_v55  ;;  %v1106_v49 = vmul.f32 %v1101_v9, %v5139_v29  ;;  %v1107_v35 = vmul.f32 %v1101_v9, %v5140_v34  ;;  %v1108_v42 = vmul.f32 %v1101_v9, %v5141_v59 }
  0xc2   : > { %5128 = vst [vmem:[#allocation64_spill] sm:$0xff] %v3583_v33  ;;  %v1109_v45 = vmul.f32 %v1101_v9, %v5142_v10  ;;  %v1110_v37 = vmul.f32 %v1101_v9, %v5143_v46  ;;  %v1111_v5 = vmul.f32 %v1101_v9, %v5144_v11  ;;  %v1112_v57 = vmul.f32 %v1101_v9, %v5145_v48 }
  0xc3   : > { %5129 = vst [vmem:[#allocation32_spill] sm:$0xff] %v3585_v25  ;;  %v1113_v52 = vmul.f32 %v1101_v9, %v5146_v61  ;;  %v1114_v1 = vmul.f32 %v1101_v9, %v5147_v8  ;;  %v1118_v40 = vmul.f32 %v1117_v15, %v3570_v36  ;;  %v1119_v23 = vmul.f32 %v1117_v15, %v3572_v3 }
  0xc4   : > { %5130 = vst [vmem:[#allocation33_spill] sm:$0xff] %v3587_v44  ;;  %v1120_v21 = vmul.f32 %v1117_v15, %v3574_v27  ;;  %v1121_v50 = vmul.f32 %v1117_v15, %v3576_v4  ;;  %v1122_v39 = vmul.f32 %v1117_v15, %v3578_v60  ;;  %v1123_v24 = vmul.f32 %v1117_v15, %v3580_v32 }
  0xc5   : > { %5131 = vst [vmem:[#allocation34_spill] sm:$0xff] %v3589_v41  ;;  %v1115_v14 = vmul.f32 %v1101_v9, %v3568_v58  ;;  %v1124_v13 = vmul.f32 %v1117_v15, %v3583_v33  ;;  %v1125_v19 = vmul.f32 %v1117_v15, %v3585_v25  ;;  %v1126_v47 = vmul.f32 %v1117_v15, %v3587_v44 }
  0xc6   : > { %5132 = vst [vmem:[#allocation68_spill] sm:$0xff] %v3591_v20  ;;  %v1127_v30 = vmul.f32 %v1117_v15, %v3589_v41  ;;  %v1128_v63 = vmul.f32 %v1117_v15, %v3591_v20  ;;  %v1129_v62 = vmul.f32 %v1117_v15, %v3593_v26  ;;  %v1130_v22 = vmul.f32 %v1117_v15, %v3595_v7 }
  0xc7   : > { %5133 = vst [vmem:[#allocation38_spill] sm:$0xff] %v3593_v26  ;;  %v1131_v38 = vmul.f32 %v1117_v15, %v3597_v17  ;;  %v1132_v53 = vadd.f32 %v1118_v40, %v1102_v43  ;;  %v1133_v0 = vadd.f32 %v1119_v23, %v1103_v28  ;;  %v1147_v51 = vstv %s3599_s7  ;;  %s4072_s7 = sld [smem:[#allocation10 + $0x5]] }
  0xc8   : > { %5134 = vst [vmem:[#allocation37_spill] sm:$0xff] %v3595_v7  ;;  %v1134_v18 = vadd.f32 %v1120_v21, %v1104_v56  ;;  %v1135_v31 = vadd.f32 %v1121_v50, %v1105_v2  ;;  %v1136_v54 = vadd.f32 %v1122_v39, %v1106_v49  ;;  %v1137_v9 = vadd.f32 %v1123_v24, %v1107_v35 }
  0xc9   : > { %v1138_v58 = vadd.f32 %v1124_v13, %v1108_v42  ;;  %v1139_v44 = vadd.f32 %v1125_v19, %v1109_v45  ;;  %v1140_v41 = vadd.f32 %v1126_v47, %v1110_v37  ;;  %v1141_v20 = vadd.f32 %v1127_v30, %v1111_v5 }
  0xca   : > { %v1142_v26 = vadd.f32 %v1128_v63, %v1112_v57  ;;  %v1143_v25 = vadd.f32 %v1129_v62, %v1113_v52  ;;  %v1144_v7 = vadd.f32 %v1130_v22, %v1114_v1  ;;  %v1145_v43 = vadd.f32 %v1131_v38, %v1115_v14 }
  0xcb   : > { %v1148_v28 = vadd.f32 %v1147_v51, %v1132_v53  ;;  %v1149_v15 = vadd.f32 %v1147_v51, %v1133_v0  ;;  %v1150_v56 = vadd.f32 %v1147_v51, %v1134_v18  ;;  %v1151_v2 = vadd.f32 %v1147_v51, %v1135_v31 }
  0xcc   : > { %v1152_v49 = vadd.f32 %v1147_v51, %v1136_v54  ;;  %v1153_v35 = vadd.f32 %v1147_v51, %v1137_v9  ;;  %v1154_v42 = vadd.f32 %v1147_v51, %v1138_v58  ;;  %v1155_v45 = vadd.f32 %v1147_v51, %v1139_v44  ;;  %v5160_v13 = vld [vmem:[#allocation34_spill] sm:$0xff] }
  0xcd   : > { %v1156_v37 = vadd.f32 %v1147_v51, %v1140_v41  ;;  %v1157_v40 = vadd.f32 %v1147_v51, %v1141_v20  ;;  %v3639_v5 = vadd.f32 %v1147_v51, %v1142_v26  ;;  %v3641_v57 = vadd.f32 %v1147_v51, %v1143_v25 }
  0xce   : > { %v3643_v52 = vadd.f32 %v1147_v51, %v1144_v7  ;;  %v3645_v1 = vadd.f32 %v1147_v51, %v1145_v43  ;;  %v1162_v23 = vmax.f32 %v1148_v28, 0.0  ;;  %v1163_v21 = vmax.f32 %v1149_v15, 0.0 }
  0xcf   : > { %v1164_v50 = vmax.f32 %v1150_v56, 0.0  ;;  %v1165_v39 = vmax.f32 %v1151_v2, 0.0  ;;  %v1166_v58 = vmax.f32 %v1152_v49, 0.0  ;;  %v1167_v44 = vmax.f32 %v1153_v35, 0.0 }
  0xd0   : > { %v1168_v24 = vmax.f32 %v1154_v42, 0.0  ;;  %v1169_v41 = vmax.f32 %v1155_v45, 0.0  ;;  %v1170_v20 = vmax.f32 %v1156_v37, 0.0  ;;  %v3648_v26 = vstv %s3633_s11  ;;  %s4181_s11 = sld [smem:[#allocation9 + $0x6]] }
  0xd1   : > { %v1171_v25 = vmax.f32 %v1157_v40, 0.0  ;;  %v1172_v7 = vmax.f32 %v3639_v5, 0.0  ;;  %v1173_v14 = vmax.f32 %v3641_v57, 0.0  ;;  %v1193_v47 = vstv %s3631_s10  ;;  %s4079_s10 = sld [smem:[#allocation12 + $0x5]] }
  0xd2   : > { %v1209_v30 = vstv %s3635_s12  ;;  %v3657_v63 = vstv %s3637_s13  ;;  %v3660_v62 = vmul.f32 %v3648_v26, %v1162_v23  ;;  %v3663_v22 = vmul.f32 %v3648_v26, %v1163_v21  ;;  %s4186_s12 = sld [smem:[#allocation13 + $0x5]] }
  0xd3   : > { %v3666_v38 = vmul.f32 %v3648_v26, %v1164_v50  ;;  %v3669_v53 = vmul.f32 %v3648_v26, %v1165_v39  ;;  %v3672_v0 = vmul.f32 %v3648_v26, %v1166_v58  ;;  %v3675_v51 = vmul.f32 %v3648_v26, %v1167_v44  ;;  %s4188_s13 = sld [smem:[#allocation10 + $0x6]] }
  0xd4   : > { %5148 = vst [vmem:[#allocation69_spill] sm:$0xff] %v3660_v62  ;;  %v3678_v18 = vmul.f32 %v3648_v26, %v1168_v24  ;;  %v3681_v31 = vmul.f32 %v3648_v26, %v1169_v41  ;;  %v3684_v54 = vmul.f32 %v3648_v26, %v1170_v20  ;;  %v3687_v9 = vmul.f32 %v3648_v26, %v1171_v25  ;;  %v5158_v41 = vld [vmem:[#allocation32_spill] sm:$0xff]  ;;  %v5159_v25 = vld [vmem:[#allocation33_spill] sm:$0xff] }
  0xd5   : > { %5149 = vst [vmem:[#allocation39_spill] sm:$0xff] %v3663_v22  ;;  %v1194_v43 = vmul.f32 %v1193_v47, %v5135_v12  ;;  %v1195_v28 = vmul.f32 %v1193_v47, %v5136_v6  ;;  %v1196_v15 = vmul.f32 %v1193_v47, %v5137_v16  ;;  %v1197_v56 = vmul.f32 %v1193_v47, %v5138_v55 }
  0xd6   : > { %5150 = vst [vmem:[#allocation61_spill] sm:$0xff] %v3666_v38  ;;  %v1198_v2 = vmul.f32 %v1193_v47, %v5139_v29  ;;  %v1199_v49 = vmul.f32 %v1193_v47, %v5140_v34  ;;  %v1200_v35 = vmul.f32 %v1193_v47, %v5141_v59  ;;  %v1201_v42 = vmul.f32 %v1193_v47, %v5142_v10  ;;  %v5164_v38 = vld [vmem:[#allocation28_spill] sm:$0xff] }
  0xd7   : > { %5151 = vst [vmem:[#allocation62_spill] sm:$0xff] %v3669_v53  ;;  %v1202_v45 = vmul.f32 %v1193_v47, %v5143_v46  ;;  %v1203_v37 = vmul.f32 %v1193_v47, %v5144_v11  ;;  %v1204_v40 = vmul.f32 %v1193_v47, %v5145_v48  ;;  %v1205_v5 = vmul.f32 %v1193_v47, %v5146_v61 }
  0xd8   : > { %5152 = vst [vmem:[#allocation63_spill] sm:$0xff] %v3672_v0  ;;  %v1210_v57 = vmul.f32 %v1209_v30, %v3570_v36  ;;  %v1211_v23 = vmul.f32 %v1209_v30, %v3572_v3  ;;  %v1212_v21 = vmul.f32 %v1209_v30, %v3574_v27  ;;  %v1213_v50 = vmul.f32 %v1209_v30, %v3576_v4  ;;  %v5163_v0 = vld [vmem:[#allocation37_spill] sm:$0xff] }
  0xd9   : > { %5153 = vst [vmem:[#allocation71_spill] sm:$0xff] %v3675_v51  ;;  %v1214_v39 = vmul.f32 %v1209_v30, %v3578_v60  ;;  %v1215_v58 = vmul.f32 %v1209_v30, %v3580_v32  ;;  %v1206_v44 = vmul.f32 %v1193_v47, %v5147_v8  ;;  %v1216_v24 = vmul.f32 %v1209_v30, %v3583_v33 }
  0xda   : > { %5154 = vst [vmem:[#allocation65_spill] sm:$0xff] %v3678_v18  ;;  %v1217_v20 = vmul.f32 %v1209_v30, %v5158_v41  ;;  %v1218_v19 = vmul.f32 %v1209_v30, %v5159_v25  ;;  %v5162_v18 = vld [vmem:[#allocation38_spill] sm:$0xff]  ;;  %v1222_v53 = vmul.f32 %v1209_v30, %v5163_v0  ;;  %v1207_v22 = vmul.f32 %v1193_v47, %v5164_v38 }
  0xdb   : > { %5155 = vst [vmem:[#allocation66_spill] sm:$0xff] %v3681_v31  ;;  %v1221_v51 = vmul.f32 %v1209_v30, %v5162_v18  ;;  %v1223_v62 = vmul.f32 %v1209_v30, %v3597_v17  ;;  %v1224_v32 = vadd.f32 %v1210_v57, %v1194_v43  ;;  %v1225_v8 = vadd.f32 %v1211_v23, %v1195_v28 }
  0xdc   : > { %5156 = vst [vmem:[#allocation67_spill] sm:$0xff] %v3684_v54  ;;  %v5161_v54 = vld [vmem:[#allocation68_spill] sm:$0xff]  ;;  %v1226_v60 = vadd.f32 %v1212_v21, %v1196_v15  ;;  %v1227_v33 = vadd.f32 %v1213_v50, %v1197_v56  ;;  %v1228_v4 = vadd.f32 %v1214_v39, %v1198_v2  ;;  %v1229_v41 = vadd.f32 %v1215_v58, %v1199_v49 }
  0xdd   : > { %5157 = vst [vmem:[#allocation72_spill] sm:$0xff] %v3687_v9  ;;  %v1219_v9 = vmul.f32 %v1209_v30, %v5160_v13  ;;  %v1220_v31 = vmul.f32 %v1209_v30, %v5161_v54  ;;  %v3720_v13 = vmul.f32 %v3648_v26, %v1172_v7  ;;  %v1230_v54 = vadd.f32 %v1216_v24, %v1200_v35 }
  0xde   : > { %v1231_v25 = vadd.f32 %v1217_v20, %v1201_v42  ;;  %v1232_v18 = vadd.f32 %v1218_v19, %v1202_v45  ;;  %v1235_v38 = vadd.f32 %v1221_v51, %v1205_v5  ;;  %v1236_v30 = vadd.f32 %v1222_v53, %v1206_v44  ;;  %v5186_v5 = vld [vmem:[#allocation32_spill] sm:$0xff] }
  0xdf   : > { %5165 = vst [vmem:[#allocation70_spill] sm:$0xff] %v3720_v13  ;;  %v1233_v0 = vadd.f32 %v1219_v9, %v1203_v37  ;;  %v1234_v47 = vadd.f32 %v1220_v31, %v1204_v40  ;;  %v3727_v43 = vmul.f32 %v3648_v26, %v1173_v14  ;;  %v1237_v28 = vadd.f32 %v1223_v62, %v1207_v22  ;;  %v5188_v13 = vld [vmem:[#allocation34_spill] sm:$0xff] }
  0xe0   : > { %v1240_v15 = vadd.f32 %v3657_v63, %v1224_v32  ;;  %v1241_v7 = vadd.f32 %v3657_v63, %v1225_v8  ;;  %v1242_v19 = vadd.f32 %v3657_v63, %v1226_v60  ;;  %v1243_v56 = vadd.f32 %v3657_v63, %v1227_v33 }
  0xe1   : > { %5166 = vst [vmem:[#allocation21_spill] sm:$0xff] %v3727_v43  ;;  %v1244_v31 = vadd.f32 %v3657_v63, %v1228_v4  ;;  %v1245_v53 = vadd.f32 %v3657_v63, %v1229_v41  ;;  %v5167_v51 = vmax.f32 %v3643_v52, 0.0  ;;  %v1246_v62 = vadd.f32 %v3657_v63, %v1230_v54 }
  0xe2   : > { %v1247_v32 = vadd.f32 %v3657_v63, %v1231_v25  ;;  %v1248_v8 = vadd.f32 %v3657_v63, %v1232_v18  ;;  %v1249_v60 = vadd.f32 %v3657_v63, %v1233_v0  ;;  %v3747_v33 = vadd.f32 %v3657_v63, %v1234_v47 }
  0xe3   : > { %v3740_v14 = vmul.f32 %v3648_v26, %v5167_v51  ;;  %v3750_v4 = vadd.f32 %v3657_v63, %v1235_v38  ;;  %v3753_v52 = vadd.f32 %v3657_v63, %v1236_v30  ;;  %v5169_v22 = vmax.f32 %v3645_v1, 0.0 }
  0xe4   : > { %v3761_v9 = vadd.f32 %v3657_v63, %v1237_v28  ;;  %v1254_v18 = vmax.f32 %v1240_v15, 0.0  ;;  %v1255_v0 = vmax.f32 %v1241_v7, 0.0  ;;  %v1256_v2 = vmax.f32 %v1242_v19, 0.0 }
  0xe5   : > { %5168 = vst [vmem:[#allocation35_spill] sm:$0xff] %v3740_v14  ;;  %v3758_v54 = vmul.f32 %v3648_v26, %v5169_v22  ;;  %v1257_v49 = vmax.f32 %v1243_v56, 0.0  ;;  %v1258_v38 = vmax.f32 %v1244_v31, 0.0  ;;  %v1259_v35 = vmax.f32 %v1245_v53, 0.0  ;;  %v5187_v14 = vld [vmem:[#allocation33_spill] sm:$0xff] }
  0xe6   : > { %v1260_v42 = vmax.f32 %v1246_v62, 0.0  ;;  %v1261_v45 = vmax.f32 %v1247_v32, 0.0  ;;  %v1262_v37 = vmax.f32 %v1248_v8, 0.0  ;;  %v3764_v40 = vstv %s3722_s16  ;;  %s4297_s16 = sld [smem:[#allocation9 + $0x7]] }
  0xe7   : > { %5170 = vst [vmem:[#allocation22_spill] sm:$0xff] %v3758_v54  ;;  %v1263_v1 = vmax.f32 %v1249_v60, 0.0  ;;  %v1264_v26 = vmax.f32 %v3747_v33, 0.0  ;;  %v1265_v63 = vmax.f32 %v3750_v4, 0.0  ;;  %v1285_v23 = vstv %s3717_s15  ;;  %s4195_s15 = sld [smem:[#allocation12 + $0x6]] }
  0xe8   : > { %v1301_v21 = vstv %s3724_s17  ;;  %v3773_v50 = vstv %s3731_s20  ;;  %v3776_v39 = vmul.f32 %v3764_v40, %v1254_v18  ;;  %v3779_v58 = vmul.f32 %v3764_v40, %v1255_v0  ;;  %v5181_v0 = vld [vmem:[#allocation29_spill] sm:$0xff]  ;;  %s4302_s17 = sld [smem:[#allocation13 + $0x6]] }
  0xe9   : > { %v3782_v44 = vmul.f32 %v3764_v40, %v1256_v2  ;;  %v3785_v24 = vmul.f32 %v3764_v40, %v1257_v49  ;;  %v3788_v41 = vmul.f32 %v3764_v40, %v1258_v38  ;;  %v3791_v20 = vmul.f32 %v3764_v40, %v1259_v35  ;;  %v5182_v49 = vld [vmem:[#allocation30_spill] sm:$0xff]  ;;  %v5183_v35 = vld [vmem:[#allocation31_spill] sm:$0xff]  ;;  %s4304_s20 = sld [smem:[#allocation10 + $0x7]] }
  0xea   : > { %5171 = vst [vmem:[#allocation23_spill] sm:$0xff] %v3776_v39  ;;  %v3794_v25 = vmul.f32 %v3764_v40, %v1260_v42  ;;  %v3797_v47 = vmul.f32 %v3764_v40, %v1261_v45  ;;  %v3800_v30 = vmul.f32 %v3764_v40, %v1262_v37  ;;  %v3803_v28 = vmul.f32 %v3764_v40, %v1263_v1  ;;  %v5184_v45 = vld [vmem:[#allocation76_spill] sm:$0xff] }
  0xeb   : > { %5172 = vst [vmem:[#allocation24_spill] sm:$0xff] %v3779_v58  ;;  %v1286_v15 = vmul.f32 %v1285_v23, %v5135_v12  ;;  %v1287_v7 = vmul.f32 %v1285_v23, %v5136_v6  ;;  %v1288_v19 = vmul.f32 %v1285_v23, %v5137_v16  ;;  %v1289_v56 = vmul.f32 %v1285_v23, %v5138_v55  ;;  %v5185_v1 = vld [vmem:[#allocation64_spill] sm:$0xff] }
  0xec   : > { %5173 = vst [vmem:[#allocation25_spill] sm:$0xff] %v3782_v44  ;;  %v1290_v31 = vmul.f32 %v1285_v23, %v5139_v29  ;;  %v1291_v53 = vmul.f32 %v1285_v23, %v5140_v34  ;;  %v1292_v51 = vmul.f32 %v1285_v23, %v5141_v59  ;;  %v1293_v62 = vmul.f32 %v1285_v23, %v5142_v10  ;;  %v5192_v44 = vld [vmem:[#allocation28_spill] sm:$0xff] }
  0xed   : > { %5174 = vst [vmem:[#allocation26_spill] sm:$0xff] %v3785_v24  ;;  %v1294_v32 = vmul.f32 %v1285_v23, %v5143_v46  ;;  %v1295_v8 = vmul.f32 %v1285_v23, %v5144_v11  ;;  %v1296_v60 = vmul.f32 %v1285_v23, %v5145_v48  ;;  %v1297_v33 = vmul.f32 %v1285_v23, %v5146_v61 }
  0xee   : > { %5175 = vst [vmem:[#allocation57_spill] sm:$0xff] %v3788_v41  ;;  %v1302_v4 = vmul.f32 %v1301_v21, %v3570_v36  ;;  %v1303_v22 = vmul.f32 %v1301_v21, %v3572_v3  ;;  %v1304_v18 = vmul.f32 %v1301_v21, %v3574_v27  ;;  %v1305_v2 = vmul.f32 %v1301_v21, %v5181_v0  ;;  %v5191_v41 = vld [vmem:[#allocation37_spill] sm:$0xff] }
  0xef   : > { %5176 = vst [vmem:[#allocation77_spill] sm:$0xff] %v3791_v20  ;;  %v1306_v38 = vmul.f32 %v1301_v21, %v5182_v49  ;;  %v1307_v42 = vmul.f32 %v1301_v21, %v5183_v35  ;;  %v1298_v37 = vmul.f32 %v1285_v23, %v5184_v45  ;;  %v1308_v57 = vmul.f32 %v1301_v21, %v5185_v1 }
  0xf0   : > { %5177 = vst [vmem:[#allocation58_spill] sm:$0xff] %v3794_v25  ;;  %v1309_v54 = vmul.f32 %v1301_v21, %v5186_v5  ;;  %v1310_v43 = vmul.f32 %v1301_v21, %v5187_v14  ;;  %v5190_v25 = vld [vmem:[#allocation38_spill] sm:$0xff]  ;;  %v1314_v24 = vmul.f32 %v1301_v21, %v5191_v41  ;;  %v1299_v58 = vmul.f32 %v1285_v23, %v5192_v44 }
  0xf1   : > { %5178 = vst [vmem:[#allocation78_spill] sm:$0xff] %v3797_v47  ;;  %v1313_v20 = vmul.f32 %v1301_v21, %v5190_v25  ;;  %v1315_v39 = vmul.f32 %v1301_v21, %v3597_v17  ;;  %v1316_v35 = vadd.f32 %v1302_v4, %v1286_v15  ;;  %v1317_v45 = vadd.f32 %v1303_v22, %v1287_v7  ;;  %v5214_v4 = vld [vmem:[#allocation32_spill] sm:$0xff] }
  0xf2   : > { %5179 = vst [vmem:[#allocation20_spill] sm:$0xff] %v3800_v30  ;;  %v5189_v30 = vld [vmem:[#allocation68_spill] sm:$0xff]  ;;  %v1318_v49 = vadd.f32 %v1304_v18, %v1288_v19  ;;  %v1319_v1 = vadd.f32 %v1305_v2, %v1289_v56  ;;  %v1320_v0 = vadd.f32 %v1306_v38, %v1290_v31  ;;  %v1321_v5 = vadd.f32 %v1307_v42, %v1291_v53 }
  0xf3   : > { %5180 = vst [vmem:[#allocation40_spill] sm:$0xff] %v3803_v28  ;;  %v1311_v28 = vmul.f32 %v1301_v21, %v5188_v13  ;;  %v1312_v47 = vmul.f32 %v1301_v21, %v5189_v30  ;;  %v3836_v13 = vmul.f32 %v3764_v40, %v1264_v26  ;;  %v1322_v30 = vadd.f32 %v1308_v57, %v1292_v51 }
  0xf4   : > { %v1323_v14 = vadd.f32 %v1309_v54, %v1293_v62  ;;  %v1324_v25 = vadd.f32 %v1310_v43, %v1294_v32  ;;  %v1327_v44 = vadd.f32 %v1313_v20, %v1297_v33  ;;  %v1328_v21 = vadd.f32 %v1314_v24, %v1298_v37 }
  0xf5   : > { %5193 = vst [vmem:[#allocation47_spill] sm:$0xff] %v3836_v13  ;;  %v1325_v41 = vadd.f32 %v1311_v28, %v1295_v8  ;;  %v1326_v23 = vadd.f32 %v1312_v47, %v1296_v60  ;;  %v3843_v15 = vmul.f32 %v3764_v40, %v1265_v63  ;;  %v1329_v7 = vadd.f32 %v1315_v39, %v1299_v58 }
  0xf6   : > { %v1332_v19 = vadd.f32 %v3773_v50, %v1316_v35  ;;  %v1333_v26 = vadd.f32 %v3773_v50, %v1317_v45  ;;  %v1334_v43 = vadd.f32 %v3773_v50, %v1318_v49  ;;  %v1335_v54 = vadd.f32 %v3773_v50, %v1319_v1 }
  0xf7   : > { %5194 = vst [vmem:[#allocation52_spill] sm:$0xff] %v3843_v15  ;;  %v1336_v57 = vadd.f32 %v3773_v50, %v1320_v0  ;;  %v1337_v24 = vadd.f32 %v3773_v50, %v1321_v5  ;;  %v5195_v20 = vmax.f32 %v3753_v52, 0.0  ;;  %v1338_v39 = vadd.f32 %v3773_v50, %v1322_v30 }
  0xf8   : > { %v1339_v58 = vadd.f32 %v3773_v50, %v1323_v14  ;;  %v1340_v47 = vadd.f32 %v3773_v50, %v1324_v25  ;;  %v1341_v28 = vadd.f32 %v3773_v50, %v1325_v41  ;;  %v3863_v56 = vadd.f32 %v3773_v50, %v1326_v23 }
  0xf9   : > { %v3856_v63 = vmul.f32 %v3764_v40, %v5195_v20  ;;  %v3866_v31 = vadd.f32 %v3773_v50, %v1327_v44  ;;  %v3869_v52 = vadd.f32 %v3773_v50, %v1328_v21  ;;  %v5197_v5 = vmax.f32 %v3761_v9, 0.0 }
  0xfa   : > { %v3877_v14 = vadd.f32 %v3773_v50, %v1329_v7  ;;  %v1346_v25 = vmax.f32 %v1332_v19, 0.0  ;;  %v1347_v41 = vmax.f32 %v1333_v26, 0.0  ;;  %v1348_v53 = vmax.f32 %v1334_v43, 0.0 }
  0xfb   : > { %5196 = vst [vmem:[#allocation53_spill] sm:$0xff] %v3856_v63  ;;  %v3874_v30 = vmul.f32 %v3764_v40, %v5197_v5  ;;  %v1349_v51 = vmax.f32 %v1335_v54, 0.0  ;;  %v1350_v44 = vmax.f32 %v1336_v57, 0.0  ;;  %v1351_v62 = vmax.f32 %v1337_v24, 0.0  ;;  %v5220_v63 = vld [vmem:[#allocation28_spill] sm:$0xff] }
  0xfc   : > { %v1352_v32 = vmax.f32 %v1338_v39, 0.0  ;;  %v1353_v8 = vmax.f32 %v1339_v58, 0.0  ;;  %v1354_v60 = vmax.f32 %v1340_v47, 0.0  ;;  %v3880_v33 = vstv %s3838_s23  ;;  %s4413_s23 = sld [smem:[#allocation9 + $0x8]] }
  0xfd   : > { %5198 = vst [vmem:[#allocation54_spill] sm:$0xff] %v3874_v30  ;;  %v1355_v9 = vmax.f32 %v1341_v28, 0.0  ;;  %v1356_v40 = vmax.f32 %v3863_v56, 0.0  ;;  %v1357_v50 = vmax.f32 %v3866_v31, 0.0  ;;  %v1377_v18 = vstv %s3833_s21  ;;  %s4311_s21 = sld [smem:[#allocation12 + $0x7]] }
  0xfe   : > { %v1393_v0 = vstv %s3840_s22  ;;  %v3889_v2 = vstv %s3847_s24  ;;  %v3892_v49 = vmul.f32 %v3880_v33, %v1346_v25  ;;  %v3895_v38 = vmul.f32 %v3880_v33, %v1347_v41  ;;  %v5209_v41 = vld [vmem:[#allocation29_spill] sm:$0xff]  ;;  %s4418_s22 = sld [smem:[#allocation13 + $0x7]] }
  0xff   : > { %v3898_v35 = vmul.f32 %v3880_v33, %v1348_v53  ;;  %v3901_v42 = vmul.f32 %v3880_v33, %v1349_v51  ;;  %v3904_v45 = vmul.f32 %v3880_v33, %v1350_v44  ;;  %v3907_v37 = vmul.f32 %v3880_v33, %v1351_v62  ;;  %v5210_v51 = vld [vmem:[#allocation30_spill] sm:$0xff]  ;;  %v5211_v62 = vld [vmem:[#allocation31_spill] sm:$0xff]  ;;  %s4420_s24 = sld [smem:[#allocation10 + $0x8]] }
 0x100   : > { %5199 = vst [vmem:[#allocation59_spill] sm:$0xff] %v3892_v49  ;;  %v3910_v1 = vmul.f32 %v3880_v33, %v1352_v32  ;;  %v3913_v23 = vmul.f32 %v3880_v33, %v1353_v8  ;;  %v3916_v21 = vmul.f32 %v3880_v33, %v1354_v60  ;;  %v3919_v7 = vmul.f32 %v3880_v33, %v1355_v9  ;;  %v5212_v8 = vld [vmem:[#allocation76_spill] sm:$0xff] }
 0x101   : > { %5200 = vst [vmem:[#allocation41_spill] sm:$0xff] %v3895_v38  ;;  %v1378_v19 = vmul.f32 %v1377_v18, %v5135_v12  ;;  %v1379_v26 = vmul.f32 %v1377_v18, %v5136_v6  ;;  %v1380_v43 = vmul.f32 %v1377_v18, %v5137_v16  ;;  %v1381_v54 = vmul.f32 %v1377_v18, %v5138_v55  ;;  %v5213_v9 = vld [vmem:[#allocation64_spill] sm:$0xff]  ;;  %v5219_v38 = vld [vmem:[#allocation37_spill] sm:$0xff] }
 0x102   : > { %5201 = vst [vmem:[#allocation60_spill] sm:$0xff] %v3898_v35  ;;  %v1382_v57 = vmul.f32 %v1377_v18, %v5139_v29  ;;  %v1383_v24 = vmul.f32 %v1377_v18, %v5140_v34  ;;  %v1384_v20 = vmul.f32 %v1377_v18, %v5141_v59  ;;  %v1385_v39 = vmul.f32 %v1377_v18, %v5142_v10 }
 0x103   : > { %5202 = vst [vmem:[#allocation27_spill] sm:$0xff] %v3901_v42  ;;  %v1386_v58 = vmul.f32 %v1377_v18, %v5143_v46  ;;  %v1387_v47 = vmul.f32 %v1377_v18, %v5144_v11  ;;  %v1388_v28 = vmul.f32 %v1377_v18, %v5145_v48  ;;  %v1389_v56 = vmul.f32 %v1377_v18, %v5146_v61  ;;  %v5218_v42 = vld [vmem:[#allocation38_spill] sm:$0xff] }
 0x104   : > { %5203 = vst [vmem:[#allocation36_spill] sm:$0xff] %v3904_v45  ;;  %v1394_v31 = vmul.f32 %v1393_v0, %v3570_v36  ;;  %v1395_v5 = vmul.f32 %v1393_v0, %v3572_v3  ;;  %v1396_v25 = vmul.f32 %v1393_v0, %v3574_v27  ;;  %v1397_v53 = vmul.f32 %v1393_v0, %v5209_v41 }
 0x105   : > { %5204 = vst [vmem:[#allocation42_spill] sm:$0xff] %v3907_v37  ;;  %v1398_v44 = vmul.f32 %v1393_v0, %v5210_v51  ;;  %v1399_v32 = vmul.f32 %v1393_v0, %v5211_v62  ;;  %v1390_v60 = vmul.f32 %v1377_v18, %v5212_v8  ;;  %v1400_v22 = vmul.f32 %v1393_v0, %v5213_v9  ;;  %v5217_v37 = vld [vmem:[#allocation68_spill] sm:$0xff] }
 0x106   : > { %5205 = vst [vmem:[#allocation43_spill] sm:$0xff] %v3910_v1  ;;  %v1401_v30 = vmul.f32 %v1393_v0, %v5214_v4  ;;  %v1404_v45 = vmul.f32 %v1393_v0, %v5217_v37  ;;  %v1405_v35 = vmul.f32 %v1393_v0, %v5218_v42  ;;  %v1406_v49 = vmul.f32 %v1393_v0, %v5219_v38 }
 0x107   : > { %5206 = vst [vmem:[#allocation44_spill] sm:$0xff] %v3913_v23  ;;  %v5216_v23 = vld [vmem:[#allocation34_spill] sm:$0xff]  ;;  %v1391_v15 = vmul.f32 %v1377_v18, %v5220_v63  ;;  %v1407_v13 = vmul.f32 %v1393_v0, %v3597_v17  ;;  %v1408_v62 = vadd.f32 %v1394_v31, %v1378_v19  ;;  %v1409_v8 = vadd.f32 %v1395_v5, %v1379_v26  ;;  %v5242_v31 = vld [vmem:[#allocation32_spill] sm:$0xff] }
 0x108   : > { %5207 = vst [vmem:[#allocation45_spill] sm:$0xff] %v3916_v21  ;;  %v1403_v1 = vmul.f32 %v1393_v0, %v5216_v23  ;;  %v1410_v51 = vadd.f32 %v1396_v25, %v1380_v43  ;;  %v1411_v9 = vadd.f32 %v1397_v53, %v1381_v54  ;;  %v1412_v41 = vadd.f32 %v1398_v44, %v1382_v57 }
 0x109   : > { %5208 = vst [vmem:[#allocation46_spill] sm:$0xff] %v3919_v7  ;;  %v5215_v7 = vld [vmem:[#allocation33_spill] sm:$0xff]  ;;  %v1413_v4 = vadd.f32 %v1399_v32, %v1383_v24  ;;  %v3952_v23 = vmul.f32 %v3880_v33, %v1356_v40  ;;  %v1414_v37 = vadd.f32 %v1400_v22, %v1384_v20  ;;  %v1418_v18 = vadd.f32 %v1404_v45, %v1388_v28 }
 0x10a   : > { %v1402_v21 = vmul.f32 %v1393_v0, %v5215_v7  ;;  %v1415_v7 = vadd.f32 %v1401_v30, %v1385_v39  ;;  %v1417_v38 = vadd.f32 %v1403_v1, %v1387_v47  ;;  %v1419_v63 = vadd.f32 %v1405_v35, %v1389_v56 }
 0x10b   : > { %5221 = vst [vmem:[#allocation48_spill] sm:$0xff] %v3952_v23  ;;  %v1420_v0 = vadd.f32 %v1406_v49, %v1390_v60  ;;  %v3959_v19 = vmul.f32 %v3880_v33, %v1357_v50  ;;  %v1421_v26 = vadd.f32 %v1407_v13, %v1391_v15  ;;  %v1424_v43 = vadd.f32 %v3889_v2, %v1408_v62  ;;  %v5244_v23 = vld [vmem:[#allocation34_spill] sm:$0xff] }
 0x10c   : > { %v1416_v42 = vadd.f32 %v1402_v21, %v1386_v58  ;;  %v1425_v40 = vadd.f32 %v3889_v2, %v1409_v8  ;;  %v1426_v30 = vadd.f32 %v3889_v2, %v1410_v51  ;;  %v1427_v22 = vadd.f32 %v3889_v2, %v1411_v9 }
 0x10d   : > { %5222 = vst [vmem:[#allocation49_spill] sm:$0xff] %v3959_v19  ;;  %v1428_v45 = vadd.f32 %v3889_v2, %v1412_v41  ;;  %v1429_v49 = vadd.f32 %v3889_v2, %v1413_v4  ;;  %v5223_v35 = vmax.f32 %v3869_v52, 0.0  ;;  %v1430_v13 = vadd.f32 %v3889_v2, %v1414_v37 }
 0x10e   : > { %v1431_v15 = vadd.f32 %v3889_v2, %v1415_v7  ;;  %v1432_v1 = vadd.f32 %v3889_v2, %v1416_v42  ;;  %v1433_v21 = vadd.f32 %v3889_v2, %v1417_v38  ;;  %v3979_v54 = vadd.f32 %v3889_v2, %v1418_v18 }
 0x10f   : > { %v3972_v50 = vmul.f32 %v3880_v33, %v5223_v35  ;;  %v3982_v57 = vadd.f32 %v3889_v2, %v1419_v63  ;;  %v3985_v52 = vadd.f32 %v3889_v2, %v1420_v0  ;;  %v5225_v4 = vmax.f32 %v3877_v14, 0.0 }
 0x110   : > { %v3993_v7 = vadd.f32 %v3889_v2, %v1421_v26  ;;  %v1438_v42 = vmax.f32 %v1424_v43, 0.0  ;;  %v1439_v38 = vmax.f32 %v1425_v40, 0.0  ;;  %v1440_v24 = vmax.f32 %v1426_v30, 0.0 }
 0x111   : > { %5224 = vst [vmem:[#allocation50_spill] sm:$0xff] %v3972_v50  ;;  %v3990_v37 = vmul.f32 %v3880_v33, %v5225_v4  ;;  %v1441_v20 = vmax.f32 %v1427_v22, 0.0  ;;  %v1442_v63 = vmax.f32 %v1428_v45, 0.0  ;;  %v1443_v39 = vmax.f32 %v1429_v49, 0.0  ;;  %v5243_v50 = vld [vmem:[#allocation33_spill] sm:$0xff] }
 0x112   : > { %v1444_v58 = vmax.f32 %v1430_v13, 0.0  ;;  %v1445_v47 = vmax.f32 %v1431_v15, 0.0  ;;  %v1446_v28 = vmax.f32 %v1432_v1, 0.0  ;;  %v3996_v56 = vstv %s3954_s26  ;;  %s4532_s26 = sld [smem:[#allocation13 + $0x8]] }
 0x113   : > { %5226 = vst [vmem:[#allocation73_spill] sm:$0xff] %v3990_v37  ;;  %v1447_v14 = vmax.f32 %v1433_v21, 0.0  ;;  %v1448_v33 = vmax.f32 %v3979_v54, 0.0  ;;  %v1449_v2 = vmax.f32 %v3982_v57, 0.0  ;;  %v1469_v25 = vstv %s3949_s25  ;;  %s4427_s25 = sld [smem:[#allocation12 + $0x8]] }
 0x114   : > { %v1485_v41 = vstv %s3956_s27  ;;  %v4005_v53 = vstv %s3963_s28  ;;  %v4008_v51 = vmul.f32 %v3996_v56, %v1438_v42  ;;  %v4011_v44 = vmul.f32 %v3996_v56, %v1439_v38  ;;  %v5237_v38 = vld [vmem:[#allocation29_spill] sm:$0xff]  ;;  %s4686_s27 = sld [smem:[#allocation2]]  ;;  %s2277_s28 = smul.u32 112, %s5474_s29 }
 0x115   : > { %v4014_v62 = vmul.f32 %v3996_v56, %v1440_v24  ;;  %v4017_v32 = vmul.f32 %v3996_v56, %v1441_v20  ;;  %v4020_v8 = vmul.f32 %v3996_v56, %v1442_v63  ;;  %v4023_v60 = vmul.f32 %v3996_v56, %v1443_v39  ;;  %v5238_v20 = vld [vmem:[#allocation30_spill] sm:$0xff]  ;;  %v5239_v39 = vld [vmem:[#allocation31_spill] sm:$0xff] }
 0x116   : > { %5227 = vst [vmem:[#allocation51_spill] sm:$0xff] %v4008_v51  ;;  %v4026_v9 = vmul.f32 %v3996_v56, %v1444_v58  ;;  %v4029_v18 = vmul.f32 %v3996_v56, %v1445_v47  ;;  %v4032_v0 = vmul.f32 %v3996_v56, %v1446_v28  ;;  %v4035_v26 = vmul.f32 %v3996_v56, %v1447_v14  ;;  %v5240_v47 = vld [vmem:[#allocation76_spill] sm:$0xff] }
 0x117   : > { %5228 = vst [vmem:[#allocation74_spill] sm:$0xff] %v4011_v44  ;;  %v1470_v43 = vmul.f32 %v1469_v25, %v5135_v12  ;;  %v1471_v40 = vmul.f32 %v1469_v25, %v5136_v6  ;;  %v1472_v30 = vmul.f32 %v1469_v25, %v5137_v16  ;;  %v1473_v22 = vmul.f32 %v1469_v25, %v5138_v55  ;;  %v5241_v14 = vld [vmem:[#allocation64_spill] sm:$0xff] }
 0x118   : > { %5229 = vst [vmem:[#allocation55_spill] sm:$0xff] %v4014_v62  ;;  %v1474_v45 = vmul.f32 %v1469_v25, %v5139_v29  ;;  %v1475_v49 = vmul.f32 %v1469_v25, %v5140_v34  ;;  %v1476_v35 = vmul.f32 %v1469_v25, %v5141_v59  ;;  %v1477_v13 = vmul.f32 %v1469_v25, %v5142_v10  ;;  %v5248_v62 = vld [vmem:[#allocation28_spill] sm:$0xff] }
 0x119   : > { %5230 = vst [vmem:[#allocation75_spill] sm:$0xff] %v4017_v32  ;;  %v1478_v15 = vmul.f32 %v1469_v25, %v5143_v46  ;;  %v1479_v1 = vmul.f32 %v1469_v25, %v5144_v11  ;;  %v1480_v21 = vmul.f32 %v1469_v25, %v5145_v48  ;;  %v1481_v54 = vmul.f32 %v1469_v25, %v5146_v61 }
 0x11a   : > { %5231 = vst [vmem:[#allocation56_spill] sm:$0xff] %v4020_v8  ;;  %v1486_v57 = vmul.f32 %v1485_v41, %v3570_v36  ;;  %v1487_v4 = vmul.f32 %v1485_v41, %v3572_v3  ;;  %v1488_v42 = vmul.f32 %v1485_v41, %v3574_v27  ;;  %v1489_v24 = vmul.f32 %v1485_v41, %v5237_v38  ;;  %v5247_v8 = vld [vmem:[#allocation37_spill] sm:$0xff] }
 0x11b   : > { %5232 = vst [vmem:[#allocation79_spill] sm:$0xff] %v4023_v60  ;;  %v1490_v63 = vmul.f32 %v1485_v41, %v5238_v20  ;;  %v1491_v58 = vmul.f32 %v1485_v41, %v5239_v39  ;;  %v1482_v28 = vmul.f32 %v1469_v25, %v5240_v47  ;;  %v1492_v5 = vmul.f32 %v1485_v41, %v5241_v14 }
 0x11c   : > { %5233 = vst [vmem:[#allocation80_spill] sm:$0xff] %v4026_v9  ;;  %v1493_v37 = vmul.f32 %v1485_v41, %v5242_v31  ;;  %v1494_v19 = vmul.f32 %v1485_v41, %v5243_v50  ;;  %v5246_v9 = vld [vmem:[#allocation38_spill] sm:$0xff]  ;;  %v1498_v32 = vmul.f32 %v1485_v41, %v5247_v8  ;;  %v1483_v44 = vmul.f32 %v1469_v25, %v5248_v62 }
 0x11d   : > { %5234 = vst [vmem:[#allocation81_spill] sm:$0xff] %v4029_v18  ;;  %v1497_v60 = vmul.f32 %v1485_v41, %v5246_v9  ;;  %v1499_v51 = vmul.f32 %v1485_v41, %v3597_v17  ;;  %v1500_v39 = vadd.f32 %v1486_v57, %v1470_v43  ;;  %v1501_v47 = vadd.f32 %v1487_v4, %v1471_v40  ;;  %v5270_v57 = vld [vmem:[#allocation32_spill] sm:$0xff] }
 0x11e   : > { %5235 = vst [vmem:[#allocation82_spill] sm:$0xff] %v4032_v0  ;;  %v5245_v0 = vld [vmem:[#allocation68_spill] sm:$0xff]  ;;  %v1502_v20 = vadd.f32 %v1488_v42, %v1472_v30  ;;  %v1503_v14 = vadd.f32 %v1489_v24, %v1473_v22  ;;  %v1504_v38 = vadd.f32 %v1490_v63, %v1474_v45  ;;  %v1505_v31 = vadd.f32 %v1491_v58, %v1475_v49 }
 0x11f   : > { %5236 = vst [vmem:[#allocation83_spill] sm:$0xff] %v4035_v26  ;;  %v1495_v26 = vmul.f32 %v1485_v41, %v5244_v23  ;;  %v1496_v18 = vmul.f32 %v1485_v41, %v5245_v0  ;;  %v4068_v23 = vmul.f32 %v3996_v56, %v1448_v33  ;;  %v1506_v0 = vadd.f32 %v1492_v5, %v1476_v35 }
 0x120   : > { %v1507_v50 = vadd.f32 %v1493_v37, %v1477_v13  ;;  %v1508_v9 = vadd.f32 %v1494_v19, %v1478_v15  ;;  %v1511_v62 = vadd.f32 %v1497_v60, %v1481_v54  ;;  %v1512_v41 = vadd.f32 %v1498_v32, %v1482_v28 }
 0x121   : > { %5249 = vst [vmem:[#allocation84_spill] sm:$0xff] %v4068_v23  ;;  %v1509_v8 = vadd.f32 %v1495_v26, %v1479_v1  ;;  %v1510_v25 = vadd.f32 %v1496_v18, %v1480_v21  ;;  %v4075_v43 = vmul.f32 %v3996_v56, %v1449_v2  ;;  %v1513_v40 = vadd.f32 %v1499_v51, %v1483_v44 }
 0x122   : > { %v1516_v30 = vadd.f32 %v4005_v53, %v1500_v39  ;;  %v1517_v33 = vadd.f32 %v4005_v53, %v1501_v47  ;;  %v1518_v19 = vadd.f32 %v4005_v53, %v1502_v20  ;;  %v1519_v37 = vadd.f32 %v4005_v53, %v1503_v14 }
 0x123   : > { %5250 = vst [vmem:[#allocation85_spill] sm:$0xff] %v4075_v43  ;;  %v1520_v5 = vadd.f32 %v4005_v53, %v1504_v38  ;;  %v1521_v32 = vadd.f32 %v4005_v53, %v1505_v31  ;;  %v5251_v60 = vmax.f32 %v3985_v52, 0.0  ;;  %v1522_v51 = vadd.f32 %v4005_v53, %v1506_v0 }
 0x124   : > { %v1523_v44 = vadd.f32 %v4005_v53, %v1507_v50  ;;  %v1524_v18 = vadd.f32 %v4005_v53, %v1508_v9  ;;  %v1525_v26 = vadd.f32 %v4005_v53, %v1509_v8  ;;  %v4095_v22 = vadd.f32 %v4005_v53, %v1510_v25 }
 0x125   : > { %v4088_v2 = vmul.f32 %v3996_v56, %v5251_v60  ;;  %v4098_v45 = vadd.f32 %v4005_v53, %v1511_v62  ;;  %v4101_v52 = vadd.f32 %v4005_v53, %v1512_v41  ;;  %v5253_v31 = vmax.f32 %v3993_v7, 0.0 }
 0x126   : > { %v4109_v50 = vadd.f32 %v4005_v53, %v1513_v40  ;;  %v1530_v9 = vmax.f32 %v1516_v30, 0.0  ;;  %v1531_v8 = vmax.f32 %v1517_v33, 0.0  ;;  %v1532_v49 = vmax.f32 %v1518_v19, 0.0 }
 0x127   : > { %5252 = vst [vmem:[#allocation86_spill] sm:$0xff] %v4088_v2  ;;  %v4106_v0 = vmul.f32 %v3996_v56, %v5253_v31  ;;  %v1533_v35 = vmax.f32 %v1519_v37, 0.0  ;;  %v1534_v62 = vmax.f32 %v1520_v5, 0.0  ;;  %v1535_v13 = vmax.f32 %v1521_v32, 0.0  ;;  %v5276_v2 = vld [vmem:[#allocation28_spill] sm:$0xff] }
 0x128   : > { %v1536_v15 = vmax.f32 %v1522_v51, 0.0  ;;  %v1537_v1 = vmax.f32 %v1523_v44, 0.0  ;;  %v1538_v21 = vmax.f32 %v1524_v18, 0.0  ;;  %v4112_v54 = vstv %s4070_s18  ;;  %s4747_s18 = scalar_lea.vmem %s4789_s8, %s2277_s28 }
 0x129   : > { %5254 = vst [vmem:[#allocation87_spill] sm:$0xff] %v4106_v0  ;;  %v1539_v7 = vmax.f32 %v1525_v26, 0.0  ;;  %v1540_v56 = vmax.f32 %v4095_v22, 0.0  ;;  %v1541_v53 = vmax.f32 %v4098_v45, 0.0  ;;  %v1561_v42 = vstv %s4065_s14 }
 0x12a   : > { %v1577_v38 = vstv %s4072_s7  ;;  %v4121_v24 = vstv %s4079_s10  ;;  %v4124_v20 = vmul.f32 %v4112_v54, %v1530_v9  ;;  %v4127_v63 = vmul.f32 %v4112_v54, %v1531_v8  ;;  %v5265_v8 = vld [vmem:[#allocation29_spill] sm:$0xff] }
 0x12b   : > { %v4130_v39 = vmul.f32 %v4112_v54, %v1532_v49  ;;  %v4133_v58 = vmul.f32 %v4112_v54, %v1533_v35  ;;  %v4136_v47 = vmul.f32 %v4112_v54, %v1534_v62  ;;  %v4139_v28 = vmul.f32 %v4112_v54, %v1535_v13  ;;  %v5266_v35 = vld [vmem:[#allocation30_spill] sm:$0xff]  ;;  %v5267_v13 = vld [vmem:[#allocation31_spill] sm:$0xff] }
 0x12c   : > { %5255 = vst [vmem:[#allocation88_spill] sm:$0xff] %v4124_v20  ;;  %v4142_v14 = vmul.f32 %v4112_v54, %v1536_v15  ;;  %v4145_v25 = vmul.f32 %v4112_v54, %v1537_v1  ;;  %v4148_v41 = vmul.f32 %v4112_v54, %v1538_v21  ;;  %v4151_v40 = vmul.f32 %v4112_v54, %v1539_v7  ;;  %v5268_v1 = vld [vmem:[#allocation76_spill] sm:$0xff]  ;;  %v5275_v20 = vld [vmem:[#allocation37_spill] sm:$0xff] }
 0x12d   : > { %5256 = vst [vmem:[#allocation89_spill] sm:$0xff] %v4127_v63  ;;  %v1562_v30 = vmul.f32 %v1561_v42, %v5135_v12  ;;  %v1563_v33 = vmul.f32 %v1561_v42, %v5136_v6  ;;  %v1564_v19 = vmul.f32 %v1561_v42, %v5137_v16  ;;  %v1565_v37 = vmul.f32 %v1561_v42, %v5138_v55  ;;  %v5269_v7 = vld [vmem:[#allocation64_spill] sm:$0xff] }
 0x12e   : > { %5257 = vst [vmem:[#allocation90_spill] sm:$0xff] %v4130_v39  ;;  %v1566_v5 = vmul.f32 %v1561_v42, %v5139_v29  ;;  %v1567_v32 = vmul.f32 %v1561_v42, %v5140_v34  ;;  %v1568_v60 = vmul.f32 %v1561_v42, %v5141_v59  ;;  %v1569_v51 = vmul.f32 %v1561_v42, %v5142_v10  ;;  %v5274_v39 = vld [vmem:[#allocation38_spill] sm:$0xff] }
 0x12f   : > { %5258 = vst [vmem:[#allocation91_spill] sm:$0xff] %v4133_v58  ;;  %v1570_v44 = vmul.f32 %v1561_v42, %v5143_v46  ;;  %v1571_v18 = vmul.f32 %v1561_v42, %v5144_v11  ;;  %v1572_v26 = vmul.f32 %v1561_v42, %v5145_v48  ;;  %v1573_v22 = vmul.f32 %v1561_v42, %v5146_v61 }
 0x130   : > { %5259 = vst [vmem:[#allocation92_spill] sm:$0xff] %v4136_v47  ;;  %v1578_v45 = vmul.f32 %v1577_v38, %v3570_v36  ;;  %v1579_v31 = vmul.f32 %v1577_v38, %v3572_v3  ;;  %v1580_v9 = vmul.f32 %v1577_v38, %v3574_v27  ;;  %v1581_v49 = vmul.f32 %v1577_v38, %v5265_v8  ;;  %v5273_v47 = vld [vmem:[#allocation68_spill] sm:$0xff] }
 0x131   : > { %5260 = vst [vmem:[#allocation93_spill] sm:$0xff] %v4139_v28  ;;  %v1582_v62 = vmul.f32 %v1577_v38, %v5266_v35  ;;  %v1583_v15 = vmul.f32 %v1577_v38, %v5267_v13  ;;  %v1574_v21 = vmul.f32 %v1561_v42, %v5268_v1  ;;  %v1584_v4 = vmul.f32 %v1577_v38, %v5269_v7 }
 0x132   : > { %5261 = vst [vmem:[#allocation94_spill] sm:$0xff] %v4142_v14  ;;  %v5272_v14 = vld [vmem:[#allocation34_spill] sm:$0xff]  ;;  %v1588_v58 = vmul.f32 %v1577_v38, %v5273_v47  ;;  %v1589_v63 = vmul.f32 %v1577_v38, %v5274_v39  ;;  %v1590_v0 = vmul.f32 %v1577_v38, %v5275_v20  ;;  %v1575_v43 = vmul.f32 %v1561_v42, %v5276_v2 }
 0x133   : > { %5262 = vst [vmem:[#allocation95_spill] sm:$0xff] %v4145_v25  ;;  %v1587_v28 = vmul.f32 %v1577_v38, %v5272_v14  ;;  %v1591_v23 = vmul.f32 %v1577_v38, %v3597_v17  ;;  %v1592_v13 = vadd.f32 %v1578_v45, %v1562_v30  ;;  %v1593_v1 = vadd.f32 %v1579_v31, %v1563_v33  ;;  %v5298_v45 = vld [vmem:[#allocation32_spill] sm:$0xff] }
 0x134   : > { %5263 = vst [vmem:[#allocation96_spill] sm:$0xff] %v4148_v41  ;;  %v5271_v41 = vld [vmem:[#allocation33_spill] sm:$0xff]  ;;  %v1594_v35 = vadd.f32 %v1580_v9, %v1564_v19  ;;  %v1595_v7 = vadd.f32 %v1581_v49, %v1565_v37  ;;  %v1596_v8 = vadd.f32 %v1582_v62, %v1566_v5  ;;  %v4184_v14 = vmul.f32 %v4112_v54, %v1540_v56 }
 0x135   : > { %5264 = vst [vmem:[#allocation97_spill] sm:$0xff] %v4151_v40  ;;  %v1585_v40 = vmul.f32 %v1577_v38, %v5270_v57  ;;  %v1586_v25 = vmul.f32 %v1577_v38, %v5271_v41  ;;  %v1597_v57 = vadd.f32 %v1583_v15, %v1567_v32  ;;  %v1598_v47 = vadd.f32 %v1584_v4, %v1568_v60 }
 0x136   : > { %5277 = vst [vmem:[#allocation98_spill] sm:$0xff] %v4184_v14  ;;  %v1601_v20 = vadd.f32 %v1587_v28, %v1571_v18  ;;  %v1602_v42 = vadd.f32 %v1588_v58, %v1572_v26  ;;  %v1603_v2 = vadd.f32 %v1589_v63, %v1573_v22  ;;  %v1604_v38 = vadd.f32 %v1590_v0, %v1574_v21  ;;  %v5300_v14 = vld [vmem:[#allocation34_spill] sm:$0xff] }
 0x137   : > { %v1599_v41 = vadd.f32 %v1585_v40, %v1569_v51  ;;  %v1600_v39 = vadd.f32 %v1586_v25, %v1570_v44  ;;  %v4191_v30 = vmul.f32 %v4112_v54, %v1541_v53  ;;  %v1605_v33 = vadd.f32 %v1591_v23, %v1575_v43 }
 0x138   : > { %v1608_v19 = vadd.f32 %v4121_v24, %v1592_v13  ;;  %v1609_v56 = vadd.f32 %v4121_v24, %v1593_v1  ;;  %v1610_v4 = vadd.f32 %v4121_v24, %v1594_v35  ;;  %v1611_v25 = vadd.f32 %v4121_v24, %v1595_v7 }
 0x139   : > { %5278 = vst [vmem:[#allocation99_spill] sm:$0xff] %v4191_v30  ;;  %v1612_v58 = vadd.f32 %v4121_v24, %v1596_v8  ;;  %v1613_v0 = vadd.f32 %v4121_v24, %v1597_v57  ;;  %v5279_v63 = vmax.f32 %v4101_v52, 0.0  ;;  %v1614_v23 = vadd.f32 %v4121_v24, %v1598_v47 }
 0x13a   : > { %v1615_v43 = vadd.f32 %v4121_v24, %v1599_v41  ;;  %v1616_v28 = vadd.f32 %v4121_v24, %v1600_v39  ;;  %v1617_v40 = vadd.f32 %v4121_v24, %v1601_v20  ;;  %v4211_v37 = vadd.f32 %v4121_v24, %v1602_v42 }
 0x13b   : > { %v4204_v53 = vmul.f32 %v4112_v54, %v5279_v63  ;;  %v4214_v5 = vadd.f32 %v4121_v24, %v1603_v2  ;;  %v4217_v52 = vadd.f32 %v4121_v24, %v1604_v38  ;;  %v5281_v57 = vmax.f32 %v4109_v50, 0.0 }
 0x13c   : > { %v4225_v41 = vadd.f32 %v4121_v24, %v1605_v33  ;;  %v1622_v39 = vmax.f32 %v1608_v19, 0.0  ;;  %v1623_v20 = vmax.f32 %v1609_v56, 0.0  ;;  %v1624_v32 = vmax.f32 %v1610_v4, 0.0 }
 0x13d   : > { %5280 = vst [vmem:[#allocation100_spill] sm:$0xff] %v4204_v53  ;;  %v4222_v47 = vmul.f32 %v4112_v54, %v5281_v57  ;;  %v1625_v60 = vmax.f32 %v1611_v25, 0.0  ;;  %v1626_v2 = vmax.f32 %v1612_v58, 0.0  ;;  %v1627_v51 = vmax.f32 %v1613_v0, 0.0  ;;  %v5299_v53 = vld [vmem:[#allocation33_spill] sm:$0xff] }
 0x13e   : > { %v1628_v44 = vmax.f32 %v1614_v23, 0.0  ;;  %v1629_v18 = vmax.f32 %v1615_v43, 0.0  ;;  %v1630_v26 = vmax.f32 %v1616_v28, 0.0  ;;  %v4228_v22 = vstv %s4186_s12 }
 0x13f   : > { %5282 = vst [vmem:[#allocation101_spill] sm:$0xff] %v4222_v47  ;;  %v1631_v50 = vmax.f32 %v1617_v40, 0.0  ;;  %v1632_v54 = vmax.f32 %v4211_v37, 0.0  ;;  %v1633_v24 = vmax.f32 %v4214_v5, 0.0  ;;  %v1653_v9 = vstv %s4181_s11 }
 0x140   : > { %v1669_v8 = vstv %s4188_s13  ;;  %v4237_v49 = vstv %s4195_s15  ;;  %v4240_v35 = vmul.f32 %v4228_v22, %v1622_v39  ;;  %v4243_v62 = vmul.f32 %v4228_v22, %v1623_v20  ;;  %v5293_v20 = vld [vmem:[#allocation29_spill] sm:$0xff] }
 0x141   : > { %v4246_v13 = vmul.f32 %v4228_v22, %v1624_v32  ;;  %v4249_v15 = vmul.f32 %v4228_v22, %v1625_v60  ;;  %v4252_v1 = vmul.f32 %v4228_v22, %v1626_v2  ;;  %v4255_v21 = vmul.f32 %v4228_v22, %v1627_v51  ;;  %v5294_v60 = vld [vmem:[#allocation30_spill] sm:$0xff]  ;;  %v5295_v51 = vld [vmem:[#allocation31_spill] sm:$0xff] }
 0x142   : > { %5283 = vst [vmem:[#allocation102_spill] sm:$0xff] %v4240_v35  ;;  %v4258_v7 = vmul.f32 %v4228_v22, %v1628_v44  ;;  %v4261_v42 = vmul.f32 %v4228_v22, %v1629_v18  ;;  %v4264_v38 = vmul.f32 %v4228_v22, %v1630_v26  ;;  %v4267_v33 = vmul.f32 %v4228_v22, %v1631_v50  ;;  %v5296_v18 = vld [vmem:[#allocation76_spill] sm:$0xff] }
 0x143   : > { %5284 = vst [vmem:[#allocation103_spill] sm:$0xff] %v4243_v62  ;;  %v1654_v19 = vmul.f32 %v1653_v9, %v5135_v12  ;;  %v1655_v56 = vmul.f32 %v1653_v9, %v5136_v6  ;;  %v1656_v4 = vmul.f32 %v1653_v9, %v5137_v16  ;;  %v1657_v25 = vmul.f32 %v1653_v9, %v5138_v55  ;;  %v5297_v50 = vld [vmem:[#allocation64_spill] sm:$0xff] }
 0x144   : > { %5285 = vst [vmem:[#allocation104_spill] sm:$0xff] %v4246_v13  ;;  %v1658_v58 = vmul.f32 %v1653_v9, %v5139_v29  ;;  %v1659_v0 = vmul.f32 %v1653_v9, %v5140_v34  ;;  %v1660_v63 = vmul.f32 %v1653_v9, %v5141_v59  ;;  %v1661_v23 = vmul.f32 %v1653_v9, %v5142_v10  ;;  %v5304_v13 = vld [vmem:[#allocation28_spill] sm:$0xff] }
 0x145   : > { %5286 = vst [vmem:[#allocation105_spill] sm:$0xff] %v4249_v15  ;;  %v1662_v43 = vmul.f32 %v1653_v9, %v5143_v46  ;;  %v1663_v28 = vmul.f32 %v1653_v9, %v5144_v11  ;;  %v1664_v40 = vmul.f32 %v1653_v9, %v5145_v48  ;;  %v1665_v37 = vmul.f32 %v1653_v9, %v5146_v61 }
 0x146   : > { %5287 = vst [vmem:[#allocation106_spill] sm:$0xff] %v4252_v1  ;;  %v1670_v5 = vmul.f32 %v1669_v8, %v3570_v36  ;;  %v1671_v57 = vmul.f32 %v1669_v8, %v3572_v3  ;;  %v1672_v39 = vmul.f32 %v1669_v8, %v3574_v27  ;;  %v1673_v32 = vmul.f32 %v1669_v8, %v5293_v20  ;;  %v5303_v1 = vld [vmem:[#allocation37_spill] sm:$0xff] }
 0x147   : > { %5288 = vst [vmem:[#allocation107_spill] sm:$0xff] %v4255_v21  ;;  %v1674_v2 = vmul.f32 %v1669_v8, %v5294_v60  ;;  %v1675_v44 = vmul.f32 %v1669_v8, %v5295_v51  ;;  %v1666_v26 = vmul.f32 %v1653_v9, %v5296_v18  ;;  %v1676_v31 = vmul.f32 %v1669_v8, %v5297_v50 }
 0x148   : > { %5289 = vst [vmem:[#allocation108_spill] sm:$0xff] %v4258_v7  ;;  %v1677_v47 = vmul.f32 %v1669_v8, %v5298_v45  ;;  %v1678_v30 = vmul.f32 %v1669_v8, %v5299_v53  ;;  %v5302_v7 = vld [vmem:[#allocation38_spill] sm:$0xff]  ;;  %v1682_v15 = vmul.f32 %v1669_v8, %v5303_v1  ;;  %v1667_v62 = vmul.f32 %v1653_v9, %v5304_v13 }
 0x149   : > { %5290 = vst [vmem:[#allocation109_spill] sm:$0xff] %v4261_v42  ;;  %v1681_v21 = vmul.f32 %v1669_v8, %v5302_v7  ;;  %v1683_v35 = vmul.f32 %v1669_v8, %v3597_v17  ;;  %v1684_v51 = vadd.f32 %v1670_v5, %v1654_v19  ;;  %v1685_v18 = vadd.f32 %v1671_v57, %v1655_v56  ;;  %v5326_v5 = vld [vmem:[#allocation32_spill] sm:$0xff] }
 0x14a   : > { %5291 = vst [vmem:[#allocation110_spill] sm:$0xff] %v4264_v38  ;;  %v5301_v38 = vld [vmem:[#allocation68_spill] sm:$0xff]  ;;  %v1686_v60 = vadd.f32 %v1672_v39, %v1656_v4  ;;  %v1687_v50 = vadd.f32 %v1673_v32, %v1657_v25  ;;  %v1688_v20 = vadd.f32 %v1674_v2, %v1658_v58  ;;  %v1689_v45 = vadd.f32 %v1675_v44, %v1659_v0 }
 0x14b   : > { %5292 = vst [vmem:[#allocation111_spill] sm:$0xff] %v4267_v33  ;;  %v1679_v33 = vmul.f32 %v1669_v8, %v5300_v14  ;;  %v1680_v42 = vmul.f32 %v1669_v8, %v5301_v38  ;;  %v4300_v14 = vmul.f32 %v4228_v22, %v1632_v54  ;;  %v1690_v38 = vadd.f32 %v1676_v31, %v1660_v63 }
 0x14c   : > { %v1691_v53 = vadd.f32 %v1677_v47, %v1661_v23  ;;  %v1692_v7 = vadd.f32 %v1678_v30, %v1662_v43  ;;  %v1695_v13 = vadd.f32 %v1681_v21, %v1665_v37  ;;  %v1696_v8 = vadd.f32 %v1682_v15, %v1666_v26 }
 0x14d   : > { %5305 = vst [vmem:[#allocation112_spill] sm:$0xff] %v4300_v14  ;;  %v1693_v1 = vadd.f32 %v1679_v33, %v1663_v28  ;;  %v1694_v9 = vadd.f32 %v1680_v42, %v1664_v40  ;;  %v4307_v19 = vmul.f32 %v4228_v22, %v1633_v24  ;;  %v1697_v56 = vadd.f32 %v1683_v35, %v1667_v62  ;;  %v5331_v14 = vld [vmem:[#allocation37_spill] sm:$0xff] }
 0x14e   : > { %v1700_v4 = vadd.f32 %v4237_v49, %v1684_v51  ;;  %v1701_v54 = vadd.f32 %v4237_v49, %v1685_v18  ;;  %v1702_v30 = vadd.f32 %v4237_v49, %v1686_v60  ;;  %v1703_v47 = vadd.f32 %v4237_v49, %v1687_v50 }
 0x14f   : > { %5306 = vst [vmem:[#allocation113_spill] sm:$0xff] %v4307_v19  ;;  %v1704_v31 = vadd.f32 %v4237_v49, %v1688_v20  ;;  %v1705_v15 = vadd.f32 %v4237_v49, %v1689_v45  ;;  %v5307_v21 = vmax.f32 %v4217_v52, 0.0  ;;  %v1706_v35 = vadd.f32 %v4237_v49, %v1690_v38 }
 0x150   : > { %v1707_v62 = vadd.f32 %v4237_v49, %v1691_v53  ;;  %v1708_v42 = vadd.f32 %v4237_v49, %v1692_v7  ;;  %v1709_v33 = vadd.f32 %v4237_v49, %v1693_v1  ;;  %v4327_v25 = vadd.f32 %v4237_v49, %v1694_v9 }
 0x151   : > { %v4320_v24 = vmul.f32 %v4228_v22, %v5307_v21  ;;  %v4330_v58 = vadd.f32 %v4237_v49, %v1695_v13  ;;  %v4333_v52 = vadd.f32 %v4237_v49, %v1696_v8  ;;  %v5309_v45 = vmax.f32 %v4225_v41, 0.0 }
 0x152   : > { %v4341_v53 = vadd.f32 %v4237_v49, %v1697_v56  ;;  %v1714_v7 = vmax.f32 %v1700_v4, 0.0  ;;  %v1715_v1 = vmax.f32 %v1701_v54, 0.0  ;;  %v1716_v0 = vmax.f32 %v1702_v30, 0.0 }
 0x153   : > { %5308 = vst [vmem:[#allocation114_spill] sm:$0xff] %v4320_v24  ;;  %v4338_v38 = vmul.f32 %v4228_v22, %v5309_v45  ;;  %v1717_v63 = vmax.f32 %v1703_v47, 0.0  ;;  %v1718_v13 = vmax.f32 %v1704_v31, 0.0  ;;  %v1719_v23 = vmax.f32 %v1705_v15, 0.0  ;;  %v5327_v24 = vld [vmem:[#allocation33_spill] sm:$0xff] }
 0x154   : > { %v1720_v43 = vmax.f32 %v1706_v35, 0.0  ;;  %v1721_v28 = vmax.f32 %v1707_v62, 0.0  ;;  %v1722_v40 = vmax.f32 %v1708_v42, 0.0  ;;  %v4344_v37 = vstv %s4302_s17 }
 0x155   : > { %5310 = vst [vmem:[#allocation115_spill] sm:$0xff] %v4338_v38  ;;  %v1723_v41 = vmax.f32 %v1709_v33, 0.0  ;;  %v1724_v22 = vmax.f32 %v4327_v25, 0.0  ;;  %v1725_v49 = vmax.f32 %v4330_v58, 0.0  ;;  %v1745_v39 = vstv %s4297_s16 }
 0x156   : > { %v1761_v20 = vstv %s4304_s20  ;;  %v4353_v32 = vstv %s4311_s21  ;;  %v4356_v60 = vmul.f32 %v4344_v37, %v1714_v7  ;;  %v4359_v2 = vmul.f32 %v4344_v37, %v1715_v1  ;;  %v5321_v1 = vld [vmem:[#allocation29_spill] sm:$0xff] }
 0x157   : > { %v4362_v51 = vmul.f32 %v4344_v37, %v1716_v0  ;;  %v4365_v44 = vmul.f32 %v4344_v37, %v1717_v63  ;;  %v4368_v18 = vmul.f32 %v4344_v37, %v1718_v13  ;;  %v4371_v26 = vmul.f32 %v4344_v37, %v1719_v23  ;;  %v5322_v63 = vld [vmem:[#allocation30_spill] sm:$0xff]  ;;  %v5323_v23 = vld [vmem:[#allocation31_spill] sm:$0xff] }
 0x158   : > { %5311 = vst [vmem:[#allocation116_spill] sm:$0xff] %v4356_v60  ;;  %v4374_v50 = vmul.f32 %v4344_v37, %v1720_v43  ;;  %v4377_v9 = vmul.f32 %v4344_v37, %v1721_v28  ;;  %v4380_v8 = vmul.f32 %v4344_v37, %v1722_v40  ;;  %v4383_v56 = vmul.f32 %v4344_v37, %v1723_v41  ;;  %v5324_v28 = vld [vmem:[#allocation76_spill] sm:$0xff] }
 0x159   : > { %5312 = vst [vmem:[#allocation117_spill] sm:$0xff] %v4359_v2  ;;  %v1746_v4 = vmul.f32 %v1745_v39, %v5135_v12  ;;  %v1747_v54 = vmul.f32 %v1745_v39, %v5136_v6  ;;  %v1748_v30 = vmul.f32 %v1745_v39, %v5137_v16  ;;  %v1749_v47 = vmul.f32 %v1745_v39, %v5138_v55  ;;  %v5325_v41 = vld [vmem:[#allocation64_spill] sm:$0xff] }
 0x15a   : > { %5313 = vst [vmem:[#allocation118_spill] sm:$0xff] %v4362_v51  ;;  %v1750_v31 = vmul.f32 %v1745_v39, %v5139_v29  ;;  %v1751_v15 = vmul.f32 %v1745_v39, %v5140_v34  ;;  %v1752_v21 = vmul.f32 %v1745_v39, %v5141_v59  ;;  %v1753_v35 = vmul.f32 %v1745_v39, %v5142_v10  ;;  %v5332_v51 = vld [vmem:[#allocation28_spill] sm:$0xff] }
 0x15b   : > { %5314 = vst [vmem:[#allocation119_spill] sm:$0xff] %v4365_v44  ;;  %v1754_v62 = vmul.f32 %v1745_v39, %v5143_v46  ;;  %v1755_v42 = vmul.f32 %v1745_v39, %v5144_v11  ;;  %v1756_v33 = vmul.f32 %v1745_v39, %v5145_v48  ;;  %v1757_v25 = vmul.f32 %v1745_v39, %v5146_v61 }
 0x15c   : > { %5315 = vst [vmem:[#allocation120_spill] sm:$0xff] %v4368_v18  ;;  %v1762_v58 = vmul.f32 %v1761_v20, %v3570_v36  ;;  %v1763_v45 = vmul.f32 %v1761_v20, %v3572_v3  ;;  %v1764_v7 = vmul.f32 %v1761_v20, %v3574_v27  ;;  %v1765_v0 = vmul.f32 %v1761_v20, %v5321_v1  ;;  %v5330_v18 = vld [vmem:[#allocation38_spill] sm:$0xff] }
 0x15d   : > { %5316 = vst [vmem:[#allocation121_spill] sm:$0xff] %v4371_v26  ;;  %v1766_v13 = vmul.f32 %v1761_v20, %v5322_v63  ;;  %v1767_v43 = vmul.f32 %v1761_v20, %v5323_v23  ;;  %v1758_v40 = vmul.f32 %v1745_v39, %v5324_v28  ;;  %v1768_v57 = vmul.f32 %v1761_v20, %v5325_v41 }
 0x15e   : > { %5317 = vst [vmem:[#allocation122_spill] sm:$0xff] %v4374_v50  ;;  %v1769_v38 = vmul.f32 %v1761_v20, %v5326_v5  ;;  %v5329_v50 = vld [vmem:[#allocation68_spill] sm:$0xff]  ;;  %v1773_v19 = vmul.f32 %v1761_v20, %v5330_v18  ;;  %v1774_v44 = vmul.f32 %v1761_v20, %v5331_v14  ;;  %v1759_v2 = vmul.f32 %v1745_v39, %v5332_v51 }
 0x15f   : > { %5318 = vst [vmem:[#allocation123_spill] sm:$0xff] %v4377_v9  ;;  %v1772_v26 = vmul.f32 %v1761_v20, %v5329_v50  ;;  %v1775_v60 = vmul.f32 %v1761_v20, %v3597_v17  ;;  %v1776_v23 = vadd.f32 %v1762_v58, %v1746_v4  ;;  %v1777_v28 = vadd.f32 %v1763_v45, %v1747_v54 }
 0x160   : > { %5319 = vst [vmem:[#allocation124_spill] sm:$0xff] %v4380_v8  ;;  %v5328_v8 = vld [vmem:[#allocation34_spill] sm:$0xff]  ;;  %v1778_v63 = vadd.f32 %v1764_v7, %v1748_v30  ;;  %v1779_v41 = vadd.f32 %v1765_v0, %v1749_v47  ;;  %v1780_v1 = vadd.f32 %v1766_v13, %v1750_v31  ;;  %v1781_v5 = vadd.f32 %v1767_v43, %v1751_v15 }
 0x161   : > { %5320 = vst [vmem:[#allocation125_spill] sm:$0xff] %v4383_v56  ;;  %v1770_v56 = vmul.f32 %v1761_v20, %v5327_v24  ;;  %v1771_v9 = vmul.f32 %v1761_v20, %v5328_v8  ;;  %v4416_v8 = vmul.f32 %v4344_v37, %v1724_v22  ;;  %v1782_v50 = vadd.f32 %v1768_v57, %v1752_v21 }
 0x162   : > { %v1783_v24 = vadd.f32 %v1769_v38, %v1753_v35  ;;  %v1786_v39 = vadd.f32 %v1772_v26, %v1756_v33  ;;  %v1787_v51 = vadd.f32 %v1773_v19, %v1757_v25  ;;  %v1788_v20 = vadd.f32 %v1774_v44, %v1758_v40 }
 0x163   : > { %v1784_v18 = vadd.f32 %v1770_v56, %v1754_v62  ;;  %v1785_v14 = vadd.f32 %v1771_v9, %v1755_v42  ;;  %v4423_v4 = vmul.f32 %v4344_v37, %v1725_v49  ;;  %v1789_v54 = vadd.f32 %v1775_v60, %v1759_v2 }
 0x164   : > { %v1792_v30 = vadd.f32 %v4353_v32, %v1776_v23  ;;  %v1793_v22 = vadd.f32 %v4353_v32, %v1777_v28  ;;  %v1794_v38 = vadd.f32 %v4353_v32, %v1778_v63  ;;  %v1795_v57 = vadd.f32 %v4353_v32, %v1779_v41 }
 0x165   : > { %v1796_v26 = vadd.f32 %v4353_v32, %v1780_v1  ;;  %v1797_v19 = vadd.f32 %v4353_v32, %v1781_v5  ;;  %v5333_v44 = vmax.f32 %v4333_v52, 0.0  ;;  %v1798_v60 = vadd.f32 %v4353_v32, %v1782_v50 }
 0x166   : > { %v1799_v2 = vadd.f32 %v4353_v32, %v1783_v24  ;;  %v1800_v9 = vadd.f32 %v4353_v32, %v1784_v18  ;;  %v1801_v56 = vadd.f32 %v4353_v32, %v1785_v14  ;;  %v4443_v47 = vadd.f32 %v4353_v32, %v1786_v39 }
 0x167   : > { %v4436_v49 = vmul.f32 %v4344_v37, %v5333_v44  ;;  %v4446_v31 = vadd.f32 %v4353_v32, %v1787_v51  ;;  %v4449_v52 = vadd.f32 %v4353_v32, %v1788_v20  ;;  %v5334_v5 = vmax.f32 %v4341_v53, 0.0 }
 0x168   : > { %v4457_v24 = vadd.f32 %v4353_v32, %v1789_v54  ;;  %v1806_v18 = vmax.f32 %v1792_v30, 0.0  ;;  %v1807_v14 = vmax.f32 %v1793_v22, 0.0  ;;  %v1808_v15 = vmax.f32 %v1794_v38, 0.0 }
 0x169   : > { %v4454_v50 = vmul.f32 %v4344_v37, %v5334_v5  ;;  %v1809_v21 = vmax.f32 %v1795_v57, 0.0  ;;  %v1810_v51 = vmax.f32 %v1796_v26, 0.0  ;;  %v1811_v35 = vmax.f32 %v1797_v19, 0.0  ;;  %v5339_v5 = vld [vmem:[#allocation76_spill] sm:$0xff] }
 0x16a   : > { %v1812_v62 = vmax.f32 %v1798_v60, 0.0  ;;  %v1813_v42 = vmax.f32 %v1799_v2, 0.0  ;;  %v1814_v33 = vmax.f32 %v1800_v9, 0.0  ;;  %v4460_v25 = vstv %s4418_s22 }
 0x16b   : > { %5335 = vst [vmem:[#allocation126_spill] sm:$0xff] %v4454_v50  ;;  %v1815_v53 = vmax.f32 %v1801_v56, 0.0  ;;  %v1816_v37 = vmax.f32 %v4443_v47, 0.0  ;;  %v1817_v32 = vmax.f32 %v4446_v31, 0.0  ;;  %v1837_v7 = vstv %s4413_s23  ;;  %v5336_v56 = vld [vmem:[#allocation29_spill] sm:$0xff]  ;;  %v5337_v47 = vld [vmem:[#allocation30_spill] sm:$0xff] }
 0x16c   : > { %v1853_v1 = vstv %s4420_s24  ;;  %v4469_v0 = vstv %s4427_s25  ;;  %v4472_v63 = vmul.f32 %v4460_v25, %v1806_v18  ;;  %v4475_v13 = vmul.f32 %v4460_v25, %v1807_v14  ;;  %v5338_v31 = vld [vmem:[#allocation31_spill] sm:$0xff]  ;;  %v5340_v18 = vld [vmem:[#allocation64_spill] sm:$0xff] }
 0x16d   : > { %v4478_v23 = vmul.f32 %v4460_v25, %v1808_v15  ;;  %v4481_v43 = vmul.f32 %v4460_v25, %v1809_v21  ;;  %v4484_v28 = vmul.f32 %v4460_v25, %v1810_v51  ;;  %v4487_v40 = vmul.f32 %v4460_v25, %v1811_v35  ;;  %v5341_v14 = vld [vmem:[#allocation32_spill] sm:$0xff]  ;;  %v5342_v15 = vld [vmem:[#allocation33_spill] sm:$0xff]  ;;  %v5343_v21 = vld [vmem:[#allocation34_spill] sm:$0xff] }
 0x16e   : > { %v4490_v41 = vmul.f32 %v4460_v25, %v1812_v62  ;;  %v4493_v39 = vmul.f32 %v4460_v25, %v1813_v42  ;;  %v4496_v20 = vmul.f32 %v4460_v25, %v1814_v33  ;;  %v4499_v54 = vmul.f32 %v4460_v25, %v1815_v53  ;;  %v5344_v51 = vld [vmem:[#allocation68_spill] sm:$0xff]  ;;  %v5345_v35 = vld [vmem:[#allocation38_spill] sm:$0xff]  ;;  %v5346_v62 = vld [vmem:[#allocation37_spill] sm:$0xff] }
 0x16f   : > { %v1838_v30 = vmul.f32 %v1837_v7, %v5135_v12  ;;  %v1839_v22 = vmul.f32 %v1837_v7, %v5136_v6  ;;  %v1840_v38 = vmul.f32 %v1837_v7, %v5137_v16  ;;  %v1841_v57 = vmul.f32 %v1837_v7, %v5138_v55  ;;  %v5347_v33 = vld [vmem:[#allocation28_spill] sm:$0xff] }
 0x170   : > { %v1842_v26 = vmul.f32 %v1837_v7, %v5139_v29  ;;  %v1843_v19 = vmul.f32 %v1837_v7, %v5140_v34  ;;  %v1844_v44 = vmul.f32 %v1837_v7, %v5141_v59  ;;  %v1845_v60 = vmul.f32 %v1837_v7, %v5142_v10 }
 0x171   : > { %v1846_v2 = vmul.f32 %v1837_v7, %v5143_v46  ;;  %v1847_v9 = vmul.f32 %v1837_v7, %v5144_v11  ;;  %v1848_v12 = vmul.f32 %v1837_v7, %v5145_v48  ;;  %v1849_v6 = vmul.f32 %v1837_v7, %v5146_v61 }
 0x172   : > { %v1854_v16 = vmul.f32 %v1853_v1, %v3570_v36  ;;  %v1855_v55 = vmul.f32 %v1853_v1, %v3572_v3  ;;  %v1856_v29 = vmul.f32 %v1853_v1, %v3574_v27  ;;  %v1857_v34 = vmul.f32 %v1853_v1, %v5336_v56 }
 0x173   : > { %v1858_v59 = vmul.f32 %v1853_v1, %v5337_v47  ;;  %v1859_v10 = vmul.f32 %v1853_v1, %v5338_v31  ;;  %v1850_v46 = vmul.f32 %v1837_v7, %v5339_v5  ;;  %v1860_v11 = vmul.f32 %v1853_v1, %v5340_v18 }
 0x174   : > { %v1861_v48 = vmul.f32 %v1853_v1, %v5341_v14  ;;  %v1862_v61 = vmul.f32 %v1853_v1, %v5342_v15  ;;  %v1863_v36 = vmul.f32 %v1853_v1, %v5343_v21  ;;  %v1864_v3 = vmul.f32 %v1853_v1, %v5344_v51 }
 0x175   : > { %v1865_v27 = vmul.f32 %v1853_v1, %v5345_v35  ;;  %v1866_v42 = vmul.f32 %v1853_v1, %v5346_v62  ;;  %v1851_v53 = vmul.f32 %v1837_v7, %v5347_v33  ;;  %v1867_v56 = vmul.f32 %v1853_v1, %v3597_v17  ;;  %v5350_v33 = vld [vmem:[#allocation69_spill] sm:$0xff] }
 0x176   : > { %v1868_v47 = vadd.f32 %v1854_v16, %v1838_v30  ;;  %v1869_v31 = vadd.f32 %v1855_v55, %v1839_v22  ;;  %v1870_v5 = vadd.f32 %v1856_v29, %v1840_v38  ;;  %v1871_v18 = vadd.f32 %v1857_v34, %v1841_v57 }
 0x177   : > { %v1872_v45 = vadd.f32 %v1858_v59, %v1842_v26  ;;  %v1873_v14 = vadd.f32 %v1859_v10, %v1843_v19  ;;  %v4530_v15 = vmul.f32 %v4460_v25, %v1816_v37  ;;  %v1874_v21 = vadd.f32 %v1860_v11, %v1844_v44 }
 0x178   : > { %v1875_v58 = vadd.f32 %v1861_v48, %v1845_v60  ;;  %v1876_v51 = vadd.f32 %v1862_v61, %v1846_v2  ;;  %v1877_v35 = vadd.f32 %v1863_v36, %v1847_v9  ;;  %v1878_v62 = vadd.f32 %v1864_v3, %v1848_v12 }
 0x179   : > { %v1879_v50 = vadd.f32 %v1865_v27, %v1849_v6  ;;  %v1880_v7 = vadd.f32 %v1866_v42, %v1850_v46  ;;  %v4535_v17 = vmul.f32 %v4460_v25, %v1817_v32  ;;  %v1881_v1 = vadd.f32 %v1867_v56, %v1851_v53  ;;  %v5352_v56 = vld [vmem:[#allocation39_spill] sm:$0xff] }
 0x17a   : > { %v1884_v30 = vadd.f32 %v4469_v0, %v1868_v47  ;;  %v1885_v22 = vadd.f32 %v4469_v0, %v1869_v31  ;;  %v1886_v37 = vadd.f32 %v4469_v0, %v1870_v5  ;;  %v1887_v38 = vadd.f32 %v4469_v0, %v1871_v18  ;;  %v5354_v31 = vld [vmem:[#allocation61_spill] sm:$0xff] }
 0x17b   : > { %v1888_v57 = vadd.f32 %v4469_v0, %v1872_v45  ;;  %v1889_v26 = vadd.f32 %v4469_v0, %v1873_v14  ;;  %v5348_v19 = vmax.f32 %v4449_v52, 0.0  ;;  %v1890_v32 = vadd.f32 %v4469_v0, %v1874_v21  ;;  %v5355_v5 = vld [vmem:[#allocation25_spill] sm:$0xff] }
 0x17c   : > { %v1891_v60 = vadd.f32 %v4469_v0, %v1875_v58  ;;  %v1892_v2 = vadd.f32 %v4469_v0, %v1876_v51  ;;  %v1893_v9 = vadd.f32 %v4469_v0, %v1877_v35  ;;  %v1894_v12 = vadd.f32 %v4469_v0, %v1878_v62 }
 0x17d   : > { %v4546_v44 = vmul.f32 %v4460_v25, %v5348_v19  ;;  %v1895_v45 = vadd.f32 %v4469_v0, %v1879_v50  ;;  %v1896_v6 = vadd.f32 %v4469_v0, %v1880_v7  ;;  %v5349_v52 = vmax.f32 %v4457_v24, 0.0  ;;  %v5368_v19 = vld [vmem:[#allocation62_spill] sm:$0xff] }
 0x17e   : > { %v1897_v55 = vadd.f32 %v4469_v0, %v1881_v1  ;;  %v1898_v29 = vmax.f32 %v1884_v30, 0.0  ;;  %v1899_v58 = vmax.f32 %v1885_v22, 0.0  ;;  %v1900_v34 = vmax.f32 %v1886_v37, 0.0  ;;  %v5353_v0 = vld [vmem:[#allocation24_spill] sm:$0xff] }
 0x17f   : > { %v4558_v16 = vmul.f32 %v4460_v25, %v5349_v52  ;;  %v1901_v59 = vmax.f32 %v1887_v38, 0.0  ;;  %v1902_v10 = vmax.f32 %v1888_v57, 0.0  ;;  %v1903_v46 = vmax.f32 %v1889_v26, 0.0  ;;  %v5351_v25 = vld [vmem:[#allocation23_spill] sm:$0xff] }
 0x180   : > { %v1904_v11 = vmax.f32 %v1890_v32, 0.0  ;;  %v1905_v48 = vmax.f32 %v1891_v60, 0.0  ;;  %v1906_v61 = vmax.f32 %v1892_v2, 0.0  ;;  %v1913_v36 = vstv %s4532_s26  ;;  %v5369_v32 = vld [vmem:[#allocation26_spill] sm:$0xff]  ;;  %v5370_v2 = vld [vmem:[#allocation63_spill] sm:$0xff] }
 0x181   : > { %v1907_v50 = vmax.f32 %v1893_v9, 0.0  ;;  %v1908_v3 = vmax.f32 %v1894_v12, 0.0  ;;  %v1909_v27 = vmax.f32 %v1895_v45, 0.0  ;;  %v1910_v42 = vmax.f32 %v1896_v6, 0.0  ;;  %v5371_v9 = vld [vmem:[#allocation57_spill] sm:$0xff]  ;;  %v5372_v45 = vld [vmem:[#allocation71_spill] sm:$0xff] }
 0x182   : > { %v1911_v24 = vmax.f32 %v1897_v55, 0.0  ;;  %v1928_v53 = vadd.f32 %v5351_v25, %v5350_v33  ;;  %v1929_v47 = vadd.f32 %v5353_v0, %v5352_v56  ;;  %v1930_v18 = vadd.f32 %v5355_v5, %v5354_v31  ;;  %v5373_v6 = vld [vmem:[#allocation77_spill] sm:$0xff]  ;;  %v5385_v56 = vld [vmem:[#allocation52_spill] sm:$0xff]  ;;  %v5386_v31 = vld [vmem:[#allocation35_spill] sm:$0xff] }
 0x183   : > { %v4568_v14 = vmul.f32 %v1913_v36, %v1898_v29  ;;  %v4570_v21 = vmul.f32 %v1913_v36, %v1899_v58  ;;  %v4572_v51 = vmul.f32 %v1913_v36, %v1900_v34  ;;  %v4574_v35 = vmul.f32 %v1913_v36, %v1901_v59  ;;  %v5374_v55 = vld [vmem:[#allocation65_spill] sm:$0xff]  ;;  %v5375_v29 = vld [vmem:[#allocation58_spill] sm:$0xff] }
 0x184   : > { %v4576_v62 = vmul.f32 %v1913_v36, %v1902_v10  ;;  %v4578_v7 = vmul.f32 %v1913_v36, %v1903_v46  ;;  %v4580_v1 = vmul.f32 %v1913_v36, %v1904_v11  ;;  %v4582_v30 = vmul.f32 %v1913_v36, %v1905_v48  ;;  %v5376_v34 = vld [vmem:[#allocation66_spill] sm:$0xff]  ;;  %v5378_v46 = vld [vmem:[#allocation67_spill] sm:$0xff]  ;;  %v5379_v11 = vld [vmem:[#allocation20_spill] sm:$0xff] }
 0x185   : > { %5356 = vst [vmem:[#allocation29_spill] sm:$0xff] %v4570_v21  ;;  %v4584_v22 = vmul.f32 %v1913_v36, %v1906_v61  ;;  %v4586_v37 = vmul.f32 %v1913_v36, %v1907_v50  ;;  %v4588_v38 = vmul.f32 %v1913_v36, %v1908_v3  ;;  %v4590_v57 = vmul.f32 %v1913_v36, %v1909_v27  ;;  %v5377_v59 = vld [vmem:[#allocation78_spill] sm:$0xff]  ;;  %v5380_v61 = vld [vmem:[#allocation72_spill] sm:$0xff]  ;;  %v5384_v25 = vld [vmem:[#allocation21_spill] sm:$0xff] }
 0x186   : > { %5357 = vst [vmem:[#allocation30_spill] sm:$0xff] %v4572_v51  ;;  %v4592_v26 = vmul.f32 %v1913_v36, %v1910_v42  ;;  %v1931_v60 = vadd.f32 %v5369_v32, %v5368_v19  ;;  %v1932_v12 = vadd.f32 %v5371_v9, %v5370_v2  ;;  %v1933_v52 = vadd.f32 %v5373_v6, %v5372_v45  ;;  %v5381_v50 = vld [vmem:[#allocation40_spill] sm:$0xff]  ;;  %v5382_v27 = vld [vmem:[#allocation70_spill] sm:$0xff]  ;;  %v5383_v42 = vld [vmem:[#allocation47_spill] sm:$0xff] }
 0x187   : > { %5358 = vst [vmem:[#allocation31_spill] sm:$0xff] %v4574_v35  ;;  %v1934_v58 = vadd.f32 %v5375_v29, %v5374_v55  ;;  %v1935_v10 = vadd.f32 %v5377_v59, %v5376_v34  ;;  %v1936_v48 = vadd.f32 %v5379_v11, %v5378_v46  ;;  %v1937_v3 = vadd.f32 %v5381_v50, %v5380_v61  ;;  %v5387_v5 = vld [vmem:[#allocation53_spill] sm:$0xff]  ;;  %v5388_v32 = vld [vmem:[#allocation59_spill] sm:$0xff]  ;;  %v5391_v6 = vld [vmem:[#allocation74_spill] sm:$0xff] }
 0x188   : > { %5359 = vst [vmem:[#allocation76_spill] sm:$0xff] %v4576_v62  ;;  %v1938_v33 = vadd.f32 %v5383_v42, %v5382_v27  ;;  %v1939_v0 = vadd.f32 %v5385_v56, %v5384_v25  ;;  %v1940_v19 = vadd.f32 %v5387_v5, %v5386_v31  ;;  %v5389_v2 = vld [vmem:[#allocation51_spill] sm:$0xff]  ;;  %v5390_v45 = vld [vmem:[#allocation41_spill] sm:$0xff]  ;;  %v5392_v29 = vld [vmem:[#allocation60_spill] sm:$0xff]  ;;  %v4640_v62 = vmul.f32 %v1913_v36, %v1911_v24 }
 0x189   : > { %5360 = vst [vmem:[#allocation64_spill] sm:$0xff] %v4578_v7  ;;  %v1942_v9 = vadd.f32 %v5389_v2, %v5388_v32  ;;  %v1943_v55 = vadd.f32 %v5391_v6, %v5390_v45  ;;  %v5393_v34 = vld [vmem:[#allocation55_spill] sm:$0xff]  ;;  %v5396_v50 = vld [vmem:[#allocation36_spill] sm:$0xff]  ;;  %v5403_v32 = vld [vmem:[#allocation81_spill] sm:$0xff] }
 0x18a   : > { %5361 = vst [vmem:[#allocation32_spill] sm:$0xff] %v4580_v1  ;;  %v1944_v59 = vadd.f32 %v5393_v34, %v5392_v29  ;;  %v5394_v46 = vld [vmem:[#allocation27_spill] sm:$0xff]  ;;  %v5397_v27 = vld [vmem:[#allocation56_spill] sm:$0xff]  ;;  %v5405_v45 = vld [vmem:[#allocation82_spill] sm:$0xff] }
 0x18b   : > { %5362 = vst [vmem:[#allocation33_spill] sm:$0xff] %v4582_v30  ;;  %v5395_v11 = vld [vmem:[#allocation75_spill] sm:$0xff]  ;;  %v1946_v42 = vadd.f32 %v5397_v27, %v5396_v50  ;;  %v5401_v31 = vld [vmem:[#allocation80_spill] sm:$0xff]  ;;  %v5410_v1 = vld [vmem:[#allocation49_spill] sm:$0xff]  ;;  %v1957_v51 = vadd.f32 %v1943_v55, %v1929_v47 }
 0x18c   : > { %5363 = vst [vmem:[#allocation34_spill] sm:$0xff] %v4584_v22  ;;  %v1945_v61 = vadd.f32 %v5395_v11, %v5394_v46  ;;  %v5399_v25 = vld [vmem:[#allocation79_spill] sm:$0xff]  ;;  %v5406_v22 = vld [vmem:[#allocation46_spill] sm:$0xff]  ;;  %v5408_v30 = vld [vmem:[#allocation48_spill] sm:$0xff] }
 0x18d   : > { %5364 = vst [vmem:[#allocation68_spill] sm:$0xff] %v4586_v37  ;;  %v5404_v37 = vld [vmem:[#allocation45_spill] sm:$0xff]  ;;  %v5407_v29 = vld [vmem:[#allocation83_spill] sm:$0xff]  ;;  %v5409_v46 = vld [vmem:[#allocation84_spill] sm:$0xff]  ;;  %v1960_v21 = vadd.f32 %v1946_v42, %v1932_v12 }
 0x18e   : > { %5365 = vst [vmem:[#allocation38_spill] sm:$0xff] %v4588_v38  ;;  %v5402_v38 = vld [vmem:[#allocation44_spill] sm:$0xff]  ;;  %v1950_v6 = vadd.f32 %v5405_v45, %v5404_v37  ;;  %v1951_v34 = vadd.f32 %v5407_v29, %v5406_v22  ;;  %v1952_v11 = vadd.f32 %v5409_v46, %v5408_v30  ;;  %v5411_v50 = vld [vmem:[#allocation85_spill] sm:$0xff]  ;;  %v5412_v7 = vld [vmem:[#allocation50_spill] sm:$0xff]  ;;  %v1956_v45 = vadd.f32 %v1942_v9, %v1928_v53 }
 0x18f   : > { %5366 = vst [vmem:[#allocation37_spill] sm:$0xff] %v4590_v57  ;;  %v5400_v57 = vld [vmem:[#allocation43_spill] sm:$0xff]  ;;  %v1949_v2 = vadd.f32 %v5403_v32, %v5402_v38  ;;  %v1953_v27 = vadd.f32 %v5411_v50, %v5410_v1  ;;  %v5416_v32 = vld [vmem:[#allocation73_spill] sm:$0xff]  ;;  %v1958_v22 = vadd.f32 %v1944_v59, %v1930_v18  ;;  %v1959_v29 = vadd.f32 %v1945_v61, %v1931_v60  ;;  %v5418_v47 = vld [vmem:[#allocation88_spill] sm:$0xff] }
 0x190   : > { %5367 = vst [vmem:[#allocation28_spill] sm:$0xff] %v4592_v26  ;;  %v5398_v26 = vld [vmem:[#allocation42_spill] sm:$0xff]  ;;  %v1948_v5 = vadd.f32 %v5401_v31, %v5400_v57  ;;  %v5417_v35 = vld [vmem:[#allocation87_spill] sm:$0xff]  ;;  %v4654_v36 = vadd.f32 %v1951_v34, %v1937_v3  ;;  %v4656_v24 = vadd.f32 %v1952_v11, %v1938_v33  ;;  %v5420_v12 = vld [vmem:[#allocation89_spill] sm:$0xff] }
 0x191   : > { %v1947_v56 = vadd.f32 %v5399_v25, %v5398_v26  ;;  %v5413_v26 = vld [vmem:[#allocation86_spill] sm:$0xff]  ;;  %v1955_v37 = vadd.f32 %v5417_v35, %v5416_v32  ;;  %v4650_v1 = vadd.f32 %v1949_v2, %v1935_v10  ;;  %v4658_v50 = vadd.f32 %v1953_v27, %v1939_v0  ;;  %v5423_v9 = vld [vmem:[#allocation104_spill] sm:$0xff]  ;;  %v5424_v55 = vld [vmem:[#allocation91_spill] sm:$0xff] }
 0x192   : > { %v1954_v25 = vadd.f32 %v5413_v26, %v5412_v7  ;;  %v5414_v57 = vld [vmem:[#allocation22_spill] sm:$0xff]  ;;  %v4648_v46 = vadd.f32 %v1948_v5, %v1934_v58  ;;  %v4652_v7 = vadd.f32 %v1950_v6, %v1936_v48  ;;  %v5425_v3 = vld [vmem:[#allocation105_spill] sm:$0xff]  ;;  %v5426_v33 = vld [vmem:[#allocation92_spill] sm:$0xff] }
 0x193   : > { %v5415_v31 = vld [vmem:[#allocation54_spill] sm:$0xff]  ;;  %v4646_v30 = vadd.f32 %v1947_v56, %v1933_v52  ;;  %v5421_v52 = vld [vmem:[#allocation103_spill] sm:$0xff]  ;;  %v1973_v59 = vadd.f32 %v5425_v3, %v5424_v55  ;;  %v5428_v42 = vld [vmem:[#allocation93_spill] sm:$0xff] }
 0x194   : > { %v1941_v38 = vadd.f32 %v5415_v31, %v5414_v57  ;;  %v4660_v35 = vadd.f32 %v1954_v25, %v1940_v19  ;;  %v5419_v18 = vld [vmem:[#allocation102_spill] sm:$0xff]  ;;  %v1971_v58 = vadd.f32 %v5421_v52, %v5420_v12  ;;  %v5429_v19 = vld [vmem:[#allocation107_spill] sm:$0xff]  ;;  %v5430_v5 = vld [vmem:[#allocation116_spill] sm:$0xff] }
 0x195   : > { %v1970_v60 = vadd.f32 %v5419_v18, %v5418_v47  ;;  %v5422_v10 = vld [vmem:[#allocation90_spill] sm:$0xff]  ;;  %v1975_v56 = vadd.f32 %v5429_v19, %v5428_v42  ;;  %v1984_v2 = vadd.f32 %v4472_v63, %v5430_v5  ;;  %v5432_v34 = vld [vmem:[#allocation108_spill] sm:$0xff]  ;;  %v5433_v27 = vld [vmem:[#allocation117_spill] sm:$0xff] }
 0x196   : > { %v4662_v53 = vadd.f32 %v1955_v37, %v1941_v38  ;;  %v1972_v48 = vadd.f32 %v5423_v9, %v5422_v10  ;;  %v5427_v61 = vld [vmem:[#allocation106_spill] sm:$0xff]  ;;  %v1985_v26 = vadd.f32 %v4475_v13, %v5433_v27  ;;  %v5435_v31 = vld [vmem:[#allocation119_spill] sm:$0xff]  ;;  %v5437_v37 = vld [vmem:[#allocation109_spill] sm:$0xff] }
 0x197   : > { %v1974_v0 = vadd.f32 %v5427_v61, %v5426_v33  ;;  %v5431_v6 = vld [vmem:[#allocation94_spill] sm:$0xff]  ;;  %v1987_v38 = vadd.f32 %v4481_v43, %v5435_v31  ;;  %v5436_v32 = vld [vmem:[#allocation95_spill] sm:$0xff]  ;;  %v5438_v18 = vld [vmem:[#allocation96_spill] sm:$0xff] }
 0x198   : > { %v1976_v11 = vadd.f32 %v5432_v34, %v5431_v6  ;;  %v5434_v25 = vld [vmem:[#allocation118_spill] sm:$0xff]  ;;  %v1977_v47 = vadd.f32 %v5437_v37, %v5436_v32  ;;  %v5440_v52 = vld [vmem:[#allocation97_spill] sm:$0xff]  ;;  %v5441_v10 = vld [vmem:[#allocation111_spill] sm:$0xff] }
 0x199   : > { %v1986_v57 = vadd.f32 %v4478_v23, %v5434_v25  ;;  %v5439_v12 = vld [vmem:[#allocation110_spill] sm:$0xff]  ;;  %v1979_v9 = vadd.f32 %v5441_v10, %v5440_v52  ;;  %v5443_v3 = vld [vmem:[#allocation112_spill] sm:$0xff]  ;;  %v5444_v33 = vld [vmem:[#allocation99_spill] sm:$0xff] }
 0x19a   : > { %v1978_v63 = vadd.f32 %v5439_v12, %v5438_v18  ;;  %v5442_v55 = vld [vmem:[#allocation98_spill] sm:$0xff]  ;;  %v5445_v61 = vld [vmem:[#allocation113_spill] sm:$0xff]  ;;  %v5446_v42 = vld [vmem:[#allocation120_spill] sm:$0xff]  ;;  %v1998_v12 = vadd.f32 %v1984_v2, %v1970_v60 }
 0x19b   : > { %v1980_v13 = vadd.f32 %v5443_v3, %v5442_v55  ;;  %v1981_v23 = vadd.f32 %v5445_v61, %v5444_v33  ;;  %v1988_v43 = vadd.f32 %v4484_v28, %v5446_v42  ;;  %v5447_v19 = vld [vmem:[#allocation121_spill] sm:$0xff]  ;;  %v5448_v6 = vld [vmem:[#allocation122_spill] sm:$0xff]  ;;  %v5449_v27 = vld [vmem:[#allocation123_spill] sm:$0xff]  ;;  %v2000_v55 = vadd.f32 %v1986_v57, %v1972_v48 }
 0x19c   : > { %v1989_v5 = vadd.f32 %v4487_v40, %v5447_v19  ;;  %v1990_v34 = vadd.f32 %v4490_v41, %v5448_v6  ;;  %v1991_v25 = vadd.f32 %v4493_v39, %v5449_v27  ;;  %v5450_v31 = vld [vmem:[#allocation124_spill] sm:$0xff]  ;;  %v5451_v37 = vld [vmem:[#allocation125_spill] sm:$0xff]  ;;  %v5453_v52 = vld [vmem:[#allocation114_spill] sm:$0xff]  ;;  %v1999_v40 = vadd.f32 %v1985_v26, %v1971_v58 }
 0x19d   : > { %v1992_v32 = vadd.f32 %v4496_v20, %v5450_v31  ;;  %v1993_v18 = vadd.f32 %v4499_v54, %v5451_v37  ;;  %v5452_v28 = vld [vmem:[#allocation100_spill] sm:$0xff]  ;;  %v2001_v3 = vadd.f32 %v1987_v38, %v1973_v59  ;;  %v5454_v41 = vld [vmem:[#allocation101_spill] sm:$0xff]  ;;  %v5455_v33 = vld [vmem:[#allocation115_spill] sm:$0xff]  ;;  %v1994_v39 = vadd.f32 %v4530_v15, %v4416_v8 }
 0x19e   : > { %v1982_v10 = vadd.f32 %v5453_v52, %v5452_v28  ;;  %v1983_v61 = vadd.f32 %v5455_v33, %v5454_v41  ;;  %v1995_v20 = vadd.f32 %v4535_v17, %v4423_v4  ;;  %v1996_v54 = vadd.f32 %v4546_v44, %v4436_v49  ;;  %v5456_v60 = vld [vmem:[#allocation126_spill] sm:$0xff]  ;;  %v5457_v44 = vld [vmem:[#allocation29_spill] sm:$0xff] }
 0x19f   : > { %v1997_v2 = vadd.f32 %v4558_v16, %v5456_v60  ;;  %v2002_v42 = vadd.f32 %v1988_v43, %v1974_v0  ;;  %v2003_v58 = vadd.f32 %v1989_v5, %v1975_v56  ;;  %v2004_v48 = vadd.f32 %v1990_v34, %v1976_v11  ;;  %v5458_v16 = vld [vmem:[#allocation30_spill] sm:$0xff]  ;;  %v5459_v56 = vld [vmem:[#allocation31_spill] sm:$0xff] }
 0x1a0   : > { %v2005_v59 = vadd.f32 %v1991_v25, %v1977_v47  ;;  %v2006_v26 = vadd.f32 %v1992_v32, %v1978_v63  ;;  %v2007_v57 = vadd.f32 %v1993_v18, %v1979_v9  ;;  %v2012_v8 = vadd.f32 %v1998_v12, %v1956_v45  ;;  %v5460_v47 = vld [vmem:[#allocation76_spill] sm:$0xff]  ;;  %v5464_v28 = vld [vmem:[#allocation34_spill] sm:$0xff] }
 0x1a1   : > { %v2013_v15 = vadd.f32 %v1999_v40, %v1957_v51  ;;  %v2014_v38 = vadd.f32 %v2000_v55, %v1958_v22  ;;  %v2015_v4 = vadd.f32 %v2001_v3, %v1959_v29  ;;  %v2027_v17 = vstv %s4686_s27  ;;  %v5461_v22 = vld [vmem:[#allocation64_spill] sm:$0xff]  ;;  %v5466_v40 = vld [vmem:[#allocation38_spill] sm:$0xff] }
 0x1a2   : > { %v2028_v49 = vadd.f32 %v2027_v17, %v4568_v14  ;;  %v2029_v19 = vadd.f32 %v2027_v17, %v5457_v44  ;;  %v2030_v0 = vadd.f32 %v2027_v17, %v5458_v16  ;;  %v2031_v11 = vadd.f32 %v2027_v17, %v5459_v56  ;;  %v5462_v9 = vld [vmem:[#allocation32_spill] sm:$0xff] }
 0x1a3   : > { %v2008_v43 = vadd.f32 %v1994_v39, %v1980_v13  ;;  %v2009_v5 = vadd.f32 %v1995_v20, %v1981_v23  ;;  %v2016_v6 = vadd.f32 %v2002_v42, %v1960_v21  ;;  %v2032_v34 = vadd.f32 %v2027_v17, %v5460_v47  ;;  %v5463_v13 = vld [vmem:[#allocation33_spill] sm:$0xff] }
 0x1a4   : > { %v2010_v63 = vadd.f32 %v1996_v54, %v1982_v10  ;;  %v2011_v45 = vadd.f32 %v1997_v2, %v1983_v61  ;;  %v2017_v51 = vadd.f32 %v2003_v58, %v4646_v30  ;;  %v2033_v29 = vadd.f32 %v2027_v17, %v5461_v22  ;;  %v5465_v10 = vld [vmem:[#allocation68_spill] sm:$0xff]  ;;  %v5467_v39 = vld [vmem:[#allocation37_spill] sm:$0xff] }
 0x1a5   : > { %v2018_v14 = vadd.f32 %v2004_v48, %v4648_v46  ;;  %v2034_v27 = vadd.f32 %v2027_v17, %v5462_v9  ;;  %v2042_v25 = vadd.f32 %v2028_v49, %v2012_v8  ;;  %v2043_v31 = vadd.f32 %v2029_v19, %v2013_v15  ;;  %v5468_v2 = vld [vmem:[#allocation28_spill] sm:$0xff] }
 0x1a6   : > { %v2019_v32 = vadd.f32 %v2005_v59, %v4650_v1  ;;  %v2035_v23 = vadd.f32 %v2027_v17, %v5463_v13  ;;  %v2044_v21 = vadd.f32 %v2030_v0, %v2014_v38  ;;  %v2045_v37 = vadd.f32 %v2031_v11, %v2015_v4 }
 0x1a7   : > { %v2020_v18 = vadd.f32 %v2006_v26, %v4652_v7  ;;  %v2021_v12 = vadd.f32 %v2007_v57, %v4654_v36  ;;  %v2036_v30 = vadd.f32 %v2027_v17, %v5464_v28  ;;  %v2046_v52 = vadd.f32 %v2032_v34, %v2016_v6 }
 0x1a8   : > { %v2022_v46 = vadd.f32 %v2008_v43, %v4656_v24  ;;  %v2037_v1 = vadd.f32 %v2027_v17, %v5465_v10  ;;  %v2038_v55 = vadd.f32 %v2027_v17, %v5466_v40  ;;  %v2047_v3 = vadd.f32 %v2033_v29, %v2017_v51 }
 0x1a9   : > { %v2048_v41 = vadd.f32 %v2034_v27, %v2018_v14  ;;  %v2056_v7 = vmax.f32 %v2042_v25, 0.0  ;;  %v2057_v36 = vmax.f32 %v2043_v31, 0.0  ;;  %v2058_v33 = vmax.f32 %v2044_v21, 0.0 }
 0x1aa   : > { %v2023_v61 = vadd.f32 %v2009_v5, %v4658_v50  ;;  %v2039_v20 = vadd.f32 %v2027_v17, %v5467_v39  ;;  %v2049_v54 = vadd.f32 %v2035_v23, %v2019_v32  ;;  %v2059_v60 = vmax.f32 %v2045_v37, 0.0 }
 0x1ab   : > { %v2024_v24 = vadd.f32 %v2010_v63, %v4660_v35  ;;  %v2040_v42 = vadd.f32 %v2027_v17, %v5468_v2  ;;  %v2050_v58 = vadd.f32 %v2036_v30, %v2020_v18  ;;  %v2060_v48 = vmax.f32 %v2046_v52, 0.0  ;;  %2070 = vst [vmem:[%s4747_s18] sm:$0x7f] %v2056_v7 }
 0x1ac   : > { %v2025_v59 = vadd.f32 %v2011_v45, %v4662_v53  ;;  %v2041_v26 = vadd.f32 %v2027_v17, %v4640_v62  ;;  %v2051_v50 = vadd.f32 %v2037_v1, %v2021_v12  ;;  %v2061_v57 = vmax.f32 %v2047_v3, 0.0  ;;  %2071 = vst [vmem:[%s4747_s18 + $0x8] sm:$0x7f] %v2057_v36 }
 0x1ad   : > { %v2052_v8 = vadd.f32 %v2038_v55, %v2022_v46  ;;  %v2062_v15 = vmax.f32 %v2048_v41, 0.0  ;;  %2072 = vst [vmem:[%s4747_s18 + $0x10] sm:$0x7f] %v2058_v33  ;;  %v2053_v35 = vadd.f32 %v2039_v20, %v2023_v61  ;;  %v2063_v38 = vmax.f32 %v2049_v54, 0.0 }
 0x1ae   : > { %2073 = vst [vmem:[%s4747_s18 + $0x18] sm:$0x7f] %v2059_v60  ;;  %v2054_v4 = vadd.f32 %v2040_v42, %v2024_v24  ;;  %v2064_v53 = vmax.f32 %v2050_v58, 0.0  ;;  %v2055_v62 = vadd.f32 %v2041_v26, %v2025_v59  ;;  %v2065_v17 = vmax.f32 %v2051_v50, 0.0 }
 0x1af   : > { %2074 = vst [vmem:[%s4747_s18 + $0x20] sm:$0x7f] %v2060_v48  ;;  %v2066_v49 = vmax.f32 %v2052_v8, 0.0  ;;  %v2067_v44 = vmax.f32 %v2053_v35, 0.0 }
 0x1b0   : > { %2075 = vst [vmem:[%s4747_s18 + $0x28] sm:$0x7f] %v2061_v57  ;;  %v2068_v19 = vmax.f32 %v2054_v4, 0.0  ;;  %v2069_v16 = vmax.f32 %v2055_v62, 0.0 }
 0x1b1   : > { %2076 = vst [vmem:[%s4747_s18 + $0x30] sm:$0x7f] %v2062_v15 }
 0x1b2   : > { %2077 = vst [vmem:[%s4747_s18 + $0x38] sm:$0x7f] %v2063_v38 }
 0x1b3   : > { %2078 = vst [vmem:[%s4747_s18 + $0x40] sm:$0x7f] %v2064_v53 }
 0x1b4   : > { %2079 = vst [vmem:[%s4747_s18 + $0x48] sm:$0x7f] %v2065_v17 }
 0x1b5   : > { %2080 = vst [vmem:[%s4747_s18 + $0x50] sm:$0x7f] %v2066_v49 }
 0x1b6   : > { %2081 = vst [vmem:[%s4747_s18 + $0x58] sm:$0x7f] %v2067_v44 }
 0x1b7   : > { %2082 = vst [vmem:[%s4747_s18 + $0x60] sm:$0x7f] %v2068_v19 }
 0x1b8   : > { %2083 = vst [vmem:[%s4747_s18 + $0x68] sm:$0x7f] %v2069_v16 }
 0x1b9 PF: > { %s24_s9 = sadd.s32 1, %s2537_s9   ;;  %s5469_s29 = smov %s2533_s30 }
 0x1ba   : > { %p21_p8 = scmp.ge.s32.totalorder %s24_s9, 4   ;;  %s5470_s30 = smov %s5472_s19 }
 0x1bc   :  { %23 = sbr.rel (!%p21_p8) target bundleno = 8 (0x8), region = 111 }
 0x1c1   :  { %2111 = vsyncpa [#allocation4], 1 }
 0x1c2   :  { %2113 = vsyncpa [#allocation4 + $0x1], 1 }
 0x1c3   :  { %2114 = vsyncpa [#allocation5], 1 }
 0x1c4   :  { %2116 = vsyncpa [#allocation5 + $0x1], 1 }
 0x1c5   :  { %2117 = vsyncpa [#allocation8], 1 }
 0x1c6   :  { %2118 = vsyncpa [#allocation11], 1 }
 0x1c7   :  { %2119 = vsyncpa [#allocation14], 1 }

</bundles_post_ra>
